<compile_context>
chip_gen: v6e
topology: v6e:2x2x1
jax: 0.10.0
libtpu: 0.0.40
codegen_flags: <defaults>
</compile_context>

<pallas_src>
import math
import functools

import jax
import jax.numpy as jnp
from jax.experimental import pallas as pl
from jax.experimental.pallas import tpu as pltpu

EPS = 1e-5  # nn.LayerNorm default eps


# ----------------------------- in-kernel helpers -----------------------------

def _gelu_tanh(x):
    # tanh-approx GELU; jnp.tanh lowers to the EUP so the MLP's widest tensor stays off
    # the VALU divide path.  Max |err| vs the exact erf GELU is ~4e-4 (within tolerance).
    c = 0.7978845608028654  # sqrt(2/pi)
    return 0.5 * x * (1.0 + jnp.tanh(c * (x + 0.044715 * (x * x * x))))


def _layernorm(x, gamma, beta):
    m = jnp.mean(x, axis=-1, keepdims=True)
    c = x - m
    v = jnp.mean(c * c, axis=-1, keepdims=True)
    return c * jax.lax.rsqrt(v + EPS) * gamma + beta


# ------------------------------- fused kernel --------------------------------

def _chi_block_kernel(x1_ref, x2_ref, x3_ref,
                      gq_ref, bq_ref, gk_ref, bk_ref, gv_ref, bv_ref,
                      wq_ref, wk_ref, wv_ref, wp_ref, bp_ref,
                      mg_ref, mb_ref, w1_ref, b1_ref, w2_ref, b2_ref,
                      o1_ref, o2_ref, o3_ref,
                      *, N, C, H, bb):
    hd = C // H
    scale = hd ** -0.5
    bn = bb * N
    mxu_dtype = wq_ref.dtype             # MXU weights were pre-cast on the host
    cast = lambda t: t.astype(mxu_dtype)

    # Activations for this batch block, folded to (bb*N, C) slabs (batch into M).
    x1 = x1_ref[...].astype(jnp.float32).reshape(bn, C)
    x2 = x2_ref[...].astype(jnp.float32).reshape(bn, C)
    x3 = x3_ref[...].astype(jnp.float32).reshape(bn, C)

    def split_heads(t):
        # (bn, C) -> (bb*H, N, hd) via static lane slices: no activation broadcast and
        # no lane-dim reshape of the activation.  Group index g = h*bb + b.
        heads = [t[:, h * hd:(h + 1) * hd] for h in range(H)]       # H x (bn, hd)
        st = jnp.stack(heads, axis=0)                               # (H, bn, hd)
        return st.reshape(H * bb, N, hd)

    def merge_heads(t):
        # (bb*H, N, hd) -> (bn, C); head h lands in columns [h*hd:(h+1)*hd] (PyTorch order).
        t = t.reshape(H, bn, hd)
        return jnp.concatenate([t[h] for h in range(H)], axis=-1)

    def cross_attn(i, xq_src, xk_src, xv_src):
        xq = _layernorm(xq_src, gq_ref[i], bq_ref[i])
        xk = _layernorm(xk_src, gk_ref[i], bk_ref[i])
        xv = _layernorm(xv_src, gv_ref[i], bv_ref[i])

        # Full-width projections: (bn, C) @ (C, C) keeps the MXU output width at C.
        q = jnp.dot(cast(xq), wq_ref[i], preferred_element_type=jnp.float32)
        k = jnp.dot(cast(xk), wk_ref[i], preferred_element_type=jnp.float32)
        v = jnp.dot(cast(xv), wv_ref[i], preferred_element_type=jnp.float32)

        q = split_heads(q)
        k = split_heads(k)
        v = split_heads(v)

        # Attention per (head, batch) group as a single batched MXU contraction.
        s = jnp.einsum('gnd,gmd->gnm', cast(q), cast(k),
                       preferred_element_type=jnp.float32) * scale
        s = s - jnp.max(s, axis=-1, keepdims=True)
        p = jnp.exp(s)
        # EUP approximate reciprocal instead of a VALU divide.
        p = p * pl.reciprocal(jnp.sum(p, axis=-1, keepdims=True), approx=True)
        o = jnp.einsum('gnm,gmd->gnd', cast(p), cast(v),
                       preferred_element_type=jnp.float32)

        # Single full-width output projection (== concat(heads) @ Wp): no (H, bn, C)
        # intermediate and no H-way reduction.
        o = merge_heads(o)
        return jnp.dot(cast(o), wp_ref[i], preferred_element_type=jnp.float32) + bp_ref[i]

    # Sequential cross-hypothesis updates (same dependency chain as the PyTorch module).
    x1 = x1 + cross_attn(0, x2, x3, x1)
    x2 = x2 + cross_attn(1, x1, x3, x2)
    x3 = x3 + cross_attn(2, x1, x2, x3)

    # ---- MLP over the virtual concat [x1 | x2 | x3] ------------------------------
    # LayerNorm over 3C channels with decomposed statistics; fc1/fc2 split into
    # per-hypothesis row/column blocks -> no 3C-wide tensor is ever built.
    inv_d = 1.0 / (3 * C)
    mean = (jnp.sum(x1, -1, keepdims=True) + jnp.sum(x2, -1, keepdims=True)
            + jnp.sum(x3, -1, keepdims=True)) * inv_d
    c1, c2, c3 = x1 - mean, x2 - mean, x3 - mean
    var = (jnp.sum(c1 * c1, -1, keepdims=True) + jnp.sum(c2 * c2, -1, keepdims=True)
           + jnp.sum(c3 * c3, -1, keepdims=True)) * inv_d
    rstd = jax.lax.rsqrt(var + EPS)
    xn1 = c1 * rstd * mg_ref[0] + mb_ref[0]
    xn2 = c2 * rstd * mg_ref[1] + mb_ref[1]
    xn3 = c3 * rstd * mg_ref[2] + mb_ref[2]

    h = (jnp.dot(cast(xn1), w1_ref[0], preferred_element_type=jnp.float32)
         + jnp.dot(cast(xn2), w1_ref[1], preferred_element_type=jnp.float32)
         + jnp.dot(cast(xn3), w1_ref[2], preferred_element_type=jnp.float32)
         + b1_ref[...])
    h = _gelu_tanh(h)

    # TODO(synk): at toy C (<128) these stores are lane-masked; at real MHFormer dims
    # (C>=128) they are lane-dense and this is a non-issue.
    o1_ref[...] = (x1 + jnp.dot(cast(h), w2_ref[0], preferred_element_type=jnp.float32)
                   + b2_ref[0]).reshape(bb, N, C).astype(o1_ref.dtype)
    o2_ref[...] = (x2 + jnp.dot(cast(h), w2_ref[1], preferred_element_type=jnp.float32)
                   + b2_ref[1]).reshape(bb, N, C).astype(o2_ref.dtype)
    o3_ref[...] = (x3 + jnp.dot(cast(h), w2_ref[2], preferred_element_type=jnp.float32)
                   + b2_ref[2]).reshape(bb, N, C).astype(o3_ref.dtype)


# --------------------------------- wrapper -------------------------------------

def _pack_params(params, C, H, mxu_dtype):
    """Repack module params once: per-attention weight stacks in natural (C, C) layout
    (pre-cast to the MXU dtype on the host), fp32 LayerNorm/bias vectors as (3, 1, C)."""
    del H  # head split happens in-kernel on the natural-layout projections
    aps = [params['attn1'], params['attn2'], params['attn3']]

    def svec(key):                                                    # -> (3, 1, C) fp32
        return jnp.stack([p[key].reshape(1, -1) for p in aps]).astype(jnp.float32)

    gq, bq = svec('gq'), svec('bq')
    gk, bk = svec('gk'), svec('bk')
    gv, bv = svec('gv'), svec('bv')
    wq = jnp.stack([p['wq'] for p in aps]).astype(mxu_dtype)          # (3, C, C)
    wk = jnp.stack([p['wk'] for p in aps]).astype(mxu_dtype)
    wv = jnp.stack([p['wv'] for p in aps]).astype(mxu_dtype)
    wp = jnp.stack([p['wp'] for p in aps]).astype(mxu_dtype)
    bp = svec('bp')                                                   # (3, 1, C)

    mp = params['mlp']
    M = mp['w1'].shape[1]
    mg = mp['g'].reshape(3, 1, C).astype(jnp.float32)
    mb = mp['b'].reshape(3, 1, C).astype(jnp.float32)
    w1 = mp['w1'].reshape(3, C, M).astype(mxu_dtype)                  # fc1 row blocks
    b1 = mp['b1'].reshape(1, M).astype(jnp.float32)
    w2 = mp['w2'].reshape(M, 3, C).transpose(1, 0, 2).astype(mxu_dtype)   # fc2 col blocks
    b2 = mp['b2'].reshape(3, 1, C).astype(jnp.float32)
    return (gq, bq, gk, bk, gv, bv, wq, wk, wv, wp, bp, mg, mb, w1, b1, w2, b2)


def _vmem_limit_bytes():
    # Derive the scoped-VMEM limit per TPU generation (v5e/v6e: 128 MiB physical VMEM,
    # v7x: 64 MiB) instead of hard-coding; keep ~25% headroom for Mosaic scratch.
    try:
        cap = int(pltpu.get_tpu_info().vmem_capacity_bytes)
    except Exception:
        cap = 64 * 1024 * 1024
    return int(min(cap * 3 // 4, 96 * 1024 * 1024))


def chi_block_forward(x_1, x_2, x_3, params, *, mxu_dtype=jnp.float32, batch_block=1):
    """Mirrors CHI_Block.forward (dropout / drop_path are identity at eval).

    One fused kernel gridded over batch: weights are resident in VMEM via constant
    index_maps, activations are pipelined per batch block, and the batch axis is
    marked "parallel" so v7x's two TensorCores split it."""
    B, N, C = x_1.shape
    H = params['num_heads']
    bb = batch_block
    assert B % bb == 0 and C % H == 0
    packed = _pack_params(params, C, H, mxu_dtype)  # production: pack once at load time

    act_spec = pl.BlockSpec((bb, N, C), lambda b: (b, 0, 0))

    def const_spec(arr):
        nd = arr.ndim
        # Constant block index: the weight tile is fetched once and stays resident.
        # TODO(synk): on v7x at production sizes add pipeline_mode=pl.Buffered(1) here
        # to avoid double-buffering these constant blocks.
        return pl.BlockSpec(arr.shape, lambda b, nd=nd: (0,) * nd)

    kernel = functools.partial(_chi_block_kernel, N=N, C=C, H=H, bb=bb)
    out_sds = jax.ShapeDtypeStruct((B, N, C), x_1.dtype)

    o1, o2, o3 = pl.pallas_call(
        kernel,
        out_shape=(out_sds, out_sds, out_sds),
        grid=(B // bb,),
        in_specs=[act_spec, act_spec, act_spec] + [const_spec(w) for w in packed],
        out_specs=(act_spec, act_spec, act_spec),
        compiler_params=pltpu.CompilerParams(
            dimension_semantics=("parallel",),
            vmem_limit_bytes=_vmem_limit_bytes()),
    )(x_1, x_2, x_3, *packed)
    return o1, o2, o3


# --------------------------- deterministic parameters -------------------------

def init_params(key, dim, num_heads, mlp_hidden):
    keys = iter(jax.random.split(key, 64))

    def lin(i, o):
        return jax.random.normal(next(keys), (i, o), jnp.float32) * 0.05

    def vec(n, mean=0.0):
        return mean + 0.02 * jax.random.normal(next(keys), (1, n), jnp.float32)

    def attn_params():
        return dict(
            gq=vec(dim, 1.0), bq=vec(dim),
            gk=vec(dim, 1.0), bk=vec(dim),
            gv=vec(dim, 1.0), bv=vec(dim),
            wq=lin(dim, dim), wk=lin(dim, dim), wv=lin(dim, dim),
            wp=lin(dim, dim), bp=vec(dim),
        )

    return dict(
        num_heads=num_heads,
        attn1=attn_params(), attn2=attn_params(), attn3=attn_params(),
        mlp=dict(g=vec(dim * 3, 1.0), b=vec(dim * 3),
                 w1=lin(dim * 3, mlp_hidden), b1=vec(mlp_hidden),
                 w2=lin(mlp_hidden, dim * 3), b2=vec(dim * 3)),
    )


# ------------------------------ pure-JAX reference -----------------------------

def _ref_ln(x, g, b):
    m = jnp.mean(x, axis=-1, keepdims=True)
    v = jnp.mean((x - m) ** 2, axis=-1, keepdims=True)
    return (x - m) / jnp.sqrt(v + EPS) * g + b


def _ref_cross_attn(x_res, xq_src, xk_src, xv_src, p, num_heads):
    B, N, C = x_res.shape
    hd = C // num_heads
    scale = hd ** -0.5
    q = _ref_ln(xq_src, p['gq'][0], p['bq'][0]) @ p['wq']
    k = _ref_ln(xk_src, p['gk'][0], p['bk'][0]) @ p['wk']
    v = _ref_ln(xv_src, p['gv'][0], p['bv'][0]) @ p['wv']
    q = q.reshape(B, N, num_heads, hd).transpose(0, 2, 1, 3)
    k = k.reshape(B, N, num_heads, hd).transpose(0, 2, 1, 3)
    v = v.reshape(B, N, num_heads, hd).transpose(0, 2, 1, 3)
    attn = jax.nn.softmax((q @ jnp.swapaxes(k, -2, -1)) * scale, axis=-1)
    out = (attn @ v).transpose(0, 2, 1, 3).reshape(B, N, C)
    return x_res + (out @ p['wp'] + p['bp'][0])


def _ref_chi_block(x_1, x_2, x_3, params):
    H = params['num_heads']
    x_1 = _ref_cross_attn(x_1, x_2, x_3, x_1, params['attn1'], H)
    x_2 = _ref_cross_attn(x_2, x_1, x_3, x_2, params['attn2'], H)
    x_3 = _ref_cross_attn(x_3, x_1, x_2, x_3, params['attn3'], H)
    x = jnp.concatenate([x_1, x_2, x_3], axis=2)
    p = params['mlp']
    h = _ref_ln(x, p['g'][0], p['b'][0]) @ p['w1'] + p['b1'][0]
    h = 0.5 * h * (1.0 + jax.scipy.special.erf(h / math.sqrt(2.0)))   # exact GELU
    h = h @ p['w2'] + p['b2'][0]
    x = x + h
    C = x.shape[2] // 3
    return x[:, :, :C], x[:, :, C:2 * C], x[:, :, 2 * C:]


# ----------------------------------- main --------------------------------------

if __name__ == "__main__":
    B, N, C = 2, 8, 32          # batch, tokens (joints), embed dim
    num_heads = 4
    mlp_hidden = 64

    key = jax.random.PRNGKey(0)
    kx1, kx2, kx3, kp = jax.random.split(key, 4)
    x_1 = jax.random.normal(kx1, (B, N, C), jnp.float32)
    x_2 = jax.random.normal(kx2, (B, N, C), jnp.float32)
    x_3 = jax.random.normal(kx3, (B, N, C), jnp.float32)
    params = init_params(kp, C, num_heads, mlp_hidden)

    y1, y2, y3 = chi_block_forward(x_1, x_2, x_3, params)
    jax.block_until_ready((y1, y2, y3))

    r1, r2, r3 = _ref_chi_block(x_1, x_2, x_3, params)
    # 2e-3 tolerance: the kernel uses the EUP approximate reciprocal for the softmax
    # normalization and the tanh-approx GELU; everything else accumulates in fp32.
    for got, ref in ((y1, r1), (y2, r2), (y3, r3)):
        assert got.shape == ref.shape and got.dtype == ref.dtype
        err = float(jnp.max(jnp.abs(got - ref)))
        assert jnp.allclose(got, ref, atol=2e-3, rtol=2e-3), err

    print("KERNEL_OK")
</pallas_src>

<mosaic_0001>
module attributes {stable_mosaic.version = 11 : i64} {
  func.func @_chi_block_kernel(%arg0: i32, %arg1: memref<1x8x32xf32, #tpu.memory_space<vmem>>, %arg2: memref<1x8x32xf32, #tpu.memory_space<vmem>>, %arg3: memref<1x8x32xf32, #tpu.memory_space<vmem>>, %arg4: memref<3x1x32xf32, #tpu.memory_space<vmem>>, %arg5: memref<3x1x32xf32, #tpu.memory_space<vmem>>, %arg6: memref<3x1x32xf32, #tpu.memory_space<vmem>>, %arg7: memref<3x1x32xf32, #tpu.memory_space<vmem>>, %arg8: memref<3x1x32xf32, #tpu.memory_space<vmem>>, %arg9: memref<3x1x32xf32, #tpu.memory_space<vmem>>, %arg10: memref<3x32x32xf32, #tpu.memory_space<vmem>>, %arg11: memref<3x32x32xf32, #tpu.memory_space<vmem>>, %arg12: memref<3x32x32xf32, #tpu.memory_space<vmem>>, %arg13: memref<3x32x32xf32, #tpu.memory_space<vmem>>, %arg14: memref<3x1x32xf32, #tpu.memory_space<vmem>>, %arg15: memref<3x1x32xf32, #tpu.memory_space<vmem>>, %arg16: memref<3x1x32xf32, #tpu.memory_space<vmem>>, %arg17: memref<3x32x64xf32, #tpu.memory_space<vmem>>, %arg18: memref<1x64xf32, #tpu.memory_space<vmem>>, %arg19: memref<3x64x32xf32, #tpu.memory_space<vmem>>, %arg20: memref<3x1x32xf32, #tpu.memory_space<vmem>>, %arg21: memref<1x8x32xf32, #tpu.memory_space<vmem>>, %arg22: memref<1x8x32xf32, #tpu.memory_space<vmem>>, %arg23: memref<1x8x32xf32, #tpu.memory_space<vmem>>) attributes {dimension_semantics = [#tpu.dimension_semantics<parallel>], iteration_bounds = array<i64: 2>, scalar_prefetch = 0 : i64, scratch_operands = 0 : i64, tpu.core_type = #tpu.core_type<tc>, window_params = [{transform_indices = @transform_0, window_bounds = array<i64: 1, 8, 32>}, {transform_indices = @transform_1, window_bounds = array<i64: 1, 8, 32>}, {transform_indices = @transform_2, window_bounds = array<i64: 1, 8, 32>}, {pipeline_mode = #tpu.pipeline_mode<synchronous>, transform_indices = @transform_3, window_bounds = array<i64: 3, 1, 32>}, {pipeline_mode = #tpu.pipeline_mode<synchronous>, transform_indices = @transform_4, window_bounds = array<i64: 3, 1, 32>}, {pipeline_mode = #tpu.pipeline_mode<synchronous>, transform_indices = @transform_5, window_bounds = array<i64: 3, 1, 32>}, {pipeline_mode = #tpu.pipeline_mode<synchronous>, transform_indices = @transform_6, window_bounds = array<i64: 3, 1, 32>}, {pipeline_mode = #tpu.pipeline_mode<synchronous>, transform_indices = @transform_7, window_bounds = array<i64: 3, 1, 32>}, {pipeline_mode = #tpu.pipeline_mode<synchronous>, transform_indices = @transform_8, window_bounds = array<i64: 3, 1, 32>}, {pipeline_mode = #tpu.pipeline_mode<synchronous>, transform_indices = @transform_9, window_bounds = array<i64: 3, 32, 32>}, {pipeline_mode = #tpu.pipeline_mode<synchronous>, transform_indices = @transform_10, window_bounds = array<i64: 3, 32, 32>}, {pipeline_mode = #tpu.pipeline_mode<synchronous>, transform_indices = @transform_11, window_bounds = array<i64: 3, 32, 32>}, {pipeline_mode = #tpu.pipeline_mode<synchronous>, transform_indices = @transform_12, window_bounds = array<i64: 3, 32, 32>}, {pipeline_mode = #tpu.pipeline_mode<synchronous>, transform_indices = @transform_13, window_bounds = array<i64: 3, 1, 32>}, {pipeline_mode = #tpu.pipeline_mode<synchronous>, transform_indices = @transform_14, window_bounds = array<i64: 3, 1, 32>}, {pipeline_mode = #tpu.pipeline_mode<synchronous>, transform_indices = @transform_15, window_bounds = array<i64: 3, 1, 32>}, {pipeline_mode = #tpu.pipeline_mode<synchronous>, transform_indices = @transform_16, window_bounds = array<i64: 3, 32, 64>}, {pipeline_mode = #tpu.pipeline_mode<synchronous>, transform_indices = @transform_17, window_bounds = array<i64: 1, 64>}, {pipeline_mode = #tpu.pipeline_mode<synchronous>, transform_indices = @transform_18, window_bounds = array<i64: 3, 64, 32>}, {pipeline_mode = #tpu.pipeline_mode<synchronous>, transform_indices = @transform_19, window_bounds = array<i64: 3, 1, 32>}, {transform_indices = @transform_20, window_bounds = array<i64: 1, 8, 32>}, {transform_indices = @transform_21, window_bounds = array<i64: 1, 8, 32>}, {transform_indices = @transform_22, window_bounds = array<i64: 1, 8, 32>}]} {
    %c0 = arith.constant 0 : index
    %c0_0 = arith.constant 0 : index
    %c0_1 = arith.constant 0 : index
    %0 = vector.load %arg1[%c0, %c0_0, %c0_1] : memref<1x8x32xf32, #tpu.memory_space<vmem>>, vector<1x8x32xf32>
    %1 = vector.shape_cast %0 : vector<1x8x32xf32> to vector<8x32xf32>
    %c0_2 = arith.constant 0 : index
    %c0_3 = arith.constant 0 : index
    %c0_4 = arith.constant 0 : index
    %2 = vector.load %arg2[%c0_2, %c0_3, %c0_4] : memref<1x8x32xf32, #tpu.memory_space<vmem>>, vector<1x8x32xf32>
    %3 = vector.shape_cast %2 : vector<1x8x32xf32> to vector<8x32xf32>
    %c0_5 = arith.constant 0 : index
    %c0_6 = arith.constant 0 : index
    %c0_7 = arith.constant 0 : index
    %4 = vector.load %arg3[%c0_5, %c0_6, %c0_7] : memref<1x8x32xf32, #tpu.memory_space<vmem>>, vector<1x8x32xf32>
    %5 = vector.shape_cast %4 : vector<1x8x32xf32> to vector<8x32xf32>
    %c0_8 = arith.constant 0 : index
    %c0_9 = arith.constant 0 : index
    %c0_10 = arith.constant 0 : index
    %6 = vector.load %arg4[%c0_8, %c0_9, %c0_10] : memref<3x1x32xf32, #tpu.memory_space<vmem>>, vector<1x1x32xf32>
    %7 = vector.shape_cast %6 : vector<1x1x32xf32> to vector<1x32xf32>
    %c0_11 = arith.constant 0 : index
    %c0_12 = arith.constant 0 : index
    %c0_13 = arith.constant 0 : index
    %8 = vector.load %arg5[%c0_11, %c0_12, %c0_13] : memref<3x1x32xf32, #tpu.memory_space<vmem>>, vector<1x1x32xf32>
    %9 = vector.shape_cast %8 : vector<1x1x32xf32> to vector<1x32xf32>
    %cst = arith.constant dense<0.000000e+00> : vector<8xf32>
    %10 = vector.multi_reduction <add>, %3, %cst [1] : vector<8x32xf32> to vector<8xf32>
    %11 = vector.shape_cast %10 : vector<8xf32> to vector<8x1xf32>
    %cst_14 = arith.constant 3.200000e+01 : f32
    %12 = vector.broadcast %cst_14 : f32 to vector<8x1xf32>
    %13 = arith.divf %11, %12 : vector<8x1xf32>
    %14 = vector.broadcast %13 : vector<8x1xf32> to vector<8x32xf32>
    %15 = arith.subf %3, %14 : vector<8x32xf32>
    %16 = arith.mulf %15, %15 : vector<8x32xf32>
    %cst_15 = arith.constant dense<0.000000e+00> : vector<8xf32>
    %17 = vector.multi_reduction <add>, %16, %cst_15 [1] : vector<8x32xf32> to vector<8xf32>
    %18 = vector.shape_cast %17 : vector<8xf32> to vector<8x1xf32>
    %cst_16 = arith.constant 3.200000e+01 : f32
    %19 = vector.broadcast %cst_16 : f32 to vector<8x1xf32>
    %20 = arith.divf %18, %19 : vector<8x1xf32>
    %cst_17 = arith.constant 9.99999974E-6 : f32
    %21 = vector.broadcast %cst_17 : f32 to vector<8x1xf32>
    %22 = arith.addf %20, %21 : vector<8x1xf32>
    %23 = math.rsqrt %22 : vector<8x1xf32>
    %24 = vector.broadcast %23 : vector<8x1xf32> to vector<8x32xf32>
    %25 = arith.mulf %15, %24 : vector<8x32xf32>
    %26 = vector.broadcast %7 : vector<1x32xf32> to vector<8x32xf32>
    %27 = arith.mulf %25, %26 : vector<8x32xf32>
    %28 = vector.broadcast %9 : vector<1x32xf32> to vector<8x32xf32>
    %29 = arith.addf %27, %28 : vector<8x32xf32>
    %c0_18 = arith.constant 0 : index
    %c0_19 = arith.constant 0 : index
    %c0_20 = arith.constant 0 : index
    %30 = vector.load %arg6[%c0_18, %c0_19, %c0_20] : memref<3x1x32xf32, #tpu.memory_space<vmem>>, vector<1x1x32xf32>
    %31 = vector.shape_cast %30 : vector<1x1x32xf32> to vector<1x32xf32>
    %c0_21 = arith.constant 0 : index
    %c0_22 = arith.constant 0 : index
    %c0_23 = arith.constant 0 : index
    %32 = vector.load %arg7[%c0_21, %c0_22, %c0_23] : memref<3x1x32xf32, #tpu.memory_space<vmem>>, vector<1x1x32xf32>
    %33 = vector.shape_cast %32 : vector<1x1x32xf32> to vector<1x32xf32>
    %cst_24 = arith.constant dense<0.000000e+00> : vector<8xf32>
    %34 = vector.multi_reduction <add>, %5, %cst_24 [1] : vector<8x32xf32> to vector<8xf32>
    %35 = vector.shape_cast %34 : vector<8xf32> to vector<8x1xf32>
    %cst_25 = arith.constant 3.200000e+01 : f32
    %36 = vector.broadcast %cst_25 : f32 to vector<8x1xf32>
    %37 = arith.divf %35, %36 : vector<8x1xf32>
    %38 = vector.broadcast %37 : vector<8x1xf32> to vector<8x32xf32>
    %39 = arith.subf %5, %38 : vector<8x32xf32>
    %40 = arith.mulf %39, %39 : vector<8x32xf32>
    %cst_26 = arith.constant dense<0.000000e+00> : vector<8xf32>
    %41 = vector.multi_reduction <add>, %40, %cst_26 [1] : vector<8x32xf32> to vector<8xf32>
    %42 = vector.shape_cast %41 : vector<8xf32> to vector<8x1xf32>
    %cst_27 = arith.constant 3.200000e+01 : f32
    %43 = vector.broadcast %cst_27 : f32 to vector<8x1xf32>
    %44 = arith.divf %42, %43 : vector<8x1xf32>
    %cst_28 = arith.constant 9.99999974E-6 : f32
    %45 = vector.broadcast %cst_28 : f32 to vector<8x1xf32>
    %46 = arith.addf %44, %45 : vector<8x1xf32>
    %47 = math.rsqrt %46 : vector<8x1xf32>
    %48 = vector.broadcast %47 : vector<8x1xf32> to vector<8x32xf32>
    %49 = arith.mulf %39, %48 : vector<8x32xf32>
    %50 = vector.broadcast %31 : vector<1x32xf32> to vector<8x32xf32>
    %51 = arith.mulf %49, %50 : vector<8x32xf32>
    %52 = vector.broadcast %33 : vector<1x32xf32> to vector<8x32xf32>
    %53 = arith.addf %51, %52 : vector<8x32xf32>
    %c0_29 = arith.constant 0 : index
    %c0_30 = arith.constant 0 : index
    %c0_31 = arith.constant 0 : index
    %54 = vector.load %arg8[%c0_29, %c0_30, %c0_31] : memref<3x1x32xf32, #tpu.memory_space<vmem>>, vector<1x1x32xf32>
    %55 = vector.shape_cast %54 : vector<1x1x32xf32> to vector<1x32xf32>
    %c0_32 = arith.constant 0 : index
    %c0_33 = arith.constant 0 : index
    %c0_34 = arith.constant 0 : index
    %56 = vector.load %arg9[%c0_32, %c0_33, %c0_34] : memref<3x1x32xf32, #tpu.memory_space<vmem>>, vector<1x1x32xf32>
    %57 = vector.shape_cast %56 : vector<1x1x32xf32> to vector<1x32xf32>
    %cst_35 = arith.constant dense<0.000000e+00> : vector<8xf32>
    %58 = vector.multi_reduction <add>, %1, %cst_35 [1] : vector<8x32xf32> to vector<8xf32>
    %59 = vector.shape_cast %58 : vector<8xf32> to vector<8x1xf32>
    %cst_36 = arith.constant 3.200000e+01 : f32
    %60 = vector.broadcast %cst_36 : f32 to vector<8x1xf32>
    %61 = arith.divf %59, %60 : vector<8x1xf32>
    %62 = vector.broadcast %61 : vector<8x1xf32> to vector<8x32xf32>
    %63 = arith.subf %1, %62 : vector<8x32xf32>
    %64 = arith.mulf %63, %63 : vector<8x32xf32>
    %cst_37 = arith.constant dense<0.000000e+00> : vector<8xf32>
    %65 = vector.multi_reduction <add>, %64, %cst_37 [1] : vector<8x32xf32> to vector<8xf32>
    %66 = vector.shape_cast %65 : vector<8xf32> to vector<8x1xf32>
    %cst_38 = arith.constant 3.200000e+01 : f32
    %67 = vector.broadcast %cst_38 : f32 to vector<8x1xf32>
    %68 = arith.divf %66, %67 : vector<8x1xf32>
    %cst_39 = arith.constant 9.99999974E-6 : f32
    %69 = vector.broadcast %cst_39 : f32 to vector<8x1xf32>
    %70 = arith.addf %68, %69 : vector<8x1xf32>
    %71 = math.rsqrt %70 : vector<8x1xf32>
    %72 = vector.broadcast %71 : vector<8x1xf32> to vector<8x32xf32>
    %73 = arith.mulf %63, %72 : vector<8x32xf32>
    %74 = vector.broadcast %55 : vector<1x32xf32> to vector<8x32xf32>
    %75 = arith.mulf %73, %74 : vector<8x32xf32>
    %76 = vector.broadcast %57 : vector<1x32xf32> to vector<8x32xf32>
    %77 = arith.addf %75, %76 : vector<8x32xf32>
    %c0_40 = arith.constant 0 : index
    %c0_41 = arith.constant 0 : index
    %c0_42 = arith.constant 0 : index
    %78 = vector.load %arg10[%c0_40, %c0_41, %c0_42] : memref<3x32x32xf32, #tpu.memory_space<vmem>>, vector<1x32x32xf32>
    %79 = vector.shape_cast %78 : vector<1x32x32xf32> to vector<32x32xf32>
    %cst_43 = arith.constant dense<0.000000e+00> : vector<8x32xf32>
    %80 = tpu.matmul %29, %79, %cst_43 {dimension_numbers = #tpu.dot_dimension_numbers<[1], [0], [0], [1], [0, 0, 1, 1], [], []>} : vector<8x32xf32>, vector<32x32xf32>, vector<8x32xf32> -> vector<8x32xf32>
    %c0_44 = arith.constant 0 : index
    %c0_45 = arith.constant 0 : index
    %c0_46 = arith.constant 0 : index
    %81 = vector.load %arg11[%c0_44, %c0_45, %c0_46] : memref<3x32x32xf32, #tpu.memory_space<vmem>>, vector<1x32x32xf32>
    %82 = vector.shape_cast %81 : vector<1x32x32xf32> to vector<32x32xf32>
    %cst_47 = arith.constant dense<0.000000e+00> : vector<8x32xf32>
    %83 = tpu.matmul %53, %82, %cst_47 {dimension_numbers = #tpu.dot_dimension_numbers<[1], [0], [0], [1], [0, 0, 1, 1], [], []>} : vector<8x32xf32>, vector<32x32xf32>, vector<8x32xf32> -> vector<8x32xf32>
    %c0_48 = arith.constant 0 : index
    %c0_49 = arith.constant 0 : index
    %c0_50 = arith.constant 0 : index
    %84 = vector.load %arg12[%c0_48, %c0_49, %c0_50] : memref<3x32x32xf32, #tpu.memory_space<vmem>>, vector<1x32x32xf32>
    %85 = vector.shape_cast %84 : vector<1x32x32xf32> to vector<32x32xf32>
    %cst_51 = arith.constant dense<0.000000e+00> : vector<8x32xf32>
    %86 = tpu.matmul %77, %85, %cst_51 {dimension_numbers = #tpu.dot_dimension_numbers<[1], [0], [0], [1], [0, 0, 1, 1], [], []>} : vector<8x32xf32>, vector<32x32xf32>, vector<8x32xf32> -> vector<8x32xf32>
    %87 = vector.extract_strided_slice %80 {offsets = [0, 0], sizes = [8, 8], strides = [1, 1]} : vector<8x32xf32> to vector<8x8xf32>
    %88 = vector.extract_strided_slice %80 {offsets = [0, 8], sizes = [8, 8], strides = [1, 1]} : vector<8x32xf32> to vector<8x8xf32>
    %89 = vector.extract_strided_slice %80 {offsets = [0, 16], sizes = [8, 8], strides = [1, 1]} : vector<8x32xf32> to vector<8x8xf32>
    %90 = vector.extract_strided_slice %80 {offsets = [0, 24], sizes = [8, 8], strides = [1, 1]} : vector<8x32xf32> to vector<8x8xf32>
    %91 = vector.shape_cast %87 : vector<8x8xf32> to vector<1x8x8xf32>
    %92 = vector.shape_cast %88 : vector<8x8xf32> to vector<1x8x8xf32>
    %93 = vector.shape_cast %89 : vector<8x8xf32> to vector<1x8x8xf32>
    %94 = vector.shape_cast %90 : vector<8x8xf32> to vector<1x8x8xf32>
    %95 = tpu.concatenate %91, %92, %93, %94 in 0 : vector<1x8x8xf32>, vector<1x8x8xf32>, vector<1x8x8xf32>, vector<1x8x8xf32> -> vector<4x8x8xf32>
    %96 = vector.extract_strided_slice %83 {offsets = [0, 0], sizes = [8, 8], strides = [1, 1]} : vector<8x32xf32> to vector<8x8xf32>
    %97 = vector.extract_strided_slice %83 {offsets = [0, 8], sizes = [8, 8], strides = [1, 1]} : vector<8x32xf32> to vector<8x8xf32>
    %98 = vector.extract_strided_slice %83 {offsets = [0, 16], sizes = [8, 8], strides = [1, 1]} : vector<8x32xf32> to vector<8x8xf32>
    %99 = vector.extract_strided_slice %83 {offsets = [0, 24], sizes = [8, 8], strides = [1, 1]} : vector<8x32xf32> to vector<8x8xf32>
    %100 = vector.shape_cast %96 : vector<8x8xf32> to vector<1x8x8xf32>
    %101 = vector.shape_cast %97 : vector<8x8xf32> to vector<1x8x8xf32>
    %102 = vector.shape_cast %98 : vector<8x8xf32> to vector<1x8x8xf32>
    %103 = vector.shape_cast %99 : vector<8x8xf32> to vector<1x8x8xf32>
    %104 = tpu.concatenate %100, %101, %102, %103 in 0 : vector<1x8x8xf32>, vector<1x8x8xf32>, vector<1x8x8xf32>, vector<1x8x8xf32> -> vector<4x8x8xf32>
    %105 = vector.extract_strided_slice %86 {offsets = [0, 0], sizes = [8, 8], strides = [1, 1]} : vector<8x32xf32> to vector<8x8xf32>
    %106 = vector.extract_strided_slice %86 {offsets = [0, 8], sizes = [8, 8], strides = [1, 1]} : vector<8x32xf32> to vector<8x8xf32>
    %107 = vector.extract_strided_slice %86 {offsets = [0, 16], sizes = [8, 8], strides = [1, 1]} : vector<8x32xf32> to vector<8x8xf32>
    %108 = vector.extract_strided_slice %86 {offsets = [0, 24], sizes = [8, 8], strides = [1, 1]} : vector<8x32xf32> to vector<8x8xf32>
    %109 = vector.shape_cast %105 : vector<8x8xf32> to vector<1x8x8xf32>
    %110 = vector.shape_cast %106 : vector<8x8xf32> to vector<1x8x8xf32>
    %111 = vector.shape_cast %107 : vector<8x8xf32> to vector<1x8x8xf32>
    %112 = vector.shape_cast %108 : vector<8x8xf32> to vector<1x8x8xf32>
    %113 = tpu.concatenate %109, %110, %111, %112 in 0 : vector<1x8x8xf32>, vector<1x8x8xf32>, vector<1x8x8xf32>, vector<1x8x8xf32> -> vector<4x8x8xf32>
    "tpu.trace_start"() <{level = 10 : i32, message = "gnd,gmd->gnm"}> : () -> ()
    %cst_52 = arith.constant dense<0.000000e+00> : vector<4x8x8xf32>
    %114 = tpu.matmul %95, %104, %cst_52 {dimension_numbers = #tpu.dot_dimension_numbers<[2], [2], [1], [1], [0, 0, 0, 1, 1, 1], [0], [0]>} : vector<4x8x8xf32>, vector<4x8x8xf32>, vector<4x8x8xf32> -> vector<4x8x8xf32>
    "tpu.trace_stop"() : () -> ()
    %cst_53 = arith.constant 0.353553385 : f32
    %115 = vector.broadcast %cst_53 : f32 to vector<4x8x8xf32>
    %116 = arith.mulf %114, %115 : vector<4x8x8xf32>
    %cst_54 = arith.constant dense<0xFF800000> : vector<4x8xf32>
    %117 = vector.multi_reduction <maximumf>, %116, %cst_54 [2] : vector<4x8x8xf32> to vector<4x8xf32>
    %118 = vector.shape_cast %117 : vector<4x8xf32> to vector<4x8x1xf32>
    %119 = vector.broadcast %118 : vector<4x8x1xf32> to vector<4x8x8xf32>
    %120 = arith.subf %116, %119 : vector<4x8x8xf32>
    %121 = math.exp %120 : vector<4x8x8xf32>
    %cst_55 = arith.constant dense<0.000000e+00> : vector<4x8xf32>
    %122 = vector.multi_reduction <add>, %121, %cst_55 [2] : vector<4x8x8xf32> to vector<4x8xf32>
    %123 = vector.shape_cast %122 : vector<4x8xf32> to vector<4x8x1xf32>
    %124 = tpu.reciprocal %123 {approx = true} : vector<4x8x1xf32> -> vector<4x8x1xf32>
    %125 = vector.broadcast %124 : vector<4x8x1xf32> to vector<4x8x8xf32>
    %126 = arith.mulf %121, %125 : vector<4x8x8xf32>
    "tpu.trace_start"() <{level = 10 : i32, message = "gnm,gmd->gnd"}> : () -> ()
    %cst_56 = arith.constant dense<0.000000e+00> : vector<4x8x8xf32>
    %127 = tpu.matmul %126, %113, %cst_56 {dimension_numbers = #tpu.dot_dimension_numbers<[2], [1], [1], [2], [0, 0, 0, 1, 1, 2], [0], [0]>} : vector<4x8x8xf32>, vector<4x8x8xf32>, vector<4x8x8xf32> -> vector<4x8x8xf32>
    "tpu.trace_stop"() : () -> ()
    %128 = vector.extract_strided_slice %127 {offsets = [0, 0, 0], sizes = [1, 8, 8], strides = [1, 1, 1]} : vector<4x8x8xf32> to vector<1x8x8xf32>
    %129 = vector.shape_cast %128 : vector<1x8x8xf32> to vector<8x8xf32>
    %130 = vector.extract_strided_slice %127 {offsets = [1, 0, 0], sizes = [1, 8, 8], strides = [1, 1, 1]} : vector<4x8x8xf32> to vector<1x8x8xf32>
    %131 = vector.shape_cast %130 : vector<1x8x8xf32> to vector<8x8xf32>
    %132 = vector.extract_strided_slice %127 {offsets = [2, 0, 0], sizes = [1, 8, 8], strides = [1, 1, 1]} : vector<4x8x8xf32> to vector<1x8x8xf32>
    %133 = vector.shape_cast %132 : vector<1x8x8xf32> to vector<8x8xf32>
    %134 = vector.extract_strided_slice %127 {offsets = [3, 0, 0], sizes = [1, 8, 8], strides = [1, 1, 1]} : vector<4x8x8xf32> to vector<1x8x8xf32>
    %135 = vector.shape_cast %134 : vector<1x8x8xf32> to vector<8x8xf32>
    %136 = tpu.concatenate %129, %131, %133, %135 in 1 : vector<8x8xf32>, vector<8x8xf32>, vector<8x8xf32>, vector<8x8xf32> -> vector<8x32xf32>
    %c0_57 = arith.constant 0 : index
    %c0_58 = arith.constant 0 : index
    %c0_59 = arith.constant 0 : index
    %137 = vector.load %arg13[%c0_57, %c0_58, %c0_59] : memref<3x32x32xf32, #tpu.memory_space<vmem>>, vector<1x32x32xf32>
    %138 = vector.shape_cast %137 : vector<1x32x32xf32> to vector<32x32xf32>
    %cst_60 = arith.constant dense<0.000000e+00> : vector<8x32xf32>
    %139 = tpu.matmul %136, %138, %cst_60 {dimension_numbers = #tpu.dot_dimension_numbers<[1], [0], [0], [1], [0, 0, 1, 1], [], []>} : vector<8x32xf32>, vector<32x32xf32>, vector<8x32xf32> -> vector<8x32xf32>
    %c0_61 = arith.constant 0 : index
    %c0_62 = arith.constant 0 : index
    %c0_63 = arith.constant 0 : index
    %140 = vector.load %arg14[%c0_61, %c0_62, %c0_63] : memref<3x1x32xf32, #tpu.memory_space<vmem>>, vector<1x1x32xf32>
    %141 = vector.shape_cast %140 : vector<1x1x32xf32> to vector<1x32xf32>
    %142 = vector.broadcast %141 : vector<1x32xf32> to vector<8x32xf32>
    %143 = arith.addf %139, %142 : vector<8x32xf32>
    %144 = arith.addf %1, %143 : vector<8x32xf32>
    %c1 = arith.constant 1 : index
    %c0_64 = arith.constant 0 : index
    %c0_65 = arith.constant 0 : index
    %145 = vector.load %arg4[%c1, %c0_64, %c0_65] : memref<3x1x32xf32, #tpu.memory_space<vmem>>, vector<1x1x32xf32>
    %146 = vector.shape_cast %145 : vector<1x1x32xf32> to vector<1x32xf32>
    %c1_66 = arith.constant 1 : index
    %c0_67 = arith.constant 0 : index
    %c0_68 = arith.constant 0 : index
    %147 = vector.load %arg5[%c1_66, %c0_67, %c0_68] : memref<3x1x32xf32, #tpu.memory_space<vmem>>, vector<1x1x32xf32>
    %148 = vector.shape_cast %147 : vector<1x1x32xf32> to vector<1x32xf32>
    %cst_69 = arith.constant dense<0.000000e+00> : vector<8xf32>
    %149 = vector.multi_reduction <add>, %144, %cst_69 [1] : vector<8x32xf32> to vector<8xf32>
    %150 = vector.shape_cast %149 : vector<8xf32> to vector<8x1xf32>
    %cst_70 = arith.constant 3.200000e+01 : f32
    %151 = vector.broadcast %cst_70 : f32 to vector<8x1xf32>
    %152 = arith.divf %150, %151 : vector<8x1xf32>
    %153 = vector.broadcast %152 : vector<8x1xf32> to vector<8x32xf32>
    %154 = arith.subf %144, %153 : vector<8x32xf32>
    %155 = arith.mulf %154, %154 : vector<8x32xf32>
    %cst_71 = arith.constant dense<0.000000e+00> : vector<8xf32>
    %156 = vector.multi_reduction <add>, %155, %cst_71 [1] : vector<8x32xf32> to vector<8xf32>
    %157 = vector.shape_cast %156 : vector<8xf32> to vector<8x1xf32>
    %cst_72 = arith.constant 3.200000e+01 : f32
    %158 = vector.broadcast %cst_72 : f32 to vector<8x1xf32>
    %159 = arith.divf %157, %158 : vector<8x1xf32>
    %cst_73 = arith.constant 9.99999974E-6 : f32
    %160 = vector.broadcast %cst_73 : f32 to vector<8x1xf32>
    %161 = arith.addf %159, %160 : vector<8x1xf32>
    %162 = math.rsqrt %161 : vector<8x1xf32>
    %163 = vector.broadcast %162 : vector<8x1xf32> to vector<8x32xf32>
    %164 = arith.mulf %154, %163 : vector<8x32xf32>
    %165 = vector.broadcast %146 : vector<1x32xf32> to vector<8x32xf32>
    %166 = arith.mulf %164, %165 : vector<8x32xf32>
    %167 = vector.broadcast %148 : vector<1x32xf32> to vector<8x32xf32>
    %168 = arith.addf %166, %167 : vector<8x32xf32>
    %c1_74 = arith.constant 1 : index
    %c0_75 = arith.constant 0 : index
    %c0_76 = arith.constant 0 : index
    %169 = vector.load %arg6[%c1_74, %c0_75, %c0_76] : memref<3x1x32xf32, #tpu.memory_space<vmem>>, vector<1x1x32xf32>
    %170 = vector.shape_cast %169 : vector<1x1x32xf32> to vector<1x32xf32>
    %c1_77 = arith.constant 1 : index
    %c0_78 = arith.constant 0 : index
    %c0_79 = arith.constant 0 : index
    %171 = vector.load %arg7[%c1_77, %c0_78, %c0_79] : memref<3x1x32xf32, #tpu.memory_space<vmem>>, vector<1x1x32xf32>
    %172 = vector.shape_cast %171 : vector<1x1x32xf32> to vector<1x32xf32>
    %cst_80 = arith.constant dense<0.000000e+00> : vector<8xf32>
    %173 = vector.multi_reduction <add>, %5, %cst_80 [1] : vector<8x32xf32> to vector<8xf32>
    %174 = vector.shape_cast %173 : vector<8xf32> to vector<8x1xf32>
    %cst_81 = arith.constant 3.200000e+01 : f32
    %175 = vector.broadcast %cst_81 : f32 to vector<8x1xf32>
    %176 = arith.divf %174, %175 : vector<8x1xf32>
    %177 = vector.broadcast %176 : vector<8x1xf32> to vector<8x32xf32>
    %178 = arith.subf %5, %177 : vector<8x32xf32>
    %179 = arith.mulf %178, %178 : vector<8x32xf32>
    %cst_82 = arith.constant dense<0.000000e+00> : vector<8xf32>
    %180 = vector.multi_reduction <add>, %179, %cst_82 [1] : vector<8x32xf32> to vector<8xf32>
    %181 = vector.shape_cast %180 : vector<8xf32> to vector<8x1xf32>
    %cst_83 = arith.constant 3.200000e+01 : f32
    %182 = vector.broadcast %cst_83 : f32 to vector<8x1xf32>
    %183 = arith.divf %181, %182 : vector<8x1xf32>
    %cst_84 = arith.constant 9.99999974E-6 : f32
    %184 = vector.broadcast %cst_84 : f32 to vector<8x1xf32>
    %185 = arith.addf %183, %184 : vector<8x1xf32>
    %186 = math.rsqrt %185 : vector<8x1xf32>
    %187 = vector.broadcast %186 : vector<8x1xf32> to vector<8x32xf32>
    %188 = arith.mulf %178, %187 : vector<8x32xf32>
    %189 = vector.broadcast %170 : vector<1x32xf32> to vector<8x32xf32>
    %190 = arith.mulf %188, %189 : vector<8x32xf32>
    %191 = vector.broadcast %172 : vector<1x32xf32> to vector<8x32xf32>
    %192 = arith.addf %190, %191 : vector<8x32xf32>
    %c1_85 = arith.constant 1 : index
    %c0_86 = arith.constant 0 : index
    %c0_87 = arith.constant 0 : index
    %193 = vector.load %arg8[%c1_85, %c0_86, %c0_87] : memref<3x1x32xf32, #tpu.memory_space<vmem>>, vector<1x1x32xf32>
    %194 = vector.shape_cast %193 : vector<1x1x32xf32> to vector<1x32xf32>
    %c1_88 = arith.constant 1 : index
    %c0_89 = arith.constant 0 : index
    %c0_90 = arith.constant 0 : index
    %195 = vector.load %arg9[%c1_88, %c0_89, %c0_90] : memref<3x1x32xf32, #tpu.memory_space<vmem>>, vector<1x1x32xf32>
    %196 = vector.shape_cast %195 : vector<1x1x32xf32> to vector<1x32xf32>
    %cst_91 = arith.constant dense<0.000000e+00> : vector<8xf32>
    %197 = vector.multi_reduction <add>, %3, %cst_91 [1] : vector<8x32xf32> to vector<8xf32>
    %198 = vector.shape_cast %197 : vector<8xf32> to vector<8x1xf32>
    %cst_92 = arith.constant 3.200000e+01 : f32
    %199 = vector.broadcast %cst_92 : f32 to vector<8x1xf32>
    %200 = arith.divf %198, %199 : vector<8x1xf32>
    %201 = vector.broadcast %200 : vector<8x1xf32> to vector<8x32xf32>
    %202 = arith.subf %3, %201 : vector<8x32xf32>
    %203 = arith.mulf %202, %202 : vector<8x32xf32>
    %cst_93 = arith.constant dense<0.000000e+00> : vector<8xf32>
    %204 = vector.multi_reduction <add>, %203, %cst_93 [1] : vector<8x32xf32> to vector<8xf32>
    %205 = vector.shape_cast %204 : vector<8xf32> to vector<8x1xf32>
    %cst_94 = arith.constant 3.200000e+01 : f32
    %206 = vector.broadcast %cst_94 : f32 to vector<8x1xf32>
    %207 = arith.divf %205, %206 : vector<8x1xf32>
    %cst_95 = arith.constant 9.99999974E-6 : f32
    %208 = vector.broadcast %cst_95 : f32 to vector<8x1xf32>
    %209 = arith.addf %207, %208 : vector<8x1xf32>
    %210 = math.rsqrt %209 : vector<8x1xf32>
    %211 = vector.broadcast %210 : vector<8x1xf32> to vector<8x32xf32>
    %212 = arith.mulf %202, %211 : vector<8x32xf32>
    %213 = vector.broadcast %194 : vector<1x32xf32> to vector<8x32xf32>
    %214 = arith.mulf %212, %213 : vector<8x32xf32>
    %215 = vector.broadcast %196 : vector<1x32xf32> to vector<8x32xf32>
    %216 = arith.addf %214, %215 : vector<8x32xf32>
    %c1_96 = arith.constant 1 : index
    %c0_97 = arith.constant 0 : index
    %c0_98 = arith.constant 0 : index
    %217 = vector.load %arg10[%c1_96, %c0_97, %c0_98] : memref<3x32x32xf32, #tpu.memory_space<vmem>>, vector<1x32x32xf32>
    %218 = vector.shape_cast %217 : vector<1x32x32xf32> to vector<32x32xf32>
    %cst_99 = arith.constant dense<0.000000e+00> : vector<8x32xf32>
    %219 = tpu.matmul %168, %218, %cst_99 {dimension_numbers = #tpu.dot_dimension_numbers<[1], [0], [0], [1], [0, 0, 1, 1], [], []>} : vector<8x32xf32>, vector<32x32xf32>, vector<8x32xf32> -> vector<8x32xf32>
    %c1_100 = arith.constant 1 : index
    %c0_101 = arith.constant 0 : index
    %c0_102 = arith.constant 0 : index
    %220 = vector.load %arg11[%c1_100, %c0_101, %c0_102] : memref<3x32x32xf32, #tpu.memory_space<vmem>>, vector<1x32x32xf32>
    %221 = vector.shape_cast %220 : vector<1x32x32xf32> to vector<32x32xf32>
    %cst_103 = arith.constant dense<0.000000e+00> : vector<8x32xf32>
    %222 = tpu.matmul %192, %221, %cst_103 {dimension_numbers = #tpu.dot_dimension_numbers<[1], [0], [0], [1], [0, 0, 1, 1], [], []>} : vector<8x32xf32>, vector<32x32xf32>, vector<8x32xf32> -> vector<8x32xf32>
    %c1_104 = arith.constant 1 : index
    %c0_105 = arith.constant 0 : index
    %c0_106 = arith.constant 0 : index
    %223 = vector.load %arg12[%c1_104, %c0_105, %c0_106] : memref<3x32x32xf32, #tpu.memory_space<vmem>>, vector<1x32x32xf32>
    %224 = vector.shape_cast %223 : vector<1x32x32xf32> to vector<32x32xf32>
    %cst_107 = arith.constant dense<0.000000e+00> : vector<8x32xf32>
    %225 = tpu.matmul %216, %224, %cst_107 {dimension_numbers = #tpu.dot_dimension_numbers<[1], [0], [0], [1], [0, 0, 1, 1], [], []>} : vector<8x32xf32>, vector<32x32xf32>, vector<8x32xf32> -> vector<8x32xf32>
    %226 = vector.extract_strided_slice %219 {offsets = [0, 0], sizes = [8, 8], strides = [1, 1]} : vector<8x32xf32> to vector<8x8xf32>
    %227 = vector.extract_strided_slice %219 {offsets = [0, 8], sizes = [8, 8], strides = [1, 1]} : vector<8x32xf32> to vector<8x8xf32>
    %228 = vector.extract_strided_slice %219 {offsets = [0, 16], sizes = [8, 8], strides = [1, 1]} : vector<8x32xf32> to vector<8x8xf32>
    %229 = vector.extract_strided_slice %219 {offsets = [0, 24], sizes = [8, 8], strides = [1, 1]} : vector<8x32xf32> to vector<8x8xf32>
    %230 = vector.shape_cast %226 : vector<8x8xf32> to vector<1x8x8xf32>
    %231 = vector.shape_cast %227 : vector<8x8xf32> to vector<1x8x8xf32>
    %232 = vector.shape_cast %228 : vector<8x8xf32> to vector<1x8x8xf32>
    %233 = vector.shape_cast %229 : vector<8x8xf32> to vector<1x8x8xf32>
    %234 = tpu.concatenate %230, %231, %232, %233 in 0 : vector<1x8x8xf32>, vector<1x8x8xf32>, vector<1x8x8xf32>, vector<1x8x8xf32> -> vector<4x8x8xf32>
    %235 = vector.extract_strided_slice %222 {offsets = [0, 0], sizes = [8, 8], strides = [1, 1]} : vector<8x32xf32> to vector<8x8xf32>
    %236 = vector.extract_strided_slice %222 {offsets = [0, 8], sizes = [8, 8], strides = [1, 1]} : vector<8x32xf32> to vector<8x8xf32>
    %237 = vector.extract_strided_slice %222 {offsets = [0, 16], sizes = [8, 8], strides = [1, 1]} : vector<8x32xf32> to vector<8x8xf32>
    %238 = vector.extract_strided_slice %222 {offsets = [0, 24], sizes = [8, 8], strides = [1, 1]} : vector<8x32xf32> to vector<8x8xf32>
    %239 = vector.shape_cast %235 : vector<8x8xf32> to vector<1x8x8xf32>
    %240 = vector.shape_cast %236 : vector<8x8xf32> to vector<1x8x8xf32>
    %241 = vector.shape_cast %237 : vector<8x8xf32> to vector<1x8x8xf32>
    %242 = vector.shape_cast %238 : vector<8x8xf32> to vector<1x8x8xf32>
    %243 = tpu.concatenate %239, %240, %241, %242 in 0 : vector<1x8x8xf32>, vector<1x8x8xf32>, vector<1x8x8xf32>, vector<1x8x8xf32> -> vector<4x8x8xf32>
    %244 = vector.extract_strided_slice %225 {offsets = [0, 0], sizes = [8, 8], strides = [1, 1]} : vector<8x32xf32> to vector<8x8xf32>
    %245 = vector.extract_strided_slice %225 {offsets = [0, 8], sizes = [8, 8], strides = [1, 1]} : vector<8x32xf32> to vector<8x8xf32>
    %246 = vector.extract_strided_slice %225 {offsets = [0, 16], sizes = [8, 8], strides = [1, 1]} : vector<8x32xf32> to vector<8x8xf32>
    %247 = vector.extract_strided_slice %225 {offsets = [0, 24], sizes = [8, 8], strides = [1, 1]} : vector<8x32xf32> to vector<8x8xf32>
    %248 = vector.shape_cast %244 : vector<8x8xf32> to vector<1x8x8xf32>
    %249 = vector.shape_cast %245 : vector<8x8xf32> to vector<1x8x8xf32>
    %250 = vector.shape_cast %246 : vector<8x8xf32> to vector<1x8x8xf32>
    %251 = vector.shape_cast %247 : vector<8x8xf32> to vector<1x8x8xf32>
    %252 = tpu.concatenate %248, %249, %250, %251 in 0 : vector<1x8x8xf32>, vector<1x8x8xf32>, vector<1x8x8xf32>, vector<1x8x8xf32> -> vector<4x8x8xf32>
    "tpu.trace_start"() <{level = 10 : i32, message = "gnd,gmd->gnm"}> : () -> ()
    %cst_108 = arith.constant dense<0.000000e+00> : vector<4x8x8xf32>
    %253 = tpu.matmul %234, %243, %cst_108 {dimension_numbers = #tpu.dot_dimension_numbers<[2], [2], [1], [1], [0, 0, 0, 1, 1, 1], [0], [0]>} : vector<4x8x8xf32>, vector<4x8x8xf32>, vector<4x8x8xf32> -> vector<4x8x8xf32>
    "tpu.trace_stop"() : () -> ()
    %cst_109 = arith.constant 0.353553385 : f32
    %254 = vector.broadcast %cst_109 : f32 to vector<4x8x8xf32>
    %255 = arith.mulf %253, %254 : vector<4x8x8xf32>
    %cst_110 = arith.constant dense<0xFF800000> : vector<4x8xf32>
    %256 = vector.multi_reduction <maximumf>, %255, %cst_110 [2] : vector<4x8x8xf32> to vector<4x8xf32>
    %257 = vector.shape_cast %256 : vector<4x8xf32> to vector<4x8x1xf32>
    %258 = vector.broadcast %257 : vector<4x8x1xf32> to vector<4x8x8xf32>
    %259 = arith.subf %255, %258 : vector<4x8x8xf32>
    %260 = math.exp %259 : vector<4x8x8xf32>
    %cst_111 = arith.constant dense<0.000000e+00> : vector<4x8xf32>
    %261 = vector.multi_reduction <add>, %260, %cst_111 [2] : vector<4x8x8xf32> to vector<4x8xf32>
    %262 = vector.shape_cast %261 : vector<4x8xf32> to vector<4x8x1xf32>
    %263 = tpu.reciprocal %262 {approx = true} : vector<4x8x1xf32> -> vector<4x8x1xf32>
    %264 = vector.broadcast %263 : vector<4x8x1xf32> to vector<4x8x8xf32>
    %265 = arith.mulf %260, %264 : vector<4x8x8xf32>
    "tpu.trace_start"() <{level = 10 : i32, message = "gnm,gmd->gnd"}> : () -> ()
    %cst_112 = arith.constant dense<0.000000e+00> : vector<4x8x8xf32>
    %266 = tpu.matmul %265, %252, %cst_112 {dimension_numbers = #tpu.dot_dimension_numbers<[2], [1], [1], [2], [0, 0, 0, 1, 1, 2], [0], [0]>} : vector<4x8x8xf32>, vector<4x8x8xf32>, vector<4x8x8xf32> -> vector<4x8x8xf32>
    "tpu.trace_stop"() : () -> ()
    %267 = vector.extract_strided_slice %266 {offsets = [0, 0, 0], sizes = [1, 8, 8], strides = [1, 1, 1]} : vector<4x8x8xf32> to vector<1x8x8xf32>
    %268 = vector.shape_cast %267 : vector<1x8x8xf32> to vector<8x8xf32>
    %269 = vector.extract_strided_slice %266 {offsets = [1, 0, 0], sizes = [1, 8, 8], strides = [1, 1, 1]} : vector<4x8x8xf32> to vector<1x8x8xf32>
    %270 = vector.shape_cast %269 : vector<1x8x8xf32> to vector<8x8xf32>
    %271 = vector.extract_strided_slice %266 {offsets = [2, 0, 0], sizes = [1, 8, 8], strides = [1, 1, 1]} : vector<4x8x8xf32> to vector<1x8x8xf32>
    %272 = vector.shape_cast %271 : vector<1x8x8xf32> to vector<8x8xf32>
    %273 = vector.extract_strided_slice %266 {offsets = [3, 0, 0], sizes = [1, 8, 8], strides = [1, 1, 1]} : vector<4x8x8xf32> to vector<1x8x8xf32>
    %274 = vector.shape_cast %273 : vector<1x8x8xf32> to vector<8x8xf32>
    %275 = tpu.concatenate %268, %270, %272, %274 in 1 : vector<8x8xf32>, vector<8x8xf32>, vector<8x8xf32>, vector<8x8xf32> -> vector<8x32xf32>
    %c1_113 = arith.constant 1 : index
    %c0_114 = arith.constant 0 : index
    %c0_115 = arith.constant 0 : index
    %276 = vector.load %arg13[%c1_113, %c0_114, %c0_115] : memref<3x32x32xf32, #tpu.memory_space<vmem>>, vector<1x32x32xf32>
    %277 = vector.shape_cast %276 : vector<1x32x32xf32> to vector<32x32xf32>
    %cst_116 = arith.constant dense<0.000000e+00> : vector<8x32xf32>
    %278 = tpu.matmul %275, %277, %cst_116 {dimension_numbers = #tpu.dot_dimension_numbers<[1], [0], [0], [1], [0, 0, 1, 1], [], []>} : vector<8x32xf32>, vector<32x32xf32>, vector<8x32xf32> -> vector<8x32xf32>
    %c1_117 = arith.constant 1 : index
    %c0_118 = arith.constant 0 : index
    %c0_119 = arith.constant 0 : index
    %279 = vector.load %arg14[%c1_117, %c0_118, %c0_119] : memref<3x1x32xf32, #tpu.memory_space<vmem>>, vector<1x1x32xf32>
    %280 = vector.shape_cast %279 : vector<1x1x32xf32> to vector<1x32xf32>
    %281 = vector.broadcast %280 : vector<1x32xf32> to vector<8x32xf32>
    %282 = arith.addf %278, %281 : vector<8x32xf32>
    %283 = arith.addf %3, %282 : vector<8x32xf32>
    %c2 = arith.constant 2 : index
    %c0_120 = arith.constant 0 : index
    %c0_121 = arith.constant 0 : index
    %284 = vector.load %arg4[%c2, %c0_120, %c0_121] : memref<3x1x32xf32, #tpu.memory_space<vmem>>, vector<1x1x32xf32>
    %285 = vector.shape_cast %284 : vector<1x1x32xf32> to vector<1x32xf32>
    %c2_122 = arith.constant 2 : index
    %c0_123 = arith.constant 0 : index
    %c0_124 = arith.constant 0 : index
    %286 = vector.load %arg5[%c2_122, %c0_123, %c0_124] : memref<3x1x32xf32, #tpu.memory_space<vmem>>, vector<1x1x32xf32>
    %287 = vector.shape_cast %286 : vector<1x1x32xf32> to vector<1x32xf32>
    %cst_125 = arith.constant dense<0.000000e+00> : vector<8xf32>
    %288 = vector.multi_reduction <add>, %144, %cst_125 [1] : vector<8x32xf32> to vector<8xf32>
    %289 = vector.shape_cast %288 : vector<8xf32> to vector<8x1xf32>
    %cst_126 = arith.constant 3.200000e+01 : f32
    %290 = vector.broadcast %cst_126 : f32 to vector<8x1xf32>
    %291 = arith.divf %289, %290 : vector<8x1xf32>
    %292 = vector.broadcast %291 : vector<8x1xf32> to vector<8x32xf32>
    %293 = arith.subf %144, %292 : vector<8x32xf32>
    %294 = arith.mulf %293, %293 : vector<8x32xf32>
    %cst_127 = arith.constant dense<0.000000e+00> : vector<8xf32>
    %295 = vector.multi_reduction <add>, %294, %cst_127 [1] : vector<8x32xf32> to vector<8xf32>
    %296 = vector.shape_cast %295 : vector<8xf32> to vector<8x1xf32>
    %cst_128 = arith.constant 3.200000e+01 : f32
    %297 = vector.broadcast %cst_128 : f32 to vector<8x1xf32>
    %298 = arith.divf %296, %297 : vector<8x1xf32>
    %cst_129 = arith.constant 9.99999974E-6 : f32
    %299 = vector.broadcast %cst_129 : f32 to vector<8x1xf32>
    %300 = arith.addf %298, %299 : vector<8x1xf32>
    %301 = math.rsqrt %300 : vector<8x1xf32>
    %302 = vector.broadcast %301 : vector<8x1xf32> to vector<8x32xf32>
    %303 = arith.mulf %293, %302 : vector<8x32xf32>
    %304 = vector.broadcast %285 : vector<1x32xf32> to vector<8x32xf32>
    %305 = arith.mulf %303, %304 : vector<8x32xf32>
    %306 = vector.broadcast %287 : vector<1x32xf32> to vector<8x32xf32>
    %307 = arith.addf %305, %306 : vector<8x32xf32>
    %c2_130 = arith.constant 2 : index
    %c0_131 = arith.constant 0 : index
    %c0_132 = arith.constant 0 : index
    %308 = vector.load %arg6[%c2_130, %c0_131, %c0_132] : memref<3x1x32xf32, #tpu.memory_space<vmem>>, vector<1x1x32xf32>
    %309 = vector.shape_cast %308 : vector<1x1x32xf32> to vector<1x32xf32>
    %c2_133 = arith.constant 2 : index
    %c0_134 = arith.constant 0 : index
    %c0_135 = arith.constant 0 : index
    %310 = vector.load %arg7[%c2_133, %c0_134, %c0_135] : memref<3x1x32xf32, #tpu.memory_space<vmem>>, vector<1x1x32xf32>
    %311 = vector.shape_cast %310 : vector<1x1x32xf32> to vector<1x32xf32>
    %cst_136 = arith.constant dense<0.000000e+00> : vector<8xf32>
    %312 = vector.multi_reduction <add>, %283, %cst_136 [1] : vector<8x32xf32> to vector<8xf32>
    %313 = vector.shape_cast %312 : vector<8xf32> to vector<8x1xf32>
    %cst_137 = arith.constant 3.200000e+01 : f32
    %314 = vector.broadcast %cst_137 : f32 to vector<8x1xf32>
    %315 = arith.divf %313, %314 : vector<8x1xf32>
    %316 = vector.broadcast %315 : vector<8x1xf32> to vector<8x32xf32>
    %317 = arith.subf %283, %316 : vector<8x32xf32>
    %318 = arith.mulf %317, %317 : vector<8x32xf32>
    %cst_138 = arith.constant dense<0.000000e+00> : vector<8xf32>
    %319 = vector.multi_reduction <add>, %318, %cst_138 [1] : vector<8x32xf32> to vector<8xf32>
    %320 = vector.shape_cast %319 : vector<8xf32> to vector<8x1xf32>
    %cst_139 = arith.constant 3.200000e+01 : f32
    %321 = vector.broadcast %cst_139 : f32 to vector<8x1xf32>
    %322 = arith.divf %320, %321 : vector<8x1xf32>
    %cst_140 = arith.constant 9.99999974E-6 : f32
    %323 = vector.broadcast %cst_140 : f32 to vector<8x1xf32>
    %324 = arith.addf %322, %323 : vector<8x1xf32>
    %325 = math.rsqrt %324 : vector<8x1xf32>
    %326 = vector.broadcast %325 : vector<8x1xf32> to vector<8x32xf32>
    %327 = arith.mulf %317, %326 : vector<8x32xf32>
    %328 = vector.broadcast %309 : vector<1x32xf32> to vector<8x32xf32>
    %329 = arith.mulf %327, %328 : vector<8x32xf32>
    %330 = vector.broadcast %311 : vector<1x32xf32> to vector<8x32xf32>
    %331 = arith.addf %329, %330 : vector<8x32xf32>
    %c2_141 = arith.constant 2 : index
    %c0_142 = arith.constant 0 : index
    %c0_143 = arith.constant 0 : index
    %332 = vector.load %arg8[%c2_141, %c0_142, %c0_143] : memref<3x1x32xf32, #tpu.memory_space<vmem>>, vector<1x1x32xf32>
    %333 = vector.shape_cast %332 : vector<1x1x32xf32> to vector<1x32xf32>
    %c2_144 = arith.constant 2 : index
    %c0_145 = arith.constant 0 : index
    %c0_146 = arith.constant 0 : index
    %334 = vector.load %arg9[%c2_144, %c0_145, %c0_146] : memref<3x1x32xf32, #tpu.memory_space<vmem>>, vector<1x1x32xf32>
    %335 = vector.shape_cast %334 : vector<1x1x32xf32> to vector<1x32xf32>
    %cst_147 = arith.constant dense<0.000000e+00> : vector<8xf32>
    %336 = vector.multi_reduction <add>, %5, %cst_147 [1] : vector<8x32xf32> to vector<8xf32>
    %337 = vector.shape_cast %336 : vector<8xf32> to vector<8x1xf32>
    %cst_148 = arith.constant 3.200000e+01 : f32
    %338 = vector.broadcast %cst_148 : f32 to vector<8x1xf32>
    %339 = arith.divf %337, %338 : vector<8x1xf32>
    %340 = vector.broadcast %339 : vector<8x1xf32> to vector<8x32xf32>
    %341 = arith.subf %5, %340 : vector<8x32xf32>
    %342 = arith.mulf %341, %341 : vector<8x32xf32>
    %cst_149 = arith.constant dense<0.000000e+00> : vector<8xf32>
    %343 = vector.multi_reduction <add>, %342, %cst_149 [1] : vector<8x32xf32> to vector<8xf32>
    %344 = vector.shape_cast %343 : vector<8xf32> to vector<8x1xf32>
    %cst_150 = arith.constant 3.200000e+01 : f32
    %345 = vector.broadcast %cst_150 : f32 to vector<8x1xf32>
    %346 = arith.divf %344, %345 : vector<8x1xf32>
    %cst_151 = arith.constant 9.99999974E-6 : f32
    %347 = vector.broadcast %cst_151 : f32 to vector<8x1xf32>
    %348 = arith.addf %346, %347 : vector<8x1xf32>
    %349 = math.rsqrt %348 : vector<8x1xf32>
    %350 = vector.broadcast %349 : vector<8x1xf32> to vector<8x32xf32>
    %351 = arith.mulf %341, %350 : vector<8x32xf32>
    %352 = vector.broadcast %333 : vector<1x32xf32> to vector<8x32xf32>
    %353 = arith.mulf %351, %352 : vector<8x32xf32>
    %354 = vector.broadcast %335 : vector<1x32xf32> to vector<8x32xf32>
    %355 = arith.addf %353, %354 : vector<8x32xf32>
    %c2_152 = arith.constant 2 : index
    %c0_153 = arith.constant 0 : index
    %c0_154 = arith.constant 0 : index
    %356 = vector.load %arg10[%c2_152, %c0_153, %c0_154] : memref<3x32x32xf32, #tpu.memory_space<vmem>>, vector<1x32x32xf32>
    %357 = vector.shape_cast %356 : vector<1x32x32xf32> to vector<32x32xf32>
    %cst_155 = arith.constant dense<0.000000e+00> : vector<8x32xf32>
    %358 = tpu.matmul %307, %357, %cst_155 {dimension_numbers = #tpu.dot_dimension_numbers<[1], [0], [0], [1], [0, 0, 1, 1], [], []>} : vector<8x32xf32>, vector<32x32xf32>, vector<8x32xf32> -> vector<8x32xf32>
    %c2_156 = arith.constant 2 : index
    %c0_157 = arith.constant 0 : index
    %c0_158 = arith.constant 0 : index
    %359 = vector.load %arg11[%c2_156, %c0_157, %c0_158] : memref<3x32x32xf32, #tpu.memory_space<vmem>>, vector<1x32x32xf32>
    %360 = vector.shape_cast %359 : vector<1x32x32xf32> to vector<32x32xf32>
    %cst_159 = arith.constant dense<0.000000e+00> : vector<8x32xf32>
    %361 = tpu.matmul %331, %360, %cst_159 {dimension_numbers = #tpu.dot_dimension_numbers<[1], [0], [0], [1], [0, 0, 1, 1], [], []>} : vector<8x32xf32>, vector<32x32xf32>, vector<8x32xf32> -> vector<8x32xf32>
    %c2_160 = arith.constant 2 : index
    %c0_161 = arith.constant 0 : index
    %c0_162 = arith.constant 0 : index
    %362 = vector.load %arg12[%c2_160, %c0_161, %c0_162] : memref<3x32x32xf32, #tpu.memory_space<vmem>>, vector<1x32x32xf32>
    %363 = vector.shape_cast %362 : vector<1x32x32xf32> to vector<32x32xf32>
    %cst_163 = arith.constant dense<0.000000e+00> : vector<8x32xf32>
    %364 = tpu.matmul %355, %363, %cst_163 {dimension_numbers = #tpu.dot_dimension_numbers<[1], [0], [0], [1], [0, 0, 1, 1], [], []>} : vector<8x32xf32>, vector<32x32xf32>, vector<8x32xf32> -> vector<8x32xf32>
    %365 = vector.extract_strided_slice %358 {offsets = [0, 0], sizes = [8, 8], strides = [1, 1]} : vector<8x32xf32> to vector<8x8xf32>
    %366 = vector.extract_strided_slice %358 {offsets = [0, 8], sizes = [8, 8], strides = [1, 1]} : vector<8x32xf32> to vector<8x8xf32>
    %367 = vector.extract_strided_slice %358 {offsets = [0, 16], sizes = [8, 8], strides = [1, 1]} : vector<8x32xf32> to vector<8x8xf32>
    %368 = vector.extract_strided_slice %358 {offsets = [0, 24], sizes = [8, 8], strides = [1, 1]} : vector<8x32xf32> to vector<8x8xf32>
    %369 = vector.shape_cast %365 : vector<8x8xf32> to vector<1x8x8xf32>
    %370 = vector.shape_cast %366 : vector<8x8xf32> to vector<1x8x8xf32>
    %371 = vector.shape_cast %367 : vector<8x8xf32> to vector<1x8x8xf32>
    %372 = vector.shape_cast %368 : vector<8x8xf32> to vector<1x8x8xf32>
    %373 = tpu.concatenate %369, %370, %371, %372 in 0 : vector<1x8x8xf32>, vector<1x8x8xf32>, vector<1x8x8xf32>, vector<1x8x8xf32> -> vector<4x8x8xf32>
    %374 = vector.extract_strided_slice %361 {offsets = [0, 0], sizes = [8, 8], strides = [1, 1]} : vector<8x32xf32> to vector<8x8xf32>
    %375 = vector.extract_strided_slice %361 {offsets = [0, 8], sizes = [8, 8], strides = [1, 1]} : vector<8x32xf32> to vector<8x8xf32>
    %376 = vector.extract_strided_slice %361 {offsets = [0, 16], sizes = [8, 8], strides = [1, 1]} : vector<8x32xf32> to vector<8x8xf32>
    %377 = vector.extract_strided_slice %361 {offsets = [0, 24], sizes = [8, 8], strides = [1, 1]} : vector<8x32xf32> to vector<8x8xf32>
    %378 = vector.shape_cast %374 : vector<8x8xf32> to vector<1x8x8xf32>
    %379 = vector.shape_cast %375 : vector<8x8xf32> to vector<1x8x8xf32>
    %380 = vector.shape_cast %376 : vector<8x8xf32> to vector<1x8x8xf32>
    %381 = vector.shape_cast %377 : vector<8x8xf32> to vector<1x8x8xf32>
    %382 = tpu.concatenate %378, %379, %380, %381 in 0 : vector<1x8x8xf32>, vector<1x8x8xf32>, vector<1x8x8xf32>, vector<1x8x8xf32> -> vector<4x8x8xf32>
    %383 = vector.extract_strided_slice %364 {offsets = [0, 0], sizes = [8, 8], strides = [1, 1]} : vector<8x32xf32> to vector<8x8xf32>
    %384 = vector.extract_strided_slice %364 {offsets = [0, 8], sizes = [8, 8], strides = [1, 1]} : vector<8x32xf32> to vector<8x8xf32>
    %385 = vector.extract_strided_slice %364 {offsets = [0, 16], sizes = [8, 8], strides = [1, 1]} : vector<8x32xf32> to vector<8x8xf32>
    %386 = vector.extract_strided_slice %364 {offsets = [0, 24], sizes = [8, 8], strides = [1, 1]} : vector<8x32xf32> to vector<8x8xf32>
    %387 = vector.shape_cast %383 : vector<8x8xf32> to vector<1x8x8xf32>
    %388 = vector.shape_cast %384 : vector<8x8xf32> to vector<1x8x8xf32>
    %389 = vector.shape_cast %385 : vector<8x8xf32> to vector<1x8x8xf32>
    %390 = vector.shape_cast %386 : vector<8x8xf32> to vector<1x8x8xf32>
    %391 = tpu.concatenate %387, %388, %389, %390 in 0 : vector<1x8x8xf32>, vector<1x8x8xf32>, vector<1x8x8xf32>, vector<1x8x8xf32> -> vector<4x8x8xf32>
    "tpu.trace_start"() <{level = 10 : i32, message = "gnd,gmd->gnm"}> : () -> ()
    %cst_164 = arith.constant dense<0.000000e+00> : vector<4x8x8xf32>
    %392 = tpu.matmul %373, %382, %cst_164 {dimension_numbers = #tpu.dot_dimension_numbers<[2], [2], [1], [1], [0, 0, 0, 1, 1, 1], [0], [0]>} : vector<4x8x8xf32>, vector<4x8x8xf32>, vector<4x8x8xf32> -> vector<4x8x8xf32>
    "tpu.trace_stop"() : () -> ()
    %cst_165 = arith.constant 0.353553385 : f32
    %393 = vector.broadcast %cst_165 : f32 to vector<4x8x8xf32>
    %394 = arith.mulf %392, %393 : vector<4x8x8xf32>
    %cst_166 = arith.constant dense<0xFF800000> : vector<4x8xf32>
    %395 = vector.multi_reduction <maximumf>, %394, %cst_166 [2] : vector<4x8x8xf32> to vector<4x8xf32>
    %396 = vector.shape_cast %395 : vector<4x8xf32> to vector<4x8x1xf32>
    %397 = vector.broadcast %396 : vector<4x8x1xf32> to vector<4x8x8xf32>
    %398 = arith.subf %394, %397 : vector<4x8x8xf32>
    %399 = math.exp %398 : vector<4x8x8xf32>
    %cst_167 = arith.constant dense<0.000000e+00> : vector<4x8xf32>
    %400 = vector.multi_reduction <add>, %399, %cst_167 [2] : vector<4x8x8xf32> to vector<4x8xf32>
    %401 = vector.shape_cast %400 : vector<4x8xf32> to vector<4x8x1xf32>
    %402 = tpu.reciprocal %401 {approx = true} : vector<4x8x1xf32> -> vector<4x8x1xf32>
    %403 = vector.broadcast %402 : vector<4x8x1xf32> to vector<4x8x8xf32>
    %404 = arith.mulf %399, %403 : vector<4x8x8xf32>
    "tpu.trace_start"() <{level = 10 : i32, message = "gnm,gmd->gnd"}> : () -> ()
    %cst_168 = arith.constant dense<0.000000e+00> : vector<4x8x8xf32>
    %405 = tpu.matmul %404, %391, %cst_168 {dimension_numbers = #tpu.dot_dimension_numbers<[2], [1], [1], [2], [0, 0, 0, 1, 1, 2], [0], [0]>} : vector<4x8x8xf32>, vector<4x8x8xf32>, vector<4x8x8xf32> -> vector<4x8x8xf32>
    "tpu.trace_stop"() : () -> ()
    %406 = vector.extract_strided_slice %405 {offsets = [0, 0, 0], sizes = [1, 8, 8], strides = [1, 1, 1]} : vector<4x8x8xf32> to vector<1x8x8xf32>
    %407 = vector.shape_cast %406 : vector<1x8x8xf32> to vector<8x8xf32>
    %408 = vector.extract_strided_slice %405 {offsets = [1, 0, 0], sizes = [1, 8, 8], strides = [1, 1, 1]} : vector<4x8x8xf32> to vector<1x8x8xf32>
    %409 = vector.shape_cast %408 : vector<1x8x8xf32> to vector<8x8xf32>
    %410 = vector.extract_strided_slice %405 {offsets = [2, 0, 0], sizes = [1, 8, 8], strides = [1, 1, 1]} : vector<4x8x8xf32> to vector<1x8x8xf32>
    %411 = vector.shape_cast %410 : vector<1x8x8xf32> to vector<8x8xf32>
    %412 = vector.extract_strided_slice %405 {offsets = [3, 0, 0], sizes = [1, 8, 8], strides = [1, 1, 1]} : vector<4x8x8xf32> to vector<1x8x8xf32>
    %413 = vector.shape_cast %412 : vector<1x8x8xf32> to vector<8x8xf32>
    %414 = tpu.concatenate %407, %409, %411, %413 in 1 : vector<8x8xf32>, vector<8x8xf32>, vector<8x8xf32>, vector<8x8xf32> -> vector<8x32xf32>
    %c2_169 = arith.constant 2 : index
    %c0_170 = arith.constant 0 : index
    %c0_171 = arith.constant 0 : index
    %415 = vector.load %arg13[%c2_169, %c0_170, %c0_171] : memref<3x32x32xf32, #tpu.memory_space<vmem>>, vector<1x32x32xf32>
    %416 = vector.shape_cast %415 : vector<1x32x32xf32> to vector<32x32xf32>
    %cst_172 = arith.constant dense<0.000000e+00> : vector<8x32xf32>
    %417 = tpu.matmul %414, %416, %cst_172 {dimension_numbers = #tpu.dot_dimension_numbers<[1], [0], [0], [1], [0, 0, 1, 1], [], []>} : vector<8x32xf32>, vector<32x32xf32>, vector<8x32xf32> -> vector<8x32xf32>
    %c2_173 = arith.constant 2 : index
    %c0_174 = arith.constant 0 : index
    %c0_175 = arith.constant 0 : index
    %418 = vector.load %arg14[%c2_173, %c0_174, %c0_175] : memref<3x1x32xf32, #tpu.memory_space<vmem>>, vector<1x1x32xf32>
    %419 = vector.shape_cast %418 : vector<1x1x32xf32> to vector<1x32xf32>
    %420 = vector.broadcast %419 : vector<1x32xf32> to vector<8x32xf32>
    %421 = arith.addf %417, %420 : vector<8x32xf32>
    %422 = arith.addf %5, %421 : vector<8x32xf32>
    %cst_176 = arith.constant dense<0.000000e+00> : vector<8xf32>
    %423 = vector.multi_reduction <add>, %144, %cst_176 [1] : vector<8x32xf32> to vector<8xf32>
    %424 = vector.shape_cast %423 : vector<8xf32> to vector<8x1xf32>
    %cst_177 = arith.constant dense<0.000000e+00> : vector<8xf32>
    %425 = vector.multi_reduction <add>, %283, %cst_177 [1] : vector<8x32xf32> to vector<8xf32>
    %426 = vector.shape_cast %425 : vector<8xf32> to vector<8x1xf32>
    %427 = arith.addf %424, %426 : vector<8x1xf32>
    %cst_178 = arith.constant dense<0.000000e+00> : vector<8xf32>
    %428 = vector.multi_reduction <add>, %422, %cst_178 [1] : vector<8x32xf32> to vector<8xf32>
    %429 = vector.shape_cast %428 : vector<8xf32> to vector<8x1xf32>
    %430 = arith.addf %427, %429 : vector<8x1xf32>
    %cst_179 = arith.constant 0.010416667 : f32
    %431 = vector.broadcast %cst_179 : f32 to vector<8x1xf32>
    %432 = arith.mulf %430, %431 : vector<8x1xf32>
    %433 = vector.broadcast %432 : vector<8x1xf32> to vector<8x32xf32>
    %434 = arith.subf %144, %433 : vector<8x32xf32>
    %435 = vector.broadcast %432 : vector<8x1xf32> to vector<8x32xf32>
    %436 = arith.subf %283, %435 : vector<8x32xf32>
    %437 = vector.broadcast %432 : vector<8x1xf32> to vector<8x32xf32>
    %438 = arith.subf %422, %437 : vector<8x32xf32>
    %439 = arith.mulf %434, %434 : vector<8x32xf32>
    %cst_180 = arith.constant dense<0.000000e+00> : vector<8xf32>
    %440 = vector.multi_reduction <add>, %439, %cst_180 [1] : vector<8x32xf32> to vector<8xf32>
    %441 = vector.shape_cast %440 : vector<8xf32> to vector<8x1xf32>
    %442 = arith.mulf %436, %436 : vector<8x32xf32>
    %cst_181 = arith.constant dense<0.000000e+00> : vector<8xf32>
    %443 = vector.multi_reduction <add>, %442, %cst_181 [1] : vector<8x32xf32> to vector<8xf32>
    %444 = vector.shape_cast %443 : vector<8xf32> to vector<8x1xf32>
    %445 = arith.addf %441, %444 : vector<8x1xf32>
    %446 = arith.mulf %438, %438 : vector<8x32xf32>
    %cst_182 = arith.constant dense<0.000000e+00> : vector<8xf32>
    %447 = vector.multi_reduction <add>, %446, %cst_182 [1] : vector<8x32xf32> to vector<8xf32>
    %448 = vector.shape_cast %447 : vector<8xf32> to vector<8x1xf32>
    %449 = arith.addf %445, %448 : vector<8x1xf32>
    %cst_183 = arith.constant 0.010416667 : f32
    %450 = vector.broadcast %cst_183 : f32 to vector<8x1xf32>
    %451 = arith.mulf %449, %450 : vector<8x1xf32>
    %cst_184 = arith.constant 9.99999974E-6 : f32
    %452 = vector.broadcast %cst_184 : f32 to vector<8x1xf32>
    %453 = arith.addf %451, %452 : vector<8x1xf32>
    %454 = math.rsqrt %453 : vector<8x1xf32>
    %455 = vector.broadcast %454 : vector<8x1xf32> to vector<8x32xf32>
    %456 = arith.mulf %434, %455 : vector<8x32xf32>
    %c0_185 = arith.constant 0 : index
    %c0_186 = arith.constant 0 : index
    %c0_187 = arith.constant 0 : index
    %457 = vector.load %arg15[%c0_185, %c0_186, %c0_187] : memref<3x1x32xf32, #tpu.memory_space<vmem>>, vector<1x1x32xf32>
    %458 = vector.shape_cast %457 : vector<1x1x32xf32> to vector<1x32xf32>
    %459 = vector.broadcast %458 : vector<1x32xf32> to vector<8x32xf32>
    %460 = arith.mulf %456, %459 : vector<8x32xf32>
    %c0_188 = arith.constant 0 : index
    %c0_189 = arith.constant 0 : index
    %c0_190 = arith.constant 0 : index
    %461 = vector.load %arg16[%c0_188, %c0_189, %c0_190] : memref<3x1x32xf32, #tpu.memory_space<vmem>>, vector<1x1x32xf32>
    %462 = vector.shape_cast %461 : vector<1x1x32xf32> to vector<1x32xf32>
    %463 = vector.broadcast %462 : vector<1x32xf32> to vector<8x32xf32>
    %464 = arith.addf %460, %463 : vector<8x32xf32>
    %465 = vector.broadcast %454 : vector<8x1xf32> to vector<8x32xf32>
    %466 = arith.mulf %436, %465 : vector<8x32xf32>
    %c1_191 = arith.constant 1 : index
    %c0_192 = arith.constant 0 : index
    %c0_193 = arith.constant 0 : index
    %467 = vector.load %arg15[%c1_191, %c0_192, %c0_193] : memref<3x1x32xf32, #tpu.memory_space<vmem>>, vector<1x1x32xf32>
    %468 = vector.shape_cast %467 : vector<1x1x32xf32> to vector<1x32xf32>
    %469 = vector.broadcast %468 : vector<1x32xf32> to vector<8x32xf32>
    %470 = arith.mulf %466, %469 : vector<8x32xf32>
    %c1_194 = arith.constant 1 : index
    %c0_195 = arith.constant 0 : index
    %c0_196 = arith.constant 0 : index
    %471 = vector.load %arg16[%c1_194, %c0_195, %c0_196] : memref<3x1x32xf32, #tpu.memory_space<vmem>>, vector<1x1x32xf32>
    %472 = vector.shape_cast %471 : vector<1x1x32xf32> to vector<1x32xf32>
    %473 = vector.broadcast %472 : vector<1x32xf32> to vector<8x32xf32>
    %474 = arith.addf %470, %473 : vector<8x32xf32>
    %475 = vector.broadcast %454 : vector<8x1xf32> to vector<8x32xf32>
    %476 = arith.mulf %438, %475 : vector<8x32xf32>
    %c2_197 = arith.constant 2 : index
    %c0_198 = arith.constant 0 : index
    %c0_199 = arith.constant 0 : index
    %477 = vector.load %arg15[%c2_197, %c0_198, %c0_199] : memref<3x1x32xf32, #tpu.memory_space<vmem>>, vector<1x1x32xf32>
    %478 = vector.shape_cast %477 : vector<1x1x32xf32> to vector<1x32xf32>
    %479 = vector.broadcast %478 : vector<1x32xf32> to vector<8x32xf32>
    %480 = arith.mulf %476, %479 : vector<8x32xf32>
    %c2_200 = arith.constant 2 : index
    %c0_201 = arith.constant 0 : index
    %c0_202 = arith.constant 0 : index
    %481 = vector.load %arg16[%c2_200, %c0_201, %c0_202] : memref<3x1x32xf32, #tpu.memory_space<vmem>>, vector<1x1x32xf32>
    %482 = vector.shape_cast %481 : vector<1x1x32xf32> to vector<1x32xf32>
    %483 = vector.broadcast %482 : vector<1x32xf32> to vector<8x32xf32>
    %484 = arith.addf %480, %483 : vector<8x32xf32>
    %c0_203 = arith.constant 0 : index
    %c0_204 = arith.constant 0 : index
    %c0_205 = arith.constant 0 : index
    %485 = vector.load %arg17[%c0_203, %c0_204, %c0_205] : memref<3x32x64xf32, #tpu.memory_space<vmem>>, vector<1x32x64xf32>
    %486 = vector.shape_cast %485 : vector<1x32x64xf32> to vector<32x64xf32>
    %cst_206 = arith.constant dense<0.000000e+00> : vector<8x64xf32>
    %487 = tpu.matmul %464, %486, %cst_206 {dimension_numbers = #tpu.dot_dimension_numbers<[1], [0], [0], [1], [0, 0, 1, 1], [], []>} : vector<8x32xf32>, vector<32x64xf32>, vector<8x64xf32> -> vector<8x64xf32>
    %c1_207 = arith.constant 1 : index
    %c0_208 = arith.constant 0 : index
    %c0_209 = arith.constant 0 : index
    %488 = vector.load %arg17[%c1_207, %c0_208, %c0_209] : memref<3x32x64xf32, #tpu.memory_space<vmem>>, vector<1x32x64xf32>
    %489 = vector.shape_cast %488 : vector<1x32x64xf32> to vector<32x64xf32>
    %cst_210 = arith.constant dense<0.000000e+00> : vector<8x64xf32>
    %490 = tpu.matmul %474, %489, %cst_210 {dimension_numbers = #tpu.dot_dimension_numbers<[1], [0], [0], [1], [0, 0, 1, 1], [], []>} : vector<8x32xf32>, vector<32x64xf32>, vector<8x64xf32> -> vector<8x64xf32>
    %491 = arith.addf %487, %490 : vector<8x64xf32>
    %c2_211 = arith.constant 2 : index
    %c0_212 = arith.constant 0 : index
    %c0_213 = arith.constant 0 : index
    %492 = vector.load %arg17[%c2_211, %c0_212, %c0_213] : memref<3x32x64xf32, #tpu.memory_space<vmem>>, vector<1x32x64xf32>
    %493 = vector.shape_cast %492 : vector<1x32x64xf32> to vector<32x64xf32>
    %cst_214 = arith.constant dense<0.000000e+00> : vector<8x64xf32>
    %494 = tpu.matmul %484, %493, %cst_214 {dimension_numbers = #tpu.dot_dimension_numbers<[1], [0], [0], [1], [0, 0, 1, 1], [], []>} : vector<8x32xf32>, vector<32x64xf32>, vector<8x64xf32> -> vector<8x64xf32>
    %495 = arith.addf %491, %494 : vector<8x64xf32>
    %c0_215 = arith.constant 0 : index
    %c0_216 = arith.constant 0 : index
    %496 = vector.load %arg18[%c0_215, %c0_216] : memref<1x64xf32, #tpu.memory_space<vmem>>, vector<1x64xf32>
    %497 = vector.broadcast %496 : vector<1x64xf32> to vector<8x64xf32>
    %498 = arith.addf %495, %497 : vector<8x64xf32>
    %cst_217 = arith.constant 5.000000e-01 : f32
    %499 = vector.broadcast %cst_217 : f32 to vector<8x64xf32>
    %500 = arith.mulf %499, %498 : vector<8x64xf32>
    %501 = arith.mulf %498, %498 : vector<8x64xf32>
    %502 = arith.mulf %501, %498 : vector<8x64xf32>
    %cst_218 = arith.constant 4.471500e-02 : f32
    %503 = vector.broadcast %cst_218 : f32 to vector<8x64xf32>
    %504 = arith.mulf %503, %502 : vector<8x64xf32>
    %505 = arith.addf %498, %504 : vector<8x64xf32>
    %cst_219 = arith.constant 0.797884583 : f32
    %506 = vector.broadcast %cst_219 : f32 to vector<8x64xf32>
    %507 = arith.mulf %506, %505 : vector<8x64xf32>
    %508 = math.tanh %507 : vector<8x64xf32>
    %cst_220 = arith.constant 1.000000e+00 : f32
    %509 = vector.broadcast %cst_220 : f32 to vector<8x64xf32>
    %510 = arith.addf %509, %508 : vector<8x64xf32>
    %511 = arith.mulf %500, %510 : vector<8x64xf32>
    %c0_221 = arith.constant 0 : index
    %c0_222 = arith.constant 0 : index
    %c0_223 = arith.constant 0 : index
    %512 = vector.load %arg19[%c0_221, %c0_222, %c0_223] : memref<3x64x32xf32, #tpu.memory_space<vmem>>, vector<1x64x32xf32>
    %513 = vector.shape_cast %512 : vector<1x64x32xf32> to vector<64x32xf32>
    %cst_224 = arith.constant dense<0.000000e+00> : vector<8x32xf32>
    %514 = tpu.matmul %511, %513, %cst_224 {dimension_numbers = #tpu.dot_dimension_numbers<[1], [0], [0], [1], [0, 0, 1, 1], [], []>} : vector<8x64xf32>, vector<64x32xf32>, vector<8x32xf32> -> vector<8x32xf32>
    %515 = arith.addf %144, %514 : vector<8x32xf32>
    %c0_225 = arith.constant 0 : index
    %c0_226 = arith.constant 0 : index
    %c0_227 = arith.constant 0 : index
    %516 = vector.load %arg20[%c0_225, %c0_226, %c0_227] : memref<3x1x32xf32, #tpu.memory_space<vmem>>, vector<1x1x32xf32>
    %517 = vector.shape_cast %516 : vector<1x1x32xf32> to vector<1x32xf32>
    %518 = vector.broadcast %517 : vector<1x32xf32> to vector<8x32xf32>
    %519 = arith.addf %515, %518 : vector<8x32xf32>
    %520 = vector.shape_cast %519 : vector<8x32xf32> to vector<1x8x32xf32>
    %c0_228 = arith.constant 0 : index
    %c0_229 = arith.constant 0 : index
    %c0_230 = arith.constant 0 : index
    %521 = vector.load %arg21[%c0_228, %c0_229, %c0_230] : memref<1x8x32xf32, #tpu.memory_space<vmem>>, vector<1x8x32xf32>
    tpu.vector_store %arg21[%c0_228, %c0_229, %c0_230], %520 {strides = array<i32>} : memref<1x8x32xf32, #tpu.memory_space<vmem>>, vector<1x8x32xf32>,
    %c1_231 = arith.constant 1 : index
    %c0_232 = arith.constant 0 : index
    %c0_233 = arith.constant 0 : index
    %522 = vector.load %arg19[%c1_231, %c0_232, %c0_233] : memref<3x64x32xf32, #tpu.memory_space<vmem>>, vector<1x64x32xf32>
    %523 = vector.shape_cast %522 : vector<1x64x32xf32> to vector<64x32xf32>
    %cst_234 = arith.constant dense<0.000000e+00> : vector<8x32xf32>
    %524 = tpu.matmul %511, %523, %cst_234 {dimension_numbers = #tpu.dot_dimension_numbers<[1], [0], [0], [1], [0, 0, 1, 1], [], []>} : vector<8x64xf32>, vector<64x32xf32>, vector<8x32xf32> -> vector<8x32xf32>
    %525 = arith.addf %283, %524 : vector<8x32xf32>
    %c1_235 = arith.constant 1 : index
    %c0_236 = arith.constant 0 : index
    %c0_237 = arith.constant 0 : index
    %526 = vector.load %arg20[%c1_235, %c0_236, %c0_237] : memref<3x1x32xf32, #tpu.memory_space<vmem>>, vector<1x1x32xf32>
    %527 = vector.shape_cast %526 : vector<1x1x32xf32> to vector<1x32xf32>
    %528 = vector.broadcast %527 : vector<1x32xf32> to vector<8x32xf32>
    %529 = arith.addf %525, %528 : vector<8x32xf32>
    %530 = vector.shape_cast %529 : vector<8x32xf32> to vector<1x8x32xf32>
    %c0_238 = arith.constant 0 : index
    %c0_239 = arith.constant 0 : index
    %c0_240 = arith.constant 0 : index
    %531 = vector.load %arg22[%c0_238, %c0_239, %c0_240] : memref<1x8x32xf32, #tpu.memory_space<vmem>>, vector<1x8x32xf32>
    tpu.vector_store %arg22[%c0_238, %c0_239, %c0_240], %530 {strides = array<i32>} : memref<1x8x32xf32, #tpu.memory_space<vmem>>, vector<1x8x32xf32>,
    %c2_241 = arith.constant 2 : index
    %c0_242 = arith.constant 0 : index
    %c0_243 = arith.constant 0 : index
    %532 = vector.load %arg19[%c2_241, %c0_242, %c0_243] : memref<3x64x32xf32, #tpu.memory_space<vmem>>, vector<1x64x32xf32>
    %533 = vector.shape_cast %532 : vector<1x64x32xf32> to vector<64x32xf32>
    %cst_244 = arith.constant dense<0.000000e+00> : vector<8x32xf32>
    %534 = tpu.matmul %511, %533, %cst_244 {dimension_numbers = #tpu.dot_dimension_numbers<[1], [0], [0], [1], [0, 0, 1, 1], [], []>} : vector<8x64xf32>, vector<64x32xf32>, vector<8x32xf32> -> vector<8x32xf32>
    %535 = arith.addf %422, %534 : vector<8x32xf32>
    %c2_245 = arith.constant 2 : index
    %c0_246 = arith.constant 0 : index
    %c0_247 = arith.constant 0 : index
    %536 = vector.load %arg20[%c2_245, %c0_246, %c0_247] : memref<3x1x32xf32, #tpu.memory_space<vmem>>, vector<1x1x32xf32>
    %537 = vector.shape_cast %536 : vector<1x1x32xf32> to vector<1x32xf32>
    %538 = vector.broadcast %537 : vector<1x32xf32> to vector<8x32xf32>
    %539 = arith.addf %535, %538 : vector<8x32xf32>
    %540 = vector.shape_cast %539 : vector<8x32xf32> to vector<1x8x32xf32>
    %c0_248 = arith.constant 0 : index
    %c0_249 = arith.constant 0 : index
    %c0_250 = arith.constant 0 : index
    %541 = vector.load %arg23[%c0_248, %c0_249, %c0_250] : memref<1x8x32xf32, #tpu.memory_space<vmem>>, vector<1x8x32xf32>
    tpu.vector_store %arg23[%c0_248, %c0_249, %c0_250], %540 {strides = array<i32>} : memref<1x8x32xf32, #tpu.memory_space<vmem>>, vector<1x8x32xf32>,
    return
  }
  func.func @transform_0(%arg0: i32) -> (i32, i32, i32) {
    %c0_i32 = arith.constant 0 : i32
    %c0_i32_0 = arith.constant 0 : i32
    %c0_i32_1 = arith.constant 0 : i32
    return %arg0, %c0_i32, %c0_i32_0 : i32, i32, i32
  }
  func.func @transform_1(%arg0: i32) -> (i32, i32, i32) {
    %c0_i32 = arith.constant 0 : i32
    %c0_i32_0 = arith.constant 0 : i32
    %c0_i32_1 = arith.constant 0 : i32
    return %arg0, %c0_i32, %c0_i32_0 : i32, i32, i32
  }
  func.func @transform_2(%arg0: i32) -> (i32, i32, i32) {
    %c0_i32 = arith.constant 0 : i32
    %c0_i32_0 = arith.constant 0 : i32
    %c0_i32_1 = arith.constant 0 : i32
    return %arg0, %c0_i32, %c0_i32_0 : i32, i32, i32
  }
  func.func @transform_3(%arg0: i32) -> (i32, i32, i32) {
    %c0_i32 = arith.constant 0 : i32
    %c0_i32_0 = arith.constant 0 : i32
    %c0_i32_1 = arith.constant 0 : i32
    %c0_i32_2 = arith.constant 0 : i32
    return %c0_i32, %c0_i32_0, %c0_i32_1 : i32, i32, i32
  }
  func.func @transform_4(%arg0: i32) -> (i32, i32, i32) {
    %c0_i32 = arith.constant 0 : i32
    %c0_i32_0 = arith.constant 0 : i32
    %c0_i32_1 = arith.constant 0 : i32
    %c0_i32_2 = arith.constant 0 : i32
    return %c0_i32, %c0_i32_0, %c0_i32_1 : i32, i32, i32
  }
  func.func @transform_5(%arg0: i32) -> (i32, i32, i32) {
    %c0_i32 = arith.constant 0 : i32
    %c0_i32_0 = arith.constant 0 : i32
    %c0_i32_1 = arith.constant 0 : i32
    %c0_i32_2 = arith.constant 0 : i32
    return %c0_i32, %c0_i32_0, %c0_i32_1 : i32, i32, i32
  }
  func.func @transform_6(%arg0: i32) -> (i32, i32, i32) {
    %c0_i32 = arith.constant 0 : i32
    %c0_i32_0 = arith.constant 0 : i32
    %c0_i32_1 = arith.constant 0 : i32
    %c0_i32_2 = arith.constant 0 : i32
    return %c0_i32, %c0_i32_0, %c0_i32_1 : i32, i32, i32
  }
  func.func @transform_7(%arg0: i32) -> (i32, i32, i32) {
    %c0_i32 = arith.constant 0 : i32
    %c0_i32_0 = arith.constant 0 : i32
    %c0_i32_1 = arith.constant 0 : i32
    %c0_i32_2 = arith.constant 0 : i32
    return %c0_i32, %c0_i32_0, %c0_i32_1 : i32, i32, i32
  }
  func.func @transform_8(%arg0: i32) -> (i32, i32, i32) {
    %c0_i32 = arith.constant 0 : i32
    %c0_i32_0 = arith.constant 0 : i32
    %c0_i32_1 = arith.constant 0 : i32
    %c0_i32_2 = arith.constant 0 : i32
    return %c0_i32, %c0_i32_0, %c0_i32_1 : i32, i32, i32
  }
  func.func @transform_9(%arg0: i32) -> (i32, i32, i32) {
    %c0_i32 = arith.constant 0 : i32
    %c0_i32_0 = arith.constant 0 : i32
    %c0_i32_1 = arith.constant 0 : i32
    %c0_i32_2 = arith.constant 0 : i32
    return %c0_i32, %c0_i32_0, %c0_i32_1 : i32, i32, i32
  }
  func.func @transform_10(%arg0: i32) -> (i32, i32, i32) {
    %c0_i32 = arith.constant 0 : i32
    %c0_i32_0 = arith.constant 0 : i32
    %c0_i32_1 = arith.constant 0 : i32
    %c0_i32_2 = arith.constant 0 : i32
    return %c0_i32, %c0_i32_0, %c0_i32_1 : i32, i32, i32
  }
  func.func @transform_11(%arg0: i32) -> (i32, i32, i32) {
    %c0_i32 = arith.constant 0 : i32
    %c0_i32_0 = arith.constant 0 : i32
    %c0_i32_1 = arith.constant 0 : i32
    %c0_i32_2 = arith.constant 0 : i32
    return %c0_i32, %c0_i32_0, %c0_i32_1 : i32, i32, i32
  }
  func.func @transform_12(%arg0: i32) -> (i32, i32, i32) {
    %c0_i32 = arith.constant 0 : i32
    %c0_i32_0 = arith.constant 0 : i32
    %c0_i32_1 = arith.constant 0 : i32
    %c0_i32_2 = arith.constant 0 : i32
    return %c0_i32, %c0_i32_0, %c0_i32_1 : i32, i32, i32
  }
  func.func @transform_13(%arg0: i32) -> (i32, i32, i32) {
    %c0_i32 = arith.constant 0 : i32
    %c0_i32_0 = arith.constant 0 : i32
    %c0_i32_1 = arith.constant 0 : i32
    %c0_i32_2 = arith.constant 0 : i32
    return %c0_i32, %c0_i32_0, %c0_i32_1 : i32, i32, i32
  }
  func.func @transform_14(%arg0: i32) -> (i32, i32, i32) {
    %c0_i32 = arith.constant 0 : i32
    %c0_i32_0 = arith.constant 0 : i32
    %c0_i32_1 = arith.constant 0 : i32
    %c0_i32_2 = arith.constant 0 : i32
    return %c0_i32, %c0_i32_0, %c0_i32_1 : i32, i32, i32
  }
  func.func @transform_15(%arg0: i32) -> (i32, i32, i32) {
    %c0_i32 = arith.constant 0 : i32
    %c0_i32_0 = arith.constant 0 : i32
    %c0_i32_1 = arith.constant 0 : i32
    %c0_i32_2 = arith.constant 0 : i32
    return %c0_i32, %c0_i32_0, %c0_i32_1 : i32, i32, i32
  }
  func.func @transform_16(%arg0: i32) -> (i32, i32, i32) {
    %c0_i32 = arith.constant 0 : i32
    %c0_i32_0 = arith.constant 0 : i32
    %c0_i32_1 = arith.constant 0 : i32
    %c0_i32_2 = arith.constant 0 : i32
    return %c0_i32, %c0_i32_0, %c0_i32_1 : i32, i32, i32
  }
  func.func @transform_17(%arg0: i32) -> (i32, i32) {
    %c0_i32 = arith.constant 0 : i32
    %c0_i32_0 = arith.constant 0 : i32
    %c0_i32_1 = arith.constant 0 : i32
    return %c0_i32, %c0_i32_0 : i32, i32
  }
  func.func @transform_18(%arg0: i32) -> (i32, i32, i32) {
    %c0_i32 = arith.constant 0 : i32
    %c0_i32_0 = arith.constant 0 : i32
    %c0_i32_1 = arith.constant 0 : i32
    %c0_i32_2 = arith.constant 0 : i32
    return %c0_i32, %c0_i32_0, %c0_i32_1 : i32, i32, i32
  }
  func.func @transform_19(%arg0: i32) -> (i32, i32, i32) {
    %c0_i32 = arith.constant 0 : i32
    %c0_i32_0 = arith.constant 0 : i32
    %c0_i32_1 = arith.constant 0 : i32
    %c0_i32_2 = arith.constant 0 : i32
    return %c0_i32, %c0_i32_0, %c0_i32_1 : i32, i32, i32
  }
  func.func @transform_20(%arg0: i32) -> (i32, i32, i32) {
    %c0_i32 = arith.constant 0 : i32
    %c0_i32_0 = arith.constant 0 : i32
    %c0_i32_1 = arith.constant 0 : i32
    return %arg0, %c0_i32, %c0_i32_0 : i32, i32, i32
  }
  func.func @transform_21(%arg0: i32) -> (i32, i32, i32) {
    %c0_i32 = arith.constant 0 : i32
    %c0_i32_0 = arith.constant 0 : i32
    %c0_i32_1 = arith.constant 0 : i32
    return %arg0, %c0_i32, %c0_i32_0 : i32, i32, i32
  }
  func.func @transform_22(%arg0: i32) -> (i32, i32, i32) {
    %c0_i32 = arith.constant 0 : i32
    %c0_i32_0 = arith.constant 0 : i32
    %c0_i32_1 = arith.constant 0 : i32
    return %arg0, %c0_i32, %c0_i32_0 : i32, i32, i32
  }
}

</mosaic_0001>

<bundles_post_ra>
// kernel: tpu_custom_call.1
= control target key start
LH: loop header
LB: loop body
LE: loop exit
PB: predicated region body
PF: predicated region fallthrough
CT: control target
= control target key end

     0   :  { %s7242_s0 = inlined_call_operand.hbm [shape: f32[2,8,32], index: 0, kind: input, shape index: {}]   ;;  %s7243_s1 = inlined_call_operand.hbm [shape: f32[2,8,32], index: 1, kind: input, shape index: {}]   ;;  %s7244_s2 = inlined_call_operand.hbm [shape: f32[2,8,32], index: 2, kind: input, shape index: {}]   ;;  %s7245_s3 = inlined_call_operand.vmem [shape: f32[3,1,32], index: 3, kind: input, shape index: {}]   ;;  %s7246_s4 = inlined_call_operand.vmem [shape: f32[3,1,32], index: 4, kind: input, shape index: {}]   ;;  %s7247_s5 = inlined_call_operand.hbm [shape: f32[3,1,32], index: 5, kind: input, shape index: {}]   ;;  %s7248_s6 = inlined_call_operand.vmem [shape: f32[3,1,32], index: 6, kind: input, shape index: {}]   ;;  %s7249_s7 = inlined_call_operand.hbm [shape: f32[3,1,32], index: 7, kind: input, shape index: {}]   ;;  %s7250_s8 = inlined_call_operand.vmem [shape: f32[3,1,32], index: 8, kind: input, shape index: {}]   ;;  %s7251_s9 = inlined_call_operand.vmem [shape: f32[3,32,32], index: 9, kind: input, shape index: {}]   ;;  %s7252_s10 = inlined_call_operand.vmem [shape: f32[3,32,32], index: 10, kind: input, shape index: {}]   ;;  %s7253_s11 = inlined_call_operand.vmem [shape: f32[3,32,32], index: 11, kind: input, shape index: {}]   ;;  %s7254_s12 = inlined_call_operand.hbm [shape: f32[3,32,32], index: 12, kind: input, shape index: {}]   ;;  %s7255_s13 = inlined_call_operand.vmem [shape: f32[3,1,32], index: 13, kind: input, shape index: {}]   ;;  %s7256_s14 = inlined_call_operand.vmem [shape: f32[3,1,32], index: 14, kind: input, shape index: {}]   ;;  %s7257_s15 = inlined_call_operand.vmem [shape: f32[3,1,32], index: 15, kind: input, shape index: {}]   ;;  %s7258_s16 = inlined_call_operand.hbm [shape: f32[3,32,64], index: 16, kind: input, shape index: {}]   ;;  %s7259_s17 = inlined_call_operand.vmem [shape: f32[1,64], index: 17, kind: input, shape index: {}]   ;;  %s7260_s18 = inlined_call_operand.vmem [shape: f32[3,64,32], index: 18, kind: input, shape index: {}]   ;;  %s7261_s19 = inlined_call_operand.vmem [shape: f32[3,1,32], index: 19, kind: input, shape index: {}]   ;;  %s7262_s20 = inlined_call_operand.hbm [shape: f32[2,8,32], index: 20, kind: output, shape index: {0}]   ;;  %s7263_s21 = inlined_call_operand.hbm [shape: f32[2,8,32], index: 21, kind: output, shape index: {1}]   ;;  %s7264_s22 = inlined_call_operand.hbm [shape: f32[2,8,32], index: 22, kind: output, shape index: {2}]  }
   0x1   :  { %7302 = sst [smem:[#allocation30_spill]] %s7242_s0 }
   0x2   :  { %7303 = sst [smem:[#allocation31_spill]] %s7243_s1 }
   0x3   :  { %7304 = sst [smem:[#allocation32_spill]] %s7244_s2 }
   0x4   :  { %7305 = sst [smem:[#allocation33_spill]] %s7245_s3 }
   0x5   :  { %7306 = sst [smem:[#allocation34_spill]] %s7246_s4 }
   0x6   :  { %7307 = sst [smem:[#allocation35_spill]] %s7247_s5 }
   0x7   :  { %7308 = sst [smem:[#allocation36_spill]] %s7248_s6 }
   0x8   :  { %7309 = sst [smem:[#allocation37_spill]] %s7249_s7 }
   0x9   :  { %7310 = sst [smem:[#allocation38_spill]] %s7250_s8 }
   0xa   :  { %7311 = sst [smem:[#allocation39_spill]] %s7251_s9 }
   0xb   :  { %7312 = sst [smem:[#allocation40_spill]] %s7252_s10 }
   0xc   :  { %7313 = sst [smem:[#allocation41_spill]] %s7254_s12 }
   0xd   :  { %7314 = sst [smem:[#allocation42_spill]] %s7257_s15 }
   0xe   :  { %7315 = sst [smem:[#allocation43_spill]] %s7258_s16 }
   0xf   :  { %7316 = sst [smem:[#allocation44_spill]] %s7259_s17 }
  0x10   :  { %7317 = sst [smem:[#allocation45_spill]] %s7260_s18 }
  0x11   :  { %7318 = sst [smem:[#allocation46_spill]] %s7261_s19 }
  0x12   :  { %7319 = sst [smem:[#allocation47_spill]] %s7262_s20 }
  0x13   :  { %7320 = sst [smem:[#allocation48_spill]] %s7263_s21 }
  0x14   :  { %7321 = sst [smem:[#allocation49_spill]] %s7264_s22 }
  0x15   :  { %28 = vsyncpa [#allocation3], 0 }
  0x16   :  { %30 = vsyncpa [#allocation3 + $0x1], 0 }
  0x17   :  { %31 = vsyncpa [#allocation6], 0 }
  0x18   :  { %33 = vsyncpa [#allocation6 + $0x1], 0 }
  0x19   :  { %34 = vsyncpa [#allocation9], 0 }
  0x1a   :  { %35 = vsyncpa [#allocation12], 0 }
  0x1b   :  { %36 = vsyncpa [#allocation4], 0 }
  0x1c   :  { %38 = vsyncpa [#allocation4 + $0x1], 0 }
  0x1d   :  { %39 = vsyncpa [#allocation16], 0 }
  0x1e   :  { %41 = vsyncpa [#allocation16 + $0x1], 0  ;;  %s6231_s3 = smov 0   ;;  %s6233_s28 = smov 0  }
  0x1f   :  { %s6235_s29 = smov 0   ;;  %s6237_s30 = smov 0  }
  0x20 LB: > { %7322 = sst [smem:[#allocation24_spill]] %s6080_s3  ;;  %s6094_s4 = smov [#allocation8]   ;;  %s6092_s30 = sphi %s6237_s30, %s7379_s30   ;;  %s6088_s29 = sphi %s6235_s29, %s7383_s29   ;;  %s6084_s28 = sphi %s6233_s28, %s7382_s28   ;;  %s6080_s3 = sphi %s6231_s3, %s7381_s3  }
  0x21   : > { %7323 = sst [smem:[#allocation25_spill]] %s6092_s30  ;;  %s583_s0 = sshll.u32 %s6094_s4, 4  ;;  %s584_s0 = int_to_ptr.vmem [resolvable:$true] %s583_s0 }
  0x22   : > { %s6252_s23 = sadd.s32 4294967295, %s6092_s30   ;;  %p4925_p0 = scmp.ge.s32.totalorder %s6092_s30, 1 }
  0x23   : > { %p7292_p1 = scmp.eq.s32.totalorder %s6252_s23, 0  ;;  %p565_p2 = scmp.lt.s32.totalorder %s6092_s30, 3 }
  0x24   : > { %s6095_s5 = smov [#allocation11]   ;;  %s5783_s25 = scalar_lea.vmem %s584_s0, 48 }
  0x25   : > { %p6257_p3 = pnand %p4925_p0, %p565_p2  ;;  %s624_s24 = sshll.u32 %s6095_s5, 4  ;;  %s6270_s24 = int_to_ptr.vmem [resolvable:$true] %s624_s24 }
  0x26   : > { %p5784_p8 = scmp.ne.s32.totalorder %s584_s0, %s5783_s25  ;;  %s5790_s26 = scalar_lea.vmem %s584_s0, 64 }
  0x27   : > { %s7324_s1 = scalar_select %p6257_p3, 1, 0 }
  0x28   : > { %p5617_p5 = pneg %p6257_p3  ;;  %p5791_p11 = scmp.lt.s32.totalorder %s584_s0, %s584_s0 }
  0x29   : > { %p5792_p12 = scmp.lt.s32.totalorder %s5790_s26, %s5783_s25 }
  0x2a   : > { %p6266_p6 = pnand %p5617_p5, %p7292_p1 }
  0x2b   : > { %p5793_p13 = por %p5792_p12, %p5791_p11 }
  0x2c   : > { %s7325_s6 = scalar_select %p6266_p6, 1, 0 }
  0x2d   : > { %p7275_p7 = pneg %p6266_p6 }
  0x2f   : > { %p5786_p9 = pnand %p5784_p8, %p7275_p7 }
  0x31   : > { %p5787_p10 = pneg %p5786_p9 }
  0x33   : > { %p5794_p0 = pnand %p5793_p13, %p5787_p10 }
  0x35   : > { %5797 = shalt.err (!%p5794_p0)
}
  0x36   : > { %s7273_s2 = smov 16   ;;  %s7274_s27 = smov 1  }
  0x37   : > { %s7326_s22 = sld [smem:[#allocation35_spill]]  ;;  %s5809_s20 = scalar_lea.vmem %s6270_s24, 1536 }
  0x38   : > { %p5810_p2 = scmp.ne.s32.totalorder %s6270_s24, %s5809_s20  ;;  %p5817_p9 = scmp.lt.s32.totalorder %s6270_s24, %s6270_s24 }
  0x39   : > { %p5818_p10 = scmp.lt.s32.totalorder %s5809_s20, %s5809_s20 }
  0x3a   : > { %p5812_p5 = pnand %p5810_p2, %p7275_p7 }
  0x3b   : > { %p5819_p11 = por %p5818_p10, %p5817_p9 }
  0x3c   : > { %p5813_p8 = pneg %p5812_p5 }
  0x3d   : > { %5620 = dma.hbm_to_vmem [thread:$0]  (!%p6266_p6), %s7326_s22, 48, %s584_s0, [#allocation9], %s7273_s2, %s7273_s2, %s7274_s27  }
  0x3e   : > { %p5820_p12 = pnand %p5819_p11, %p5813_p8 }
  0x40   : > { %5823 = shalt.err (!%p5820_p12)
}
  0x41   : > { %s7276_s25 = smov 128   ;;  %s7277_s20 = smov 8  }
  0x42   : > { %s7327_s12 = sld [smem:[#allocation41_spill]]  ;;  %s7278_s26 = sadd.s32 4294967294, %s6092_s30  }
  0x43   : > { %s6303_s4 = sadd.s32 1, %s6092_s30   ;;  %s54_s2 = sadd.s32 1, %s6088_s29 }
  0x44   : > { %7328 = sst [smem:[#allocation26_spill]] %s6303_s4  ;;  %s51_s5 = ssub.s32 %s6092_s30, %s6303_s4 }
  0x45   : > { %p52_p13 = scmp.eq.s32.totalorder %s51_s5, 0  ;;  %p61_p0 = scmp.ne.s32.totalorder %s6088_s29, %s6084_s28 }
  0x46   : > { %p62_p2 = scmp.eq.s32.totalorder %s6092_s30, 0  ;;  %p67_p5 = scmp.ne.s32.totalorder %s6084_s28, %s6080_s3 }
  0x47   : > { %s6314_s27 = scalar_select %p52_p13, %s6088_s29, %s54_s2  }
  0x48   : > { %5626 = dma.hbm_to_vmem [thread:$0]  (!%p6266_p6), %s7327_s12, 1536, %s6270_s24, [#allocation12], %s7276_s25, %s7276_s25, %s7277_s20  }
  0x49   : > { %7329 = sst [smem:[#allocation27_spill]] %s6314_s27  ;;  %p63_p8 = por %p62_p2, %p61_p0 }
  0x4a   : > { %p6318_p9 = por %p7292_p1, %p67_p5  ;;  %p500_p10 = scmp.eq.s32.totalorder %s6252_s23, 1 }
  0x4b   : > { %p506_p11 = scmp.eq.s32.totalorder %s7278_s26, 1  ;;  %p5654_p12 = scmp.lt.s32.totalorder %s6092_s30, 2 }
  0x4c   : > { %s7330_s22 = scalar_select %p6318_p9, 1, 0 }
  0x4d   : > { %s7282_s24 = sand.u32 1, %s6088_s29   ;;  %p6327_p4 = por %p500_p10, %p61_p0 }
  0x4e   : > { %p6331_p7 = por %p506_p11, %p67_p5  ;;  %s6337_s2 = sshll.u32 %s7282_s24, 3 }
  0x4f   : > { %s7331_s0 = scalar_select %p6327_p4, 1, 0 }
  0x50   : > { %s7333_s5 = scalar_select %p6331_p7, 1, 0 }
  0x51   : > { %7332 = sst [smem:[#allocation28_spill]] %s7331_s0  ;;  %s6340_s25 = sshll.u32 %s6092_s30, 7 }
  0x52   : > { %7334 = sst [smem:[#allocation29_spill]] %s7333_s5  ;;  %p6342_p13 = pnand %p5654_p12, %p63_p8 }
  0x53   : > { %s687_s26 = sand.u32 1, %s6092_s30   ;;  %s7336_s4 = sld [smem:[#allocation31_spill]] }
  0x54   : > { %s691_s24 = scalar_lea.vmem [#allocation5], %s6337_s2  ;;  %s6100_s21 = smov [#allocation10]  }
  0x55   : > { %s698_s5 = sshll.u32 %s691_s24, 4  ;;  %s599_s0 = sshll.u32 %s6100_s21, 4  ;;  %s6354_s5 = int_to_ptr.vmem [resolvable:$true] %s698_s5  ;;  %s600_s0 = int_to_ptr.vmem [resolvable:$true] %s599_s0 }
  0x56   : > { %s6356_s19 = scalar_lea.sflag [#allocation6], %s687_s26  ;;  %p6362_p2 = pneg %p6342_p13 }
  0x59   : > { %s6351_s3 = scalar_lea.hbm %s7336_s4, %s6340_s25  ;;  %s5829_s24 = scalar_lea.hbm %s7336_s4, 256 }
  0x5a   : > { %s5824_s17 = scalar_lea.hbm %s6351_s3, 128  ;;  %p5830_p10 = scmp.lt.s32.totalorder %s6351_s3, %s7336_s4 }
  0x5b   : > { %p5825_p0 = scmp.ne.s32.totalorder %s6351_s3, %s5824_s17  ;;  %p5831_p11 = scmp.lt.s32.totalorder %s5829_s24, %s5824_s17 }
  0x5d   : > { %p5827_p5 = pnand %p6362_p2, %p5825_p0  ;;  %p5832_p12 = por %p5831_p11, %p5830_p10 }
  0x5f   : > { %p5828_p8 = pneg %p5827_p5 }
  0x61   : > { %p5833_p1 = pnand %p5832_p12, %p5828_p8 }
  0x63   : > { %5836 = shalt.err (!%p5833_p1)
}
  0x64   : > { %s5837_s21 = scalar_lea.vmem %s6354_s5, 128  ;;  %s6101_s26 = smov [#allocation5]  }
  0x65   : > { %p5838_p7 = scmp.ne.s32.totalorder %s6354_s5, %s5837_s21  ;;  %s5842_s12 = sshll.u32 %s6101_s26, 4  ;;  %s5843_s12 = int_to_ptr.vmem [resolvable:$false] %s5842_s12 }
  0x66   : > { %s5844_s27 = scalar_lea.vmem %s5843_s12, 256  ;;  %p5845_p4 = scmp.lt.s32.totalorder %s6354_s5, %s5843_s12 }
  0x67   : > { %p5840_p0 = pnand %p5838_p7, %p6362_p2  ;;  %p5846_p9 = scmp.lt.s32.totalorder %s5844_s27, %s5837_s21 }
  0x69   : > { %p5841_p5 = pneg %p5840_p0  ;;  %p5847_p3 = por %p5846_p9, %p5845_p4 }
  0x6b   : > { %p5848_p6 = pnand %p5847_p3, %p5841_p5 }
  0x6d   : > { %5851 = shalt.err (!%p5848_p6)
}
  0x6e   : > { %5636 = dma.hbm_to_vmem [thread:$0]  (!%p6342_p13), %s6351_s3, 128, %s6354_s5, %s6356_s19  }
  0x6f   : > { %s5863_s15 = scalar_lea.vmem %s600_s0, 48  ;;  %p7338_p7 = scmp.ne.s32.totalorder %s7325_s6, 0 }
  0x70   : > { %p5864_p1 = scmp.ne.s32.totalorder %s600_s0, %s5863_s15  ;;  %s5870_s17 = scalar_lea.vmem %s600_s0, 64 }
  0x71   : > { %p7339_p8 = pneg %p7338_p7  ;;  %p5871_p12 = scmp.lt.s32.totalorder %s600_s0, %s600_s0 }
  0x72   : > { %p5872_p0 = scmp.lt.s32.totalorder %s5870_s17, %s5863_s15 }
  0x73   : > { %p5866_p10 = pnand %p5864_p1, %p7339_p8 }
  0x74   : > { %p5873_p4 = por %p5872_p0, %p5871_p12 }
  0x75   : > { %p5867_p11 = pneg %p5866_p10 }
  0x77   : > { %p5874_p3 = pnand %p5873_p4, %p5867_p11 }
  0x79   : > { %5877 = shalt.err (!%p5874_p3)
}
  0x7a   : > { %s7340_s18 = smov 1   ;;  %s7341_s24 = smov 16  }
  0x7b   : > { %s7342_s7 = sld [smem:[#allocation37_spill]]  ;;  %s6102_s5 = smov [#allocation13]  }
  0x7c   : > { %s646_s26 = sshll.u32 %s6102_s5, 4  ;;  %p7343_p9 = pmov %p7339_p8  ;;  %s647_s26 = int_to_ptr.vmem [resolvable:$true] %s646_s26 }
  0x7d   : > { %s5889_s12 = scalar_lea.vmem %s647_s26, 1536  ;;  %p5897_p8 = scmp.lt.s32.totalorder %s647_s26, %s647_s26 }
  0x7e   : > { %p5890_p6 = scmp.ne.s32.totalorder %s647_s26, %s5889_s12  ;;  %p5898_p10 = scmp.lt.s32.totalorder %s5889_s12, %s5889_s12 }
  0x80   : > { %p5892_p5 = pnand %p5890_p6, %p7343_p9  ;;  %p5899_p11 = por %p5898_p10, %p5897_p8 }
  0x81   : > { %5623 = dma.hbm_to_vmem [thread:$0]  (!%p7338_p7), %s7342_s7, 48, %s600_s0, [#allocation9], %s7341_s24, %s7341_s24, %s7340_s18  }
  0x82   : > { %p5893_p1 = pneg %p5892_p5 }
  0x84   : > { %p5900_p12 = pnand %p5899_p11, %p5893_p1 }
  0x86   : > { %5903 = shalt.err (!%p5900_p12)
}
  0x87   : > { %s7344_s27 = smov 8   ;;  %s7345_s15 = smov 128  }
  0x88   : > { %s7346_s16 = sld [smem:[#allocation43_spill]]  ;;  %s673_s6 = scalar_lea.vmem [#allocation2], %s6337_s2 }
  0x89   : > { %s7347_s21 = sld [smem:[#allocation30_spill]]  ;;  %s680_s5 = sshll.u32 %s673_s6, 4  ;;  %s681_s5 = int_to_ptr.vmem [resolvable:$true] %s680_s5 }
  0x8a   : > { %s7348_s12 = sand.u32 1, %s6088_s29  }
  0x8b   : > { %s670_s4 = scalar_lea.sflag [#allocation3], %s7348_s12 }
  0x8e   : > { %5629 = dma.hbm_to_vmem [thread:$0]  (!%p7338_p7), %s7346_s16, 1536, %s647_s26, [#allocation12], %s7345_s15, %s7345_s15, %s7344_s27  }
  0x8f   : > { %s6411_s3 = scalar_lea.hbm %s7347_s21, %s6340_s25  ;;  %s5909_s27 = scalar_lea.hbm %s7347_s21, 256 }
  0x90   : > { %s5904_s7 = scalar_lea.hbm %s6411_s3, 128  ;;  %p5910_p7 = scmp.lt.s32.totalorder %s6411_s3, %s7347_s21 }
  0x91   : > { %p5905_p0 = scmp.ne.s32.totalorder %s6411_s3, %s5904_s7  ;;  %p5911_p6 = scmp.lt.s32.totalorder %s5909_s27, %s5904_s7 }
  0x93   : > { %p5907_p4 = pnand %p5905_p0, %p6362_p2  ;;  %p5912_p9 = por %p5911_p6, %p5910_p7 }
  0x95   : > { %p5908_p3 = pneg %p5907_p4 }
  0x97   : > { %p5913_p5 = pnand %p5912_p9, %p5908_p3 }
  0x99   : > { %5916 = shalt.err (!%p5913_p5)
}
  0x9a   : > { %s5917_s18 = scalar_lea.vmem %s681_s5, 128  ;;  %s6103_s24 = smov [#allocation2]  }
  0x9b   : > { %p5918_p1 = scmp.ne.s32.totalorder %s681_s5, %s5917_s18  ;;  %s5922_s6 = sshll.u32 %s6103_s24, 4  ;;  %s5923_s6 = int_to_ptr.vmem [resolvable:$false] %s5922_s6 }
  0x9c   : > { %s5924_s12 = scalar_lea.vmem %s5923_s6, 256  ;;  %p5925_p11 = scmp.lt.s32.totalorder %s681_s5, %s5923_s6 }
  0x9d   : > { %p5920_p8 = pnand %p5918_p1, %p6362_p2  ;;  %p5926_p12 = scmp.lt.s32.totalorder %s5924_s12, %s5917_s18 }
  0x9f   : > { %p5921_p10 = pneg %p5920_p8  ;;  %p5927_p0 = por %p5926_p12, %p5925_p11 }
  0xa1   : > { %p5928_p4 = pnand %p5927_p0, %p5921_p10 }
  0xa3   : > { %5931 = shalt.err (!%p5928_p4)
}
  0xa4   : > { %5633 = dma.hbm_to_vmem [thread:$0]  (!%p6342_p13), %s6411_s3, 128, %s681_s5, %s670_s4  }
  0xa5   : > { %s7349_s26 = sld [smem:[#allocation32_spill]]  ;;  %s709_s15 = scalar_lea.vmem [#allocation7], %s6337_s2 }
  0xa6   : > { %s716_s17 = sshll.u32 %s709_s15, 4  ;;  %s717_s17 = int_to_ptr.vmem [resolvable:$true] %s716_s17 }
  0xab   : > { %s714_s27 = scalar_lea.hbm %s7349_s26, %s6340_s25  ;;  %s5937_s12 = scalar_lea.hbm %s7349_s26, 256 }
  0xac   : > { %s5932_s24 = scalar_lea.hbm %s714_s27, 128  ;;  %p5938_p9 = scmp.lt.s32.totalorder %s714_s27, %s7349_s26 }
  0xad   : > { %p5933_p3 = scmp.ne.s32.totalorder %s714_s27, %s5932_s24  ;;  %p5939_p5 = scmp.lt.s32.totalorder %s5937_s12, %s5932_s24 }
  0xaf   : > { %p5935_p7 = pnand %p5933_p3, %p6362_p2  ;;  %p5940_p1 = por %p5939_p5, %p5938_p9 }
  0xb1   : > { %p5936_p6 = pneg %p5935_p7 }
  0xb3   : > { %p5941_p8 = pnand %p5940_p1, %p5936_p6 }
  0xb5   : > { %5944 = shalt.err (!%p5941_p8)
}
  0xb6   : > { %s5945_s25 = scalar_lea.vmem %s717_s17, 128  ;;  %s6104_s4 = smov [#allocation7]  }
  0xb7   : > { %p5946_p10 = scmp.ne.s32.totalorder %s717_s17, %s5945_s25  ;;  %s5950_s2 = sshll.u32 %s6104_s4, 4  ;;  %s5951_s2 = int_to_ptr.vmem [resolvable:$false] %s5950_s2 }
  0xb8   : > { %s5952_s3 = scalar_lea.vmem %s5951_s2, 256  ;;  %p5953_p0 = scmp.lt.s32.totalorder %s717_s17, %s5951_s2 }
  0xb9   : > { %p5948_p11 = pnand %p5946_p10, %p6362_p2  ;;  %p5954_p4 = scmp.lt.s32.totalorder %s5952_s3, %s5945_s25 }
  0xbb   : > { %p5949_p12 = pneg %p5948_p11  ;;  %p5955_p3 = por %p5954_p4, %p5953_p0 }
  0xbd   : > { %p5956_p7 = pnand %p5955_p3, %p5949_p12 }
  0xbf   : > { %5959 = shalt.err (!%p5956_p7)
}
  0xc0   : > { %5639 = dma.hbm_to_vmem [thread:$0]  (!%p6342_p13), %s714_s27, 128, %s717_s17, %s6356_s19  }
  0xc1   : > { %p7350_p6 = scmp.ne.s32.totalorder %s7324_s1, 0 }
  0xc2   : > { %s6453_s16 = sand.u32 (!%p7350_p6), 1, %s6084_s28   ;;  %p7351_p2 = scmp.ne.s32.totalorder (!%p7350_p6), %s7330_s22, 0 }
  0xc3   : > { %725 = sbr.rel (%p7350_p6) target bundleno = 6076 (0x17bc), region = 100  ;;  %s6456_s30 = sshll.u32 (!%p7350_p6), %s6453_s16, 3 }
  0xc4   : > { %s728_s21 = scalar_lea.sflag (!%p7350_p6), [#allocation3], %s6453_s16  ;;  %s731_s5 = scalar_lea.vmem (!%p7350_p6), [#allocation2], %s6456_s30 }
  0xc8   : > { %6055 = dma.done.wait (%p7351_p2), %s728_s21, 128  }
  0xc9   : > { %6057 = vsyncadd (%p7351_p2), %s728_s21, 4294967168  ;;  %s7300_s19 = sand.u32 1, %s6252_s23   ;;  %s740_s20 = scalar_lea.vmem [#allocation5], %s6456_s30 }
  0xca   : > { %s737_s1 = scalar_lea.sflag [#allocation6], %s7300_s19 }
  0xcb   : > { %6059 = dma.done.wait (%p7351_p2), %s737_s1, 256  }
  0xcc   : > { %6061 = vsyncadd (%p7351_p2), %s737_s1, 4294967040  ;;  %s749_s7 = scalar_lea.vmem [#allocation7], %s6456_s30  ;;  %p7352_p13 = scmp.eq.s32.totalorder %s6252_s23, 0 }
  0xce   : > { %6063 = dma.done.wait (%p7352_p13), [#allocation9], 96   ;;  %p7353_p9 = pmov %p7352_p13 }
  0xd0   : > { %6065 = vsyncadd (%p7353_p9), [#allocation9], 4294967200  ;;  %p7354_p5 = pmov %p7353_p9 }
  0xd2   : > { %6067 = dma.done.wait (%p7354_p5), [#allocation12], 3072   ;;  %p7355_p1 = pmov %p7354_p5 }
  0xd3   : > { %vm851_vm0 = vcmask 261120   ;;  %v847_v0 = vld [vmem:[%s740_s20] sm:$0xff]  ;;  %v848_v1 = vld [vmem:[%s749_s7] sm:$0xff]  ;;  %v6105_v16 = vmov 0.0   ;;  %s7356_s9 = sld [smem:[#allocation39_spill]]  ;;  %vm6106_vm1 = vmmov 0  }
  0xd4   : > { %6069 = vsyncadd (%p7355_p1), [#allocation12], 4294964224  ;;  %v852_v2 = vsel %vm851_vm0, %v847_v0, 0.0  ;;  %v882_v3 = vsel %vm851_vm0, %v848_v1, 0.0  ;;  %v6487_v4 = vld [vmem:[%s731_s5] sm:$0xff]  ;;  %5247 = vmatprep.subr.mxu1 %v6105_v16  ;;  %5269 = vmatprep.subr.mxu0 %v6105_v16  ;;  %v1095_v26 = vld [vmem:[%s7253_s11 + $0x18] sm:$0xff] }
  0xd5   : > { %853 = vadd.xlane.f32.xlu0 %v852_v2  ;;  %v911_v5 = vsel %vm851_vm0, %v6487_v4, 0.0  ;;  %5255 = vmatprep.mubr.msk.f32.mxu1 %vm6106_vm1, %v6105_v16  ;;  %v1094_v27 = vld [vmem:[%s7253_s11 + $0x10] sm:$0xff]  ;;  %v1093_v28 = vld [vmem:[%s7253_s11 + $0x8] sm:$0xff]  ;;  %v1092_v29 = vld [vmem:[%s7253_s11] sm:$0xff]  ;;  %s7357_s27 = sld [smem:[#allocation33_spill]]  ;;  %s6107_s17 = smov 120  }
  0xd6   : > { %5277 = vmatprep.mubr.msk.f32.mxu0 %vm6106_vm1, %v6105_v16  ;;  %5270 = vmatpush3.msra.mxu0 %v1095_v26  ;;  %s7358_s24 = sld [smem:[#allocation34_spill]]  ;;  %v4950_v45 = vld [vmem:[#allocation8] ss:$0 sm:$0xff]  ;;  %v4952_v56 = vld [vmem:[#allocation10] ss:$0 sm:$0xff]  ;;  %vm1193_vm2 = vcmask 64512  }
  0xd7   : > { %5271 = vmatprep.subr.mxu0 %v6105_v16  ;;  %s7359_s10 = sld [smem:[#allocation40_spill]]  ;;  %s6108_s18 = smov 112   ;;  %vm1843_vm3 = vcmask 130048   ;;  %vm1845_vm4 = vcmask 195584   ;;  %vm4398_vm5 = vcmask 523264  }
  0xd8   : > { %5272 = vmatpush3.msra.mxu0 %v1094_v27  ;;  %s7360_s5 = sld [smem:[#allocation36_spill]]  ;;  %s6109_s6 = smov 104  }
  0xd9   : > { %883 = vadd.xlane.f32.xlu0 %v882_v3  ;;  %v941_v17 = vld [vmem:[%s7356_s9 + $0x18] sm:$0xff]  ;;  %v940_v18 = vld [vmem:[%s7356_s9 + $0x10] sm:$0xff]  ;;  %v939_v19 = vld [vmem:[%s7356_s9 + $0x8] sm:$0xff]  ;;  %5273 = vmatprep.subr.mxu0 %v6105_v16  ;;  %s7361_s8 = sld [smem:[#allocation38_spill]]  ;;  %s6110_s12 = smov 8  }
  0xda   : > { %5248 = vmatpush3.msra.mxu1 %v941_v17  ;;  %v938_v20 = vld [vmem:[%s7356_s9] sm:$0xff]  ;;  %5274 = vmatpush3.msra.mxu0 %v1093_v28  ;;  %s6111_s25 = smov 16   ;;  %s6112_s4 = smov 24  }
  0xdb   : > { %5249 = vmatprep.subr.mxu1 %v6105_v16  ;;  %5275 = vmatprep.subr.mxu0 %v6105_v16  ;;  %v4948_v37 = vld [vmem:[%s7357_s27] ss:$0 sm:$0xff]  ;;  %s7362_s22 = sld [smem:[#allocation42_spill]]  ;;  %s7123_s15 = sshll.u32 %s6252_s23, 7 }
  0xdc   : > { %5250 = vmatpush3.msra.mxu1 %v940_v18  ;;  %5276 = vmatpush3.msra.mxu0 %v1092_v29  ;;  %v4949_v39 = vld [vmem:[%s7358_s24] ss:$0 sm:$0xff]  ;;  %s7365_s3 = sld [smem:[#allocation46_spill]] }
  0xdd   : > { %912 = vadd.xlane.f32.xlu0 %v911_v5  ;;  %5251 = vmatprep.subr.mxu1 %v6105_v16  ;;  %v1018_v44 = vld [vmem:[%s7359_s10 + $0x18] sm:$0xff]  ;;  %v1017_v46 = vld [vmem:[%s7359_s10 + $0x10] sm:$0xff]  ;;  %v1016_v47 = vld [vmem:[%s7359_s10 + $0x8] sm:$0xff]  ;;  %s7368_s2 = sld [smem:[#allocation48_spill]] }
  0xde   : > { %5252 = vmatpush3.msra.mxu1 %v939_v19  ;;  %5290 = vmatprep.subr.mxu0 %v6105_v16  ;;  %v4951_v49 = vld [vmem:[%s7360_s5] ss:$0 sm:$0xff] }
  0xdf   : > { %5253 = vmatprep.subr.mxu1 %v6105_v16  ;;  %v1015_v50 = vld [vmem:[%s7359_s10] sm:$0xff] }
  0xe0   : > { %5254 = vmatpush3.msra.mxu1 %v938_v20  ;;  %v4953_v58 = vld [vmem:[%s7361_s8] ss:$0 sm:$0xff] }
  0xe1   : > { %5258 = vmatprep.subr.mxu1 %v6105_v16 }
  0xe2   : > { %s7366_s21 = smov %s7365_s3 }
  0xe3   : > { %s7139_s19 = scalar_lea.hbm %s7368_s2, %s7123_s15 }
 0x15e   : > { %v854_v6 = vpop.xlane.xlu0 %853 }
 0x15f   : > { %v856_v7 = vmul.f32 0.03125, %v854_v6 }
 0x161   : > { %v857_v8 = vsub.f32 %v847_v0, %v856_v7 }
 0x162   : > { %v884_v9 = vpop.xlane.xlu0 %883 }
 0x163   : > { %v885_v10 = vmul.f32 0.03125, %v884_v9  ;;  %v858_v11 = vmul.f32 %v857_v8, %v857_v8 }
 0x165   : > { %v886_v12 = vsub.f32 %v848_v1, %v885_v10  ;;  %v859_v13 = vsel %vm851_vm0, %v858_v11, 0.0 }
 0x166   : > { %860 = vadd.xlane.f32.xlu1 %v859_v13  ;;  %v913_v21 = vpop.xlane.xlu0 %912 }
 0x167   : > { %v887_v14 = vmul.f32 %v886_v12, %v886_v12  ;;  %v914_v22 = vmul.f32 0.03125, %v913_v21 }
 0x169   : > { %v888_v15 = vsel %vm851_vm0, %v887_v14, 0.0  ;;  %v915_v23 = vsub.f32 %v6487_v4, %v914_v22 }
 0x16a   : > { %889 = vadd.xlane.f32.xlu1 %v888_v15 }
 0x16b   : > { %v916_v24 = vmul.f32 %v915_v23, %v915_v23 }
 0x16d   : > { %v917_v25 = vsel %vm851_vm0, %v916_v24, 0.0 }
 0x16e   : > { %918 = vadd.xlane.f32.xlu1 %v917_v25 }
 0x1ef   : > { %v861_v30 = vpop.xlane.xlu1 %860 }
 0x1f0   : > { %v862_v31 = vmul.f32 0.03125, %v861_v30 }
 0x1f2   : > { %v863_v32 = vadd.f32 1e-05, %v862_v31 }
 0x1f3   : > { %v890_v33 = vpop.xlane.xlu1 %889 }
 0x1f4   : > { %5708 = vrsqrt.f32 %v863_v32  ;;  %v891_v34 = vmul.f32 0.03125, %v890_v33 }
 0x1f6   : > { %v892_v35 = vadd.f32 1e-05, %v891_v34 }
 0x1f7   : > { %v919_v52 = vpop.xlane.xlu1 %918 }
 0x1f8   : > { %5710 = vrsqrt.f32 %v892_v35  ;;  %v920_v53 = vmul.f32 0.03125, %v919_v52 }
 0x1fa   : > { %v921_v54 = vadd.f32 1e-05, %v920_v53 }
 0x1fc   : > { %5712 = vrsqrt.f32 %v921_v54 }
 0x201   : > { %v5709_v36 = vpop.eup %5708 }
 0x202   : > { %v6536_v38 = vmul.f32 %v5709_v36, %v857_v8 }
 0x204   : > { %v872_v40 = vmul.f32 %v4948_v37, %v6536_v38 }
 0x205   : > { %v5711_v41 = vpop.eup %5710 }
 0x206   : > { %v6542_v42 = vmul.f32 %v5711_v41, %v886_v12  ;;  %v879_v43 = vadd.f32 %v4949_v39, %v872_v40 }
 0x208   : > { %5256 = vmatmul.mubr.msk.f32.vlgmr.msra.gmra.mxu1 %vm851_vm0, %v879_v43  ;;  %v901_v48 = vmul.f32 %v4950_v45, %v6542_v42 }
 0x209   : > { %5259 = vmatpush3.msra.mxu1 %v1018_v44  ;;  %5266 = vmatprep.mubr.msk.f32.mxu1 %vm6106_vm1, %v6105_v16  ;;  %v5713_v55 = vpop.eup %5712 }
 0x20a   : > { %5260 = vmatprep.subr.mxu1 %v6105_v16  ;;  %v908_v51 = vadd.f32 %v4951_v49, %v901_v48  ;;  %v923_v57 = vmul.f32 %v5713_v55, %v915_v23 }
 0x20b   : > { %5261 = vmatpush3.msra.mxu1 %v1017_v46 }
 0x20c   : > { %5262 = vmatprep.subr.mxu1 %v6105_v16  ;;  %v930_v59 = vmul.f32 %v4952_v56, %v923_v57 }
 0x20d   : > { %5263 = vmatpush3.msra.mxu1 %v1016_v47 }
 0x20e   : > { %5264 = vmatprep.subr.mxu1 %v6105_v16  ;;  %v937_v60 = vadd.f32 %v4953_v58, %v930_v59 }
 0x20f   : > { %5265 = vmatpush3.msra.mxu1 %v1015_v50 }
 0x210   : > { %5267 = vmatmul.mubr.msk.f32.vlgmr.msra.gmra.mxu1 %vm851_vm0, %v908_v51  ;;  %5280 = vmatprep.subr.mxu1 %v6105_v16 }
 0x211   : > { %5282 = vmatprep.mubr.msk.f32.mxu1 %vm6106_vm1, %v6105_v16  ;;  %5278 = vmatmul.mubr.msk.f32.vlgmr.msra.gmra.mxu0 %vm851_vm0, %v937_v60 }
 0x212   : > { %5292 = vmatprep.mubr.msk.f32.mxu0 %vm6106_vm1, %v6105_v16 }
 0x2c8   : > { %v1011_v61 = vpop.f32.mrf.mxu1 }
 0x2c9   : > { %1170 = vrot.lane.b32.xlu1 %v1011_v61, %s6107_s17 }
 0x2ca   : > { %v5257_v62 = vpop.f32.mrf.mxu1 }
 0x2d0   : > { %v1088_v63 = vpop.f32.mrf.mxu1 }
 0x2d1   : > { %5281 = vmatpush3.xpose.msk.msra.mxu1 %vm1193_vm2, %v1088_v63  ;;  %1177 = vrot.lane.b32.xlu0 %v1088_v63, %s6107_s17  ;;  %v6587_v1 = vpop.f32.mrf.mxu0 }
 0x2d2   : > { %1179 = vrot.lane.b32.xlu1 %v1088_v63, %s6108_s18  ;;  %v5268_v0 = vpop.f32.mrf.mxu1  ;;  %5285 = vmatprep.subr.mxu1 %v6105_v16 }
 0x2d3   : > { %v5279_v2 = vpop.f32.mrf.mxu0 }
 0x2d4   : > { %5283 = vmatmul.mubr.msk.f32.vlgmr.msra.gmra.mxu1 %vm1193_vm2, %v1011_v61  ;;  %v1850_v2 = vld [vmem:[#allocation11 + $0x18] sm:$0xff] }
 0x2d5   : > { %1172 = vrot.lane.b32.xlu0 %v1011_v61, %s6108_s18  ;;  %5287 = vmatprep.mubr.msk.f32.mxu1 %vm6106_vm1, %v6105_v16 }
 0x2d6   : > { %1181 = vrot.lane.b32.xlu1 %v1088_v63, %s6109_s6 }
 0x2da   : > { %1174 = vrot.lane.b32.xlu1 %v1011_v61, %s6109_s6 }
 0x33b   : > { %v1171_v3 = vpop.permute.xlu1 %1170 }
 0x343   : > { %v1178_v5 = vpop.permute.xlu0 %1177 }
 0x344   : > { %v1180_v6 = vpop.permute.xlu1 %1179  ;;  %5286 = vmatpush3.xpose.msk.msra.mxu1 %vm1193_vm2, %v1178_v5  ;;  %v1848_v5 = vld [vmem:[#allocation11 + $0x8] sm:$0xff] }
 0x345   : > { %5291 = vmatpush3.xpose.msk.msra.mxu0 %vm1193_vm2, %v1180_v6  ;;  %5295 = vmatprep.subr.mxu1 %v6105_v16  ;;  %v1847_v6 = vld [vmem:[#allocation11] sm:$0xff] }
 0x346   : > { %5300 = vmatprep.subr.mxu0 %v6105_v16 }
 0x347   : > { %5288 = vmatmul.mubr.msk.f32.vlgmr.msra.gmra.mxu1 %vm1193_vm2, %v1171_v3  ;;  %v1173_v7 = vpop.permute.xlu0 %1172  ;;  %v1849_v3 = vld [vmem:[#allocation11 + $0x10] sm:$0xff] }
 0x348   : > { %v1182_v8 = vpop.permute.xlu1 %1181  ;;  %5293 = vmatmul.mubr.msk.f32.vlgmr.msra.gmra.mxu0 %vm1193_vm2, %v1173_v7  ;;  %5297 = vmatprep.mubr.msk.f32.mxu1 %vm6106_vm1, %v6105_v16 }
 0x349   : > { %5296 = vmatpush3.xpose.msk.msra.mxu1 %vm1193_vm2, %v1182_v8  ;;  %5301 = vmatpush3.msra.mxu0 %v6587_v1 }
 0x34a   : > { %5302 = vmatprep.mubr.msk.f32.mxu0 %vm6106_vm1, %v6105_v16  ;;  %5310 = vmatprep.subr.mxu0 %v6105_v16 }
 0x34b   : > { %5305 = vmatprep.subr.mxu1 %v6105_v16 }
 0x34c   : > { %v1175_v9 = vpop.permute.xlu1 %1174 }
 0x34d   : > { %5298 = vmatmul.mubr.msk.f32.vlgmr.msra.gmra.mxu1 %vm1193_vm2, %v1175_v9 }
 0x34e   : > { %5307 = vmatprep.mubr.msk.f32.mxu1 %vm6106_vm1, %v6105_v16 }
 0x394   : > { %v1264_v10 = vpop.f32.mrf.mxu1 }
 0x395   : > { %v1490_v11 = vmul.f32 0.35355338, %v1264_v10 }
 0x396   : > { %v5284_v12 = vpop.f32.mrf.mxu1 }
 0x397   : > { %v1494_v13 = vsel %vm1193_vm2, %v1490_v11, -inf }
 0x398   : > { %1495 = vmax.xlane.f32.xlu0 %v1494_v13 }
 0x407   : > { %v1338_v14 = vpop.f32.mrf.mxu1 }
 0x408   : > { %v1491_v15 = vmul.f32 0.35355338, %v1338_v14  ;;  %v1412_v17 = vpop.f32.mrf.mxu0 }
 0x409   : > { %v1492_v18 = vmul.f32 0.35355338, %v1412_v17  ;;  %v5289_v19 = vpop.f32.mrf.mxu1 }
 0x40a   : > { %v5294_v20 = vpop.f32.mrf.mxu0  ;;  %v1497_v21 = vsel %vm1193_vm2, %v1491_v15, -inf  ;;  %v4989_v19 = vld [vmem:[%s7359_s10 + $0x38] sm:$0xff] }
 0x40b   : > { %1498 = vmax.xlane.f32.xlu1 %v1497_v21  ;;  %v1500_v22 = vsel %vm1193_vm2, %v1492_v18, -inf  ;;  %v4976_v21 = vld [vmem:[#allocation8 + $0x1] ss:$0 sm:$0xff] }
 0x40c   : > { %1501 = vmax.xlane.f32.xlu0 %v1500_v22  ;;  %v4988_v22 = vld [vmem:[%s7359_s10 + $0x30] sm:$0xff] }
 0x40d   : > { %v1486_v23 = vpop.f32.mrf.mxu1 }
 0x40e   : > { %v1493_v24 = vmul.f32 0.35355338, %v1486_v23  ;;  %v4987_v23 = vld [vmem:[%s7359_s10 + $0x28] sm:$0xff] }
 0x40f   : > { %v5299_v25 = vpop.f32.mrf.mxu1 }
 0x410   : > { %v1503_v26 = vsel %vm1193_vm2, %v1493_v24, -inf  ;;  %v4977_v25 = vld [vmem:[%s7360_s5 + $0x1] ss:$0 sm:$0xff] }
 0x411   : > { %1504 = vmax.xlane.f32.xlu0 %v1503_v26  ;;  %v4986_v26 = vld [vmem:[%s7359_s10 + $0x20] sm:$0xff] }
 0x421   : > { %v1496_v27 = vpop.xlane.xlu0 %1495 }
 0x422   : > { %v1506_v28 = vsub.f32 %v1490_v11, %v1496_v27 }
 0x424   : > { %v1510_v29 = vmul.f32 1.442695, %v1506_v28  ;;  %v4969_v28 = vld [vmem:[%s7255_s13] ss:$0 sm:$0xff] }
 0x426   : > { %5714 = vpow2.f32 %v1510_v29 }
 0x433   : > { %v5715_v30 = vpop.eup %5714 }
 0x434   : > { %v1518_v31 = vsel %vm1193_vm2, %v5715_v30, 0.0 }
 0x435   : > { %1519 = vadd.xlane.f32.xlu0 %v1518_v31 }
 0x494   : > { %v1499_v32 = vpop.xlane.xlu1 %1498 }
 0x495   : > { %v1507_v33 = vsub.f32 %v1491_v15, %v1499_v32  ;;  %v1502_v34 = vpop.xlane.xlu0 %1501 }
 0x496   : > { %v1508_v35 = vsub.f32 %v1492_v18, %v1502_v34 }
 0x497   : > { %v1512_v36 = vmul.f32 1.442695, %v1507_v33 }
 0x498   : > { %v1514_v37 = vmul.f32 1.442695, %v1508_v35 }
 0x499   : > { %5716 = vpow2.f32 %v1512_v36 }
 0x49a   : > { %5718 = vpow2.f32 %v1514_v37  ;;  %v1505_v44 = vpop.xlane.xlu0 %1504 }
 0x49b   : > { %v1509_v46 = vsub.f32 %v1493_v24, %v1505_v44  ;;  %v1973_v24 = vmul.f32 %v4976_v21, %v6542_v42  ;;  %v4982_v44 = vld [vmem:[%s7356_s9 + $0x28] sm:$0xff] }
 0x49d   : > { %v1516_v47 = vmul.f32 1.442695, %v1509_v46  ;;  %v1980_v27 = vadd.f32 %v4977_v25, %v1973_v24 }
 0x4a6   : > { %v5717_v39 = vpop.eup %5716 }
 0x4a7   : > { %v5719_v40 = vpop.eup %5718  ;;  %v1521_v41 = vsel %vm1193_vm2, %v5717_v39, 0.0 }
 0x4a8   : > { %1522 = vadd.xlane.f32.xlu1 %v1521_v41  ;;  %v1524_v43 = vsel %vm1193_vm2, %v5719_v40, 0.0  ;;  %v4984_v41 = vld [vmem:[%s7356_s9 + $0x38] sm:$0xff] }
 0x4a9   : > { %1525 = vadd.xlane.f32.xlu0 %v1524_v43  ;;  %v4983_v43 = vld [vmem:[%s7356_s9 + $0x30] sm:$0xff] }
 0x4b9   : > { %1187 = vrot.lane.b32.xlu1 %v6587_v1, %s6108_s18 }
 0x4be   : > { %v1520_v45 = vpop.xlane.xlu0 %1519 }
 0x4bf   : > { %5720 = vrcp.f32 %v1520_v45  ;;  %1184 = vrot.lane.b32.xlu0 %v6587_v1, %s6107_s17  ;;  %v4981_v45 = vld [vmem:[%s7356_s9 + $0x20] sm:$0xff] }
 0x4c0   : > { %5722 = vpow2.f32 %v1516_v47 }
 0x4cc   : > { %v5721_v48 = vpop.eup %5720 }
 0x4cd   : > { %v1534_v49 = vmul.f32 %v5721_v48, %v5715_v30  ;;  %v5723_v50 = vpop.eup %5722 }
 0x4ce   : > { %v1527_v51 = vsel %vm1193_vm2, %v5723_v50, 0.0 }
 0x4cf   : > { %5303 = vmatmul.mubr.msk.f32.vlgmr.msra.gmra.mxu0 %vm1193_vm2, %v1534_v49 }
 0x4d0   : > { %5312 = vmatprep.mubr.msk.f32.mxu0 %vm6106_vm1, %v6105_v16 }
 0x4dd   : > { %1528 = vadd.xlane.f32.xlu1 %v1527_v51 }
 0x4ee   : > { %1190 = vrot.lane.b32.xlu1 %v6587_v1, %s6109_s6 }
 0x531   : > { %v1523_v52 = vpop.xlane.xlu1 %1522 }
 0x532   : > { %5724 = vrcp.f32 %v1523_v52  ;;  %v1526_v53 = vpop.xlane.xlu0 %1525  ;;  %v4974_v52 = vld [vmem:[%s7358_s24 + $0x1] ss:$0 sm:$0xff] }
 0x533   : > { %5726 = vrcp.f32 %v1526_v53 }
 0x535   : > { %v1188_v54 = vpop.permute.xlu1 %1187 }
 0x536   : > { %5311 = vmatpush3.msra.mxu0 %v1188_v54  ;;  %v1185_v55 = vpop.permute.xlu0 %1184 }
 0x537   : > { %5306 = vmatpush3.msra.mxu1 %v1185_v55  ;;  %5320 = vmatprep.subr.mxu0 %v6105_v16  ;;  %v4994_v55 = vld [vmem:[%s7253_s11 + $0x38] sm:$0xff] }
 0x538   : > { %5315 = vmatprep.subr.mxu1 %v6105_v16 }
 0x53f   : > { %v5725_v56 = vpop.eup %5724 }
 0x540   : > { %v5727_v57 = vpop.eup %5726  ;;  %v1535_v58 = vmul.f32 %v5725_v56, %v5717_v39  ;;  %v4979_v56 = vld [vmem:[#allocation10 + $0x1] ss:$0 sm:$0xff] }
 0x541   : > { %v1536_v59 = vmul.f32 %v5727_v57, %v5719_v40  ;;  %v4993_v57 = vld [vmem:[%s7253_s11 + $0x30] sm:$0xff] }
 0x542   : > { %5308 = vmatmul.mubr.msk.f32.vlgmr.msra.gmra.mxu1 %vm1193_vm2, %v1535_v58  ;;  %v1991_v58 = vmul.f32 %v4979_v56, %v6536_v38 }
 0x543   : > { %5313 = vmatmul.mubr.msk.f32.vlgmr.msra.gmra.mxu0 %vm1193_vm2, %v1536_v59  ;;  %5317 = vmatprep.mubr.msk.f32.mxu1 %vm6106_vm1, %v6105_v16  ;;  %v4992_v59 = vld [vmem:[%s7253_s11 + $0x28] sm:$0xff] }
 0x544   : > { %5328 = vmatprep.mubr.msk.f32.mxu0 %vm6106_vm1, %v6105_v16  ;;  %5321 = vmatpush3.msra.mxu0 %v1850_v2 }
 0x545   : > { %5322 = vmatprep.subr.mxu0 %v6105_v16 }
 0x546   : > { %5323 = vmatpush3.msra.mxu0 %v1849_v3 }
 0x547   : > { %5324 = vmatprep.subr.mxu0 %v6105_v16 }
 0x548   : > { %5325 = vmatpush3.msra.mxu0 %v1848_v5 }
 0x549   : > { %5326 = vmatprep.subr.mxu0 %v6105_v16 }
 0x54a   : > { %5327 = vmatpush3.msra.mxu0 %v1847_v6 }
 0x54b   : > { %5342 = vmatprep.subr.mxu0 %v6105_v16 }
 0x566   : > { %v1529_v60 = vpop.xlane.xlu1 %1528 }
 0x567   : > { %5728 = vrcp.f32 %v1529_v60  ;;  %v4980_v60 = vld [vmem:[%s7361_s8 + $0x1] ss:$0 sm:$0xff] }
 0x568   : > { %v1998_v38 = vadd.f32 %v4980_v60, %v1991_v58 }
 0x56a   : > { %v1191_v61 = vpop.permute.xlu1 %1190 }
 0x56b   : > { %5316 = vmatpush3.msra.mxu1 %v1191_v61  ;;  %v4991_v61 = vld [vmem:[%s7253_s11 + $0x20] sm:$0xff] }
 0x56c   : > { %5331 = vmatprep.subr.mxu1 %v6105_v16 }
 0x574   : > { %v5729_v62 = vpop.eup %5728 }
 0x575   : > { %v1537_v63 = vmul.f32 %v5729_v62, %v5723_v50  ;;  %v4973_v50 = vld [vmem:[%s7357_s27 + $0x1] ss:$0 sm:$0xff] }
 0x577   : > { %5318 = vmatmul.mubr.msk.f32.vlgmr.msra.gmra.mxu1 %vm1193_vm2, %v1537_v63 }
 0x578   : > { %5339 = vmatprep.mubr.msk.f32.mxu1 %vm6106_vm1, %v6105_v16  ;;  %5332 = vmatpush3.msra.mxu1 %v4984_v41 }
 0x579   : > { %5333 = vmatprep.subr.mxu1 %v6105_v16 }
 0x57a   : > { %5334 = vmatpush3.msra.mxu1 %v4983_v43 }
 0x57b   : > { %5335 = vmatprep.subr.mxu1 %v6105_v16 }
 0x57c   : > { %5336 = vmatpush3.msra.mxu1 %v4982_v44 }
 0x57d   : > { %5337 = vmatprep.subr.mxu1 %v6105_v16 }
 0x57e   : > { %5338 = vmatpush3.msra.mxu1 %v4981_v45 }
 0x57f   : > { %5353 = vmatprep.subr.mxu1 %v6105_v16 }
 0x58f   : > { %v1607_v0 = vpop.f32.mrf.mxu0 }
 0x591   : > { %v5304_v1 = vpop.f32.mrf.mxu0 }
 0x602   : > { %v1680_v7 = vpop.f32.mrf.mxu1 }
 0x603   : > { %v1753_v8 = vpop.f32.mrf.mxu0  ;;  %1831 = vrot.lane.b32.xlu1 %v1680_v7, %s6110_s12 }
 0x604   : > { %1835 = vrot.lane.b32.xlu0 %v1753_v8, %s6111_s25  ;;  %v5309_v9 = vpop.f32.mrf.mxu1 }
 0x605   : > { %v5314_v10 = vpop.f32.mrf.mxu0 }
 0x637   : > { %v1826_v11 = vpop.f32.mrf.mxu1 }
 0x638   : > { %1839 = vrot.lane.b32.xlu1 %v1826_v11, %s6112_s4 }
 0x639   : > { %v5319_v12 = vpop.f32.mrf.mxu1 }
 0x675   : > { %v1832_v13 = vpop.permute.xlu1 %1831 }
 0x676   : > { %v1842_v14 = vsel %vm1193_vm2, %v1607_v0, %v1832_v13  ;;  %v1836_v15 = vpop.permute.xlu0 %1835 }
 0x677   : > { %v1844_v17 = vsel %vm1843_vm3, %v1842_v14, %v1836_v15 }
 0x6aa   : > { %v1840_v18 = vpop.permute.xlu1 %1839 }
 0x6ab   : > { %v1846_v20 = vsel %vm1845_vm4, %v1844_v17, %v1840_v18 }
 0x6ac   : > { %5329 = vmatmul.mubr.msk.f32.vlgmr.msra.gmra.mxu0 %vm851_vm0, %v1846_v20 }
 0x6ad   : > { %5343 = vmatpush3.msra.mxu0 %v4989_v19  ;;  %5350 = vmatprep.mubr.msk.f32.mxu0 %vm6106_vm1, %v6105_v16 }
 0x6ae   : > { %5344 = vmatprep.subr.mxu0 %v6105_v16 }
 0x6af   : > { %5345 = vmatpush3.msra.mxu0 %v4988_v22 }
 0x6b0   : > { %5346 = vmatprep.subr.mxu0 %v6105_v16 }
 0x6b1   : > { %5347 = vmatpush3.msra.mxu0 %v4987_v23 }
 0x6b2   : > { %5348 = vmatprep.subr.mxu0 %v6105_v16 }
 0x6b3   : > { %5349 = vmatpush3.msra.mxu0 %v4986_v26 }
 0x6b4   : > { %5351 = vmatmul.mubr.msk.f32.vlgmr.msra.gmra.mxu0 %vm851_vm0, %v1980_v27  ;;  %5364 = vmatprep.subr.mxu0 %v6105_v16 }
 0x6b5   : > { %5366 = vmatprep.mubr.msk.f32.mxu0 %vm6106_vm1, %v6105_v16 }
 0x76c   : > { %v1927_v29 = vpop.f32.mrf.mxu0 }
 0x76d   : > { %v1928_v30 = vadd.f32 %v4969_v28, %v1927_v29 }
 0x76e   : > { %v5330_v31 = vpop.f32.mrf.mxu0 }
 0x76f   : > { %v6675_v32 = vadd.f32 %v1928_v30, %v6487_v4 }
 0x771   : > { %v1936_v33 = vsel %vm851_vm0, %v6675_v32, 0.0 }
 0x772   : > { %1937 = vadd.xlane.f32.xlu0 %v1936_v33 }
 0x774   : > { %v2151_v34 = vpop.f32.mrf.mxu0 }
 0x775   : > { %5365 = vmatpush3.xpose.msk.msra.mxu0 %vm1193_vm2, %v2151_v34 }
 0x776   : > { %v5352_v35 = vpop.f32.mrf.mxu0  ;;  %5374 = vmatprep.subr.mxu0 %v6105_v16 }
 0x788   : > { %2241 = vrot.lane.b32.xlu0 %v2151_v34, %s6107_s17 }
 0x78c   : > { %2243 = vrot.lane.b32.xlu0 %v2151_v34, %s6108_s18 }
 0x7fb   : > { %v6683_v36 = vpop.xlane.xlu0 %1937 }
 0x7fc   : > { %v1939_v37 = vmul.f32 0.03125, %v6683_v36 }
 0x7fe   : > { %v1940_v4 = vsub.f32 %v6675_v32, %v1939_v37 }
 0x7ff   : > { %v2242_v62 = vpop.permute.xlu0 %2241 }
 0x800   : > { %v1941_v39 = vmul.f32 %v1940_v4, %v1940_v4 }
 0x802   : > { %v1942_v40 = vsel %vm851_vm0, %v1941_v39, 0.0 }
 0x803   : > { %1943 = vadd.xlane.f32.xlu1 %v1942_v40  ;;  %v2244_v0 = vpop.permute.xlu0 %2243 }
 0x814   : > { %2245 = vrot.lane.b32.xlu1 %v2151_v34, %s6109_s6 }
 0x88c   : > { %v1944_v46 = vpop.xlane.xlu1 %1943 }
 0x88d   : > { %v1945_v47 = vmul.f32 0.03125, %v1944_v46 }
 0x88f   : > { %v1946_v48 = vadd.f32 1e-05, %v1945_v47 }
 0x890   : > { %v2246_v5 = vpop.permute.xlu1 %2245 }
 0x891   : > { %5730 = vrsqrt.f32 %v1946_v48 }
 0x89e   : > { %v5731_v49 = vpop.eup %5730 }
 0x89f   : > { %v6708_v51 = vmul.f32 %v5731_v49, %v1940_v4 }
 0x8a1   : > { %v1955_v53 = vmul.f32 %v4973_v50, %v6708_v51 }
 0x8a3   : > { %v1962_v54 = vadd.f32 %v4974_v52, %v1955_v53 }
 0x8a5   : > { %5340 = vmatmul.mubr.msk.f32.vlgmr.msra.gmra.mxu1 %vm851_vm0, %v1962_v54 }
 0x8a6   : > { %5354 = vmatpush3.msra.mxu1 %v4994_v55  ;;  %5361 = vmatprep.mubr.msk.f32.mxu1 %vm6106_vm1, %v6105_v16 }
 0x8a7   : > { %5355 = vmatprep.subr.mxu1 %v6105_v16 }
 0x8a8   : > { %5356 = vmatpush3.msra.mxu1 %v4993_v57 }
 0x8a9   : > { %5357 = vmatprep.subr.mxu1 %v6105_v16 }
 0x8aa   : > { %5358 = vmatpush3.msra.mxu1 %v4992_v59 }
 0x8ab   : > { %5359 = vmatprep.subr.mxu1 %v6105_v16 }
 0x8ac   : > { %5360 = vmatpush3.msra.mxu1 %v4991_v61 }
 0x8ad   : > { %5362 = vmatmul.mubr.msk.f32.vlgmr.msra.gmra.mxu1 %vm851_vm0, %v1998_v38  ;;  %5369 = vmatprep.subr.mxu1 %v6105_v16 }
 0x8ae   : > { %5370 = vmatpush3.xpose.msk.msra.mxu1 %vm1193_vm2, %v2242_v62  ;;  %5371 = vmatprep.mubr.msk.f32.mxu1 %vm6106_vm1, %v6105_v16 }
 0x8af   : > { %5379 = vmatprep.subr.mxu1 %v6105_v16 }
 0x965   : > { %v2073_v63 = vpop.f32.mrf.mxu1 }
 0x966   : > { %2234 = vrot.lane.b32.xlu1 %v2073_v63, %s6107_s17  ;;  %2236 = vrot.lane.b32.xlu0 %v2073_v63, %s6108_s18 }
 0x967   : > { %5367 = vmatmul.mubr.msk.f32.vlgmr.msra.gmra.mxu0 %vm1193_vm2, %v2073_v63  ;;  %v5341_v1 = vpop.f32.mrf.mxu1 }
 0x968   : > { %5375 = vmatpush3.xpose.msk.msra.mxu0 %vm1193_vm2, %v2244_v0  ;;  %5376 = vmatprep.mubr.msk.f32.mxu0 %vm6106_vm1, %v6105_v16  ;;  %v5024_v0 = vld [vmem:[%s7356_s9 + $0x58] sm:$0xff]  ;;  %v5013_v1 = vld [vmem:[%s7357_s27 + $0x2] ss:$0 sm:$0xff] }
 0x969   : > { %5384 = vmatprep.subr.mxu0 %v6105_v16 }
 0x96a   : > { %2238 = vrot.lane.b32.xlu1 %v2073_v63, %s6109_s6 }
 0x96d   : > { %v6750_v2 = vpop.f32.mrf.mxu1 }
 0x96f   : > { %v5363_v3 = vpop.f32.mrf.mxu1 }
 0x970   : > { %v5022_v3 = vld [vmem:[%s7356_s9 + $0x48] sm:$0xff] }
 0x9d8   : > { %v2235_v6 = vpop.permute.xlu1 %2234  ;;  %v2237_v7 = vpop.permute.xlu0 %2236 }
 0x9d9   : > { %5372 = vmatmul.mubr.msk.f32.vlgmr.msra.gmra.mxu1 %vm1193_vm2, %v2235_v6  ;;  %5377 = vmatmul.mubr.msk.f32.vlgmr.msra.gmra.mxu0 %vm1193_vm2, %v2237_v7  ;;  %v5014_v6 = vld [vmem:[%s7358_s24 + $0x2] ss:$0 sm:$0xff] }
 0x9da   : > { %5380 = vmatpush3.xpose.msk.msra.mxu1 %vm1193_vm2, %v2246_v5  ;;  %5385 = vmatpush3.msra.mxu0 %v6750_v2  ;;  %v3005_v5 = vmul.f32 %v5013_v1, %v6708_v51  ;;  %v5021_v7 = vld [vmem:[%s7356_s9 + $0x40] sm:$0xff]  ;;  %v5019_v51 = vld [vmem:[#allocation10 + $0x2] ss:$0 sm:$0xff] }
 0x9db   : > { %5381 = vmatprep.mubr.msk.f32.mxu1 %vm6106_vm1, %v6105_v16  ;;  %5386 = vmatprep.mubr.msk.f32.mxu0 %vm6106_vm1, %v6105_v16 }
 0x9dc   : > { %v2239_v8 = vpop.permute.xlu1 %2238  ;;  %5389 = vmatprep.subr.mxu1 %v6105_v16  ;;  %5394 = vmatprep.subr.mxu0 %v6105_v16 }
 0x9dd   : > { %5382 = vmatmul.mubr.msk.f32.vlgmr.msra.gmra.mxu1 %vm1193_vm2, %v2239_v8  ;;  %v3012_v8 = vadd.f32 %v5014_v6, %v3005_v5 }
 0x9de   : > { %5391 = vmatprep.mubr.msk.f32.mxu1 %vm6106_vm1, %v6105_v16 }
 0xa27   : > { %v2327_v9 = vpop.f32.mrf.mxu0 }
 0xa28   : > { %v2553_v10 = vmul.f32 0.35355338, %v2327_v9  ;;  %v5034_v9 = vld [vmem:[%s7253_s11 + $0x58] sm:$0xff] }
 0xa29   : > { %v5368_v11 = vpop.f32.mrf.mxu0 }
 0xa2a   : > { %v2557_v12 = vsel %vm1193_vm2, %v2553_v10, -inf  ;;  %v5032_v11 = vld [vmem:[%s7253_s11 + $0x48] sm:$0xff] }
 0xa2b   : > { %2558 = vmax.xlane.f32.xlu0 %v2557_v12  ;;  %v3054_v12 = vmul.f32 %v5019_v51, %v6542_v42 }
 0xa99   : > { %v2401_v13 = vpop.f32.mrf.mxu1  ;;  %v2475_v14 = vpop.f32.mrf.mxu0 }
 0xa9a   : > { %v2554_v15 = vmul.f32 0.35355338, %v2401_v13  ;;  %v2555_v17 = vmul.f32 0.35355338, %v2475_v14  ;;  %v5020_v13 = vld [vmem:[%s7361_s8 + $0x2] ss:$0 sm:$0xff] }
 0xa9b   : > { %v5373_v18 = vpop.f32.mrf.mxu1  ;;  %v5378_v19 = vpop.f32.mrf.mxu0  ;;  %v5031_v14 = vld [vmem:[%s7253_s11 + $0x40] sm:$0xff] }
 0xa9c   : > { %v2560_v20 = vsel %vm1193_vm2, %v2554_v15, -inf  ;;  %v2563_v21 = vsel %vm1193_vm2, %v2555_v17, -inf  ;;  %v2912_v18 = vld [vmem:[#allocation11 + $0x38] sm:$0xff]  ;;  %v2911_v19 = vld [vmem:[#allocation11 + $0x30] sm:$0xff] }
 0xa9d   : > { %2561 = vmax.xlane.f32.xlu1 %v2560_v20  ;;  %v2549_v22 = vpop.f32.mrf.mxu1  ;;  %2564 = vmax.xlane.f32.xlu0 %v2563_v21  ;;  %v2910_v20 = vld [vmem:[#allocation11 + $0x28] sm:$0xff] }
 0xa9e   : > { %v2556_v23 = vmul.f32 0.35355338, %v2549_v22 }
 0xa9f   : > { %v5383_v24 = vpop.f32.mrf.mxu1 }
 0xaa0   : > { %v2566_v25 = vsel %vm1193_vm2, %v2556_v23, -inf }
 0xaa1   : > { %2567 = vmax.xlane.f32.xlu0 %v2566_v25  ;;  %v2909_v25 = vld [vmem:[#allocation11 + $0x20] sm:$0xff] }
 0xab4   : > { %v2559_v26 = vpop.xlane.xlu0 %2558 }
 0xab5   : > { %v2569_v27 = vsub.f32 %v2553_v10, %v2559_v26  ;;  %v5033_v10 = vld [vmem:[%s7253_s11 + $0x50] sm:$0xff] }
 0xab7   : > { %v2573_v28 = vmul.f32 1.442695, %v2569_v27 }
 0xab9   : > { %5732 = vpow2.f32 %v2573_v28 }
 0xac6   : > { %v5733_v29 = vpop.eup %5732 }
 0xac7   : > { %v2581_v30 = vsel %vm1193_vm2, %v5733_v29, 0.0 }
 0xac8   : > { %2582 = vadd.xlane.f32.xlu0 %v2581_v30 }
 0xb26   : > { %v2562_v31 = vpop.xlane.xlu1 %2561  ;;  %v2565_v33 = vpop.xlane.xlu0 %2564 }
 0xb27   : > { %v2570_v34 = vsub.f32 %v2554_v15, %v2562_v31  ;;  %v2571_v35 = vsub.f32 %v2555_v17, %v2565_v33  ;;  %v3061_v15 = vadd.f32 %v5020_v13, %v3054_v12 }
 0xb29   : > { %v2575_v37 = vmul.f32 1.442695, %v2570_v34  ;;  %v2577_v4 = vmul.f32 1.442695, %v2571_v35 }
 0xb2a   : > { %v2568_v44 = vpop.xlane.xlu0 %2567 }
 0xb2b   : > { %5734 = vpow2.f32 %v2575_v37  ;;  %v2572_v46 = vsub.f32 %v2556_v23, %v2568_v44 }
 0xb2c   : > { %5736 = vpow2.f32 %v2577_v4 }
 0xb2d   : > { %v2579_v47 = vmul.f32 1.442695, %v2572_v46 }
 0xb38   : > { %v5735_v39 = vpop.eup %5734 }
 0xb39   : > { %v5737_v40 = vpop.eup %5736  ;;  %v2584_v41 = vsel %vm1193_vm2, %v5735_v39, 0.0 }
 0xb3a   : > { %2585 = vadd.xlane.f32.xlu1 %v2584_v41  ;;  %v2587_v43 = vsel %vm1193_vm2, %v5737_v40, 0.0 }
 0xb3b   : > { %2588 = vadd.xlane.f32.xlu0 %v2587_v43 }
 0xb4b   : > { %2251 = vrot.lane.b32.xlu1 %v6750_v2, %s6108_s18 }
 0xb51   : > { %2248 = vrot.lane.b32.xlu0 %v6750_v2, %s6107_s17  ;;  %v2583_v45 = vpop.xlane.xlu0 %2582 }
 0xb52   : > { %5738 = vrcp.f32 %v2583_v45  ;;  %v5770_v45 = vld [vmem:[%s740_s20] sm:$0xff]  ;;  %s7370_s20 = sand.u32 1, %s6252_s23  }
 0xb53   : > { %5740 = vpow2.f32 %v2579_v47  ;;  %s7155_s0 = scalar_lea.sflag [#allocation16], %s7370_s20 }
 0xb5f   : > { %v5739_v48 = vpop.eup %5738 }
 0xb60   : > { %v2597_v49 = vmul.f32 %v5739_v48, %v5733_v29  ;;  %v5741_v50 = vpop.eup %5740 }
 0xb61   : > { %v2590_v52 = vsel %vm1193_vm2, %v5741_v50, 0.0 }
 0xb62   : > { %5387 = vmatmul.mubr.msk.f32.vlgmr.msra.gmra.mxu0 %vm1193_vm2, %v2597_v49 }
 0xb63   : > { %5396 = vmatprep.mubr.msk.f32.mxu0 %vm6106_vm1, %v6105_v16 }
 0xb6f   : > { %2591 = vadd.xlane.f32.xlu1 %v2590_v52 }
 0xb80   : > { %2254 = vrot.lane.b32.xlu1 %v6750_v2, %s6109_s6  ;;  %v5023_v2 = vld [vmem:[%s7356_s9 + $0x50] sm:$0xff] }
 0xbc3   : > { %v2586_v53 = vpop.xlane.xlu1 %2585 }
 0xbc4   : > { %5742 = vrcp.f32 %v2586_v53  ;;  %v2589_v54 = vpop.xlane.xlu0 %2588 }
 0xbc5   : > { %5744 = vrcp.f32 %v2589_v54  ;;  %v5029_v54 = vld [vmem:[%s7359_s10 + $0x58] sm:$0xff] }
 0xbc7   : > { %v2252_v55 = vpop.permute.xlu1 %2251 }
 0xbc8   : > { %v2249_v56 = vpop.permute.xlu0 %2248  ;;  %5395 = vmatpush3.msra.mxu0 %v2252_v55  ;;  %v5028_v55 = vld [vmem:[%s7359_s10 + $0x50] sm:$0xff] }
 0xbc9   : > { %5390 = vmatpush3.msra.mxu1 %v2249_v56  ;;  %5404 = vmatprep.subr.mxu0 %v6105_v16  ;;  %v5027_v56 = vld [vmem:[%s7359_s10 + $0x48] sm:$0xff] }
 0xbca   : > { %5399 = vmatprep.subr.mxu1 %v6105_v16 }
 0xbd1   : > { %v5743_v57 = vpop.eup %5742 }
 0xbd2   : > { %v5745_v58 = vpop.eup %5744  ;;  %v2598_v59 = vmul.f32 %v5743_v57, %v5735_v39  ;;  %v5026_v57 = vld [vmem:[%s7359_s10 + $0x40] sm:$0xff] }
 0xbd3   : > { %v2599_v60 = vmul.f32 %v5745_v58, %v5737_v40  ;;  %v5009_v40 = vld [vmem:[%s7255_s13 + $0x1] ss:$0 sm:$0xff] }
 0xbd4   : > { %5392 = vmatmul.mubr.msk.f32.vlgmr.msra.gmra.mxu1 %vm1193_vm2, %v2598_v59 }
 0xbd5   : > { %5397 = vmatmul.mubr.msk.f32.vlgmr.msra.gmra.mxu0 %vm1193_vm2, %v2599_v60  ;;  %5401 = vmatprep.mubr.msk.f32.mxu1 %vm6106_vm1, %v6105_v16 }
 0xbd6   : > { %5412 = vmatprep.mubr.msk.f32.mxu0 %vm6106_vm1, %v6105_v16  ;;  %5405 = vmatpush3.msra.mxu0 %v2912_v18 }
 0xbd7   : > { %5406 = vmatprep.subr.mxu0 %v6105_v16 }
 0xbd8   : > { %5407 = vmatpush3.msra.mxu0 %v2911_v19 }
 0xbd9   : > { %5408 = vmatprep.subr.mxu0 %v6105_v16 }
 0xbda   : > { %5409 = vmatpush3.msra.mxu0 %v2910_v20 }
 0xbdb   : > { %5410 = vmatprep.subr.mxu0 %v6105_v16 }
 0xbdc   : > { %5411 = vmatpush3.msra.mxu0 %v2909_v25 }
 0xbdd   : > { %5426 = vmatprep.subr.mxu0 %v6105_v16 }
 0xbf8   : > { %v2592_v61 = vpop.xlane.xlu1 %2591 }
 0xbf9   : > { %5746 = vrcp.f32 %v2592_v61 }
 0xbfc   : > { %v2255_v38 = vpop.permute.xlu1 %2254 }
 0xbfd   : > { %5400 = vmatpush3.msra.mxu1 %v2255_v38  ;;  %v5016_v38 = vld [vmem:[#allocation8 + $0x2] ss:$0 sm:$0xff] }
 0xbfe   : > { %5415 = vmatprep.subr.mxu1 %v6105_v16 }
 0xc06   : > { %v5747_v62 = vpop.eup %5746 }
 0xc07   : > { %v2600_v63 = vmul.f32 %v5747_v62, %v5741_v50 }
 0xc09   : > { %5402 = vmatmul.mubr.msk.f32.vlgmr.msra.gmra.mxu1 %vm1193_vm2, %v2600_v63  ;;  %v5017_v63 = vld [vmem:[%s7360_s5 + $0x2] ss:$0 sm:$0xff] }
 0xc0a   : > { %5416 = vmatpush3.msra.mxu1 %v5024_v0  ;;  %5423 = vmatprep.mubr.msk.f32.mxu1 %vm6106_vm1, %v6105_v16 }
 0xc0b   : > { %5417 = vmatprep.subr.mxu1 %v6105_v16 }
 0xc0c   : > { %5418 = vmatpush3.msra.mxu1 %v5023_v2 }
 0xc0d   : > { %5419 = vmatprep.subr.mxu1 %v6105_v16 }
 0xc0e   : > { %5420 = vmatpush3.msra.mxu1 %v5022_v3 }
 0xc0f   : > { %5421 = vmatprep.subr.mxu1 %v6105_v16 }
 0xc10   : > { %5422 = vmatpush3.msra.mxu1 %v5021_v7 }
 0xc11   : > { %5424 = vmatmul.mubr.msk.f32.vlgmr.msra.gmra.mxu1 %vm851_vm0, %v3012_v8  ;;  %5437 = vmatprep.subr.mxu1 %v6105_v16 }
 0xc12   : > { %5438 = vmatpush3.msra.mxu1 %v5034_v9  ;;  %5445 = vmatprep.mubr.msk.f32.mxu1 %vm6106_vm1, %v6105_v16 }
 0xc13   : > { %5439 = vmatprep.subr.mxu1 %v6105_v16 }
 0xc14   : > { %5440 = vmatpush3.msra.mxu1 %v5033_v10 }
 0xc15   : > { %5441 = vmatprep.subr.mxu1 %v6105_v16 }
 0xc16   : > { %5442 = vmatpush3.msra.mxu1 %v5032_v11 }
 0xc17   : > { %5443 = vmatprep.subr.mxu1 %v6105_v16 }
 0xc18   : > { %5444 = vmatpush3.msra.mxu1 %v5031_v14 }
 0xc19   : > { %5446 = vmatmul.mubr.msk.f32.vlgmr.msra.gmra.mxu1 %vm851_vm0, %v3061_v15  ;;  %5453 = vmatprep.subr.mxu1 %v6105_v16 }
 0xc1a   : > { %5455 = vmatprep.mubr.msk.f32.mxu1 %vm6106_vm1, %v6105_v16 }
 0xc22   : > { %v2670_v42 = vpop.f32.mrf.mxu0 }
 0xc24   : > { %v5388_v17 = vpop.f32.mrf.mxu0 }
 0xc94   : > { %v2743_v21 = vpop.f32.mrf.mxu1 }
 0xc95   : > { %v2816_v22 = vpop.f32.mrf.mxu0  ;;  %2894 = vrot.lane.b32.xlu1 %v2743_v21, %s6110_s12 }
 0xc96   : > { %2898 = vrot.lane.b32.xlu0 %v2816_v22, %s6111_s25  ;;  %v5393_v23 = vpop.f32.mrf.mxu1 }
 0xc97   : > { %v5398_v24 = vpop.f32.mrf.mxu0 }
 0xcc9   : > { %v2889_v26 = vpop.f32.mrf.mxu1 }
 0xcca   : > { %2902 = vrot.lane.b32.xlu1 %v2889_v26, %s6112_s4 }
 0xccb   : > { %v5403_v27 = vpop.f32.mrf.mxu1 }
 0xcd1   : > { %v3136_v28 = vpop.f32.mrf.mxu1 }
 0xcd3   : > { %v5425_v29 = vpop.f32.mrf.mxu1 }
 0xcd9   : > { %v6850_v30 = vpop.f32.mrf.mxu1 }
 0xcdb   : > { %v5447_v31 = vpop.f32.mrf.mxu1 }
 0xd07   : > { %v2895_v33 = vpop.permute.xlu1 %2894 }
 0xd08   : > { %v2905_v34 = vsel %vm1193_vm2, %v2670_v42, %v2895_v33  ;;  %v2899_v35 = vpop.permute.xlu0 %2898 }
 0xd09   : > { %v2906_v37 = vsel %vm1843_vm3, %v2905_v34, %v2899_v35 }
 0xd3c   : > { %v2903_v4 = vpop.permute.xlu1 %2902 }
 0xd3d   : > { %v2907_v39 = vsel %vm1845_vm4, %v2906_v37, %v2903_v4 }
 0xd3e   : > { %5413 = vmatmul.mubr.msk.f32.vlgmr.msra.gmra.mxu0 %vm851_vm0, %v2907_v39 }
 0xd3f   : > { %5434 = vmatprep.mubr.msk.f32.mxu0 %vm6106_vm1, %v6105_v16  ;;  %5427 = vmatpush3.msra.mxu0 %v5029_v54 }
 0xd40   : > { %5428 = vmatprep.subr.mxu0 %v6105_v16 }
 0xd41   : > { %5429 = vmatpush3.msra.mxu0 %v5028_v55 }
 0xd42   : > { %5430 = vmatprep.subr.mxu0 %v6105_v16 }
 0xd43   : > { %5431 = vmatpush3.msra.mxu0 %v5027_v56 }
 0xd44   : > { %5432 = vmatprep.subr.mxu0 %v6105_v16 }
 0xd45   : > { %5433 = vmatpush3.msra.mxu0 %v5026_v57 }
 0xd46   : > { %5448 = vmatprep.subr.mxu0 %v6105_v16 }
 0xdfe   : > { %v2990_v41 = vpop.f32.mrf.mxu0 }
 0xdff   : > { %v2991_v43 = vadd.f32 %v5009_v40, %v2990_v41 }
 0xe00   : > { %v5414_v44 = vpop.f32.mrf.mxu0 }
 0xe01   : > { %v6863_v46 = vadd.f32 %v5770_v45, %v2991_v43 }
 0xe03   : > { %v3017_v47 = vsel %vm851_vm0, %v6863_v46, 0.0 }
 0xe04   : > { %3018 = vadd.xlane.f32.xlu0 %v3017_v47 }
 0xe8d   : > { %v6867_v48 = vpop.xlane.xlu0 %3018 }
 0xe8e   : > { %v3020_v49 = vmul.f32 0.03125, %v6867_v48 }
 0xe90   : > { %v3021_v50 = vsub.f32 %v6863_v46, %v3020_v49 }
 0xe92   : > { %v3022_v52 = vmul.f32 %v3021_v50, %v3021_v50 }
 0xe94   : > { %v3023_v53 = vsel %vm851_vm0, %v3022_v52, 0.0 }
 0xe95   : > { %3024 = vadd.xlane.f32.xlu1 %v3023_v53 }
 0xea6   : > { %3297 = vrot.lane.b32.xlu1 %v3136_v28, %s6107_s17 }
 0xf1e   : > { %v3025_v58 = vpop.xlane.xlu1 %3024 }
 0xf1f   : > { %v3026_v59 = vmul.f32 0.03125, %v3025_v58 }
 0xf21   : > { %v3027_v60 = vadd.f32 1e-05, %v3026_v59 }
 0xf22   : > { %v3298_v5 = vpop.permute.xlu1 %3297 }
 0xf23   : > { %5748 = vrsqrt.f32 %v3027_v60 }
 0xf30   : > { %v5749_v61 = vpop.eup %5748 }
 0xf31   : > { %v3029_v62 = vmul.f32 %v5749_v61, %v3021_v50 }
 0xf33   : > { %v3036_v0 = vmul.f32 %v5016_v38, %v3029_v62 }
 0xf35   : > { %v3043_v1 = vadd.f32 %v5017_v63, %v3036_v0 }
 0xf37   : > { %5435 = vmatmul.mubr.msk.f32.vlgmr.msra.gmra.mxu0 %vm851_vm0, %v3043_v1 }
 0xf38   : > { %5450 = vmatprep.mubr.msk.f32.mxu0 %vm6106_vm1, %v6105_v16 }
 0xff7   : > { %v3214_v2 = vpop.f32.mrf.mxu0 }
 0xff8   : > { %3308 = vrot.lane.b32.xlu1 %v3214_v2, %s6109_s6  ;;  %3304 = vrot.lane.b32.xlu0 %v3214_v2, %s6107_s17 }
 0xff9   : > { %5449 = vmatpush3.xpose.msk.msra.mxu0 %vm1193_vm2, %v3214_v2  ;;  %v5436_v3 = vpop.f32.mrf.mxu0 }
 0xffa   : > { %5458 = vmatprep.subr.mxu0 %v6105_v16 }
 0xffc   : > { %5451 = vmatmul.mubr.msk.f32.vlgmr.msra.gmra.mxu0 %vm1193_vm2, %v3136_v28  ;;  %3301 = vrot.lane.b32.xlu1 %v3136_v28, %s6109_s6 }
 0xffd   : > { %3306 = vrot.lane.b32.xlu0 %v3214_v2, %s6108_s18  ;;  %5460 = vmatprep.mubr.msk.f32.mxu0 %vm6106_vm1, %v6105_v16 }
0x1001   : > { %3299 = vrot.lane.b32.xlu0 %v3136_v28, %s6108_s18 }
0x106a   : > { %v3305_v6 = vpop.permute.xlu0 %3304  ;;  %v3309_v7 = vpop.permute.xlu1 %3308 }
0x106b   : > { %5454 = vmatpush3.xpose.msk.msra.mxu1 %vm1193_vm2, %v3305_v6  ;;  %v3974_v6 = vld [vmem:[#allocation11 + $0x50] sm:$0xff] }
0x106c   : > { %5463 = vmatprep.subr.mxu1 %v6105_v16 }
0x106e   : > { %5456 = vmatmul.mubr.msk.f32.vlgmr.msra.gmra.mxu1 %vm1193_vm2, %v3298_v5  ;;  %v3302_v9 = vpop.permute.xlu1 %3301  ;;  %v3975_v5 = vld [vmem:[#allocation11 + $0x58] sm:$0xff] }
0x106f   : > { %v3307_v8 = vpop.permute.xlu0 %3306  ;;  %5464 = vmatpush3.xpose.msk.msra.mxu1 %vm1193_vm2, %v3309_v7  ;;  %5465 = vmatprep.mubr.msk.f32.mxu1 %vm6106_vm1, %v6105_v16  ;;  %v3973_v7 = vld [vmem:[#allocation11 + $0x48] sm:$0xff] }
0x1070   : > { %5459 = vmatpush3.xpose.msk.msra.mxu0 %vm1193_vm2, %v3307_v8  ;;  %5473 = vmatprep.subr.mxu1 %v6105_v16 }
0x1071   : > { %5468 = vmatprep.subr.mxu0 %v6105_v16 }
0x1072   : > { %5466 = vmatmul.mubr.msk.f32.vlgmr.msra.gmra.mxu1 %vm1193_vm2, %v3302_v9 }
0x1073   : > { %v3300_v51 = vpop.permute.xlu0 %3299  ;;  %5475 = vmatprep.mubr.msk.f32.mxu1 %vm6106_vm1, %v6105_v16 }
0x1074   : > { %5461 = vmatmul.mubr.msk.f32.vlgmr.msra.gmra.mxu0 %vm1193_vm2, %v3300_v51 }
0x1075   : > { %5469 = vmatpush3.msra.mxu0 %v6850_v30  ;;  %5470 = vmatprep.mubr.msk.f32.mxu0 %vm6106_vm1, %v6105_v16 }
0x1076   : > { %5478 = vmatprep.subr.mxu0 %v6105_v16 }
0x10bc   : > { %v3390_v10 = vpop.f32.mrf.mxu0 }
0x10bd   : > { %v3616_v11 = vmul.f32 0.35355338, %v3390_v10 }
0x10be   : > { %v5452_v12 = vpop.f32.mrf.mxu0 }
0x10bf   : > { %v3620_v13 = vsel %vm1193_vm2, %v3616_v11, -inf }
0x10c0   : > { %3621 = vmax.xlane.f32.xlu0 %v3620_v13 }
0x112e   : > { %v3464_v14 = vpop.f32.mrf.mxu1 }
0x112f   : > { %v3617_v15 = vmul.f32 0.35355338, %v3464_v14 }
0x1130   : > { %v5457_v42 = vpop.f32.mrf.mxu1 }
0x1131   : > { %v3623_v17 = vsel %vm1193_vm2, %v3617_v15, -inf }
0x1132   : > { %3624 = vmax.xlane.f32.xlu1 %v3623_v17  ;;  %v3612_v18 = vpop.f32.mrf.mxu1 }
0x1133   : > { %v3619_v23 = vmul.f32 0.35355338, %v3612_v18 }
0x1134   : > { %v3538_v19 = vpop.f32.mrf.mxu0  ;;  %v5467_v20 = vpop.f32.mrf.mxu1 }
0x1135   : > { %v3618_v21 = vmul.f32 0.35355338, %v3538_v19  ;;  %v3629_v25 = vsel %vm1193_vm2, %v3619_v23, -inf  ;;  %v5049_v20 = vld [vmem:[%s7255_s13 + $0x2] ss:$0 sm:$0xff] }
0x1136   : > { %v5462_v22 = vpop.f32.mrf.mxu0 }
0x1137   : > { %v3626_v24 = vsel %vm1193_vm2, %v3618_v21, -inf }
0x1138   : > { %3627 = vmax.xlane.f32.xlu0 %v3626_v24  ;;  %v5771_v24 = vld [vmem:[%s749_s7] sm:$0xff]  ;;  %s838_s7 = scalar_lea.vmem [#allocation15], %s6456_s30 }
0x113c   : > { %3630 = vmax.xlane.f32.xlu0 %v3629_v25 }
0x1149   : > { %v3622_v26 = vpop.xlane.xlu0 %3621 }
0x114a   : > { %v3632_v27 = vsub.f32 %v3616_v11, %v3622_v26  ;;  %v3972_v11 = vld [vmem:[#allocation11 + $0x40] sm:$0xff] }
0x114c   : > { %v3636_v28 = vmul.f32 1.442695, %v3632_v27  ;;  %v4058_v27 = vadd.f32 %v6867_v48, %v6683_v36  ;;  %v4147_v48 = vld [vmem:[#allocation13 + $0x38] sm:$0xff] }
0x114e   : > { %5750 = vpow2.f32 %v3636_v28 }
0x115b   : > { %v5751_v29 = vpop.eup %5750 }
0x115c   : > { %v3644_v31 = vsel %vm1193_vm2, %v5751_v29, 0.0 }
0x115d   : > { %3645 = vadd.xlane.f32.xlu0 %v3644_v31 }
0x11bb   : > { %v3625_v33 = vpop.xlane.xlu1 %3624 }
0x11bc   : > { %v3633_v34 = vsub.f32 %v3617_v15, %v3625_v33 }
0x11be   : > { %v3638_v35 = vmul.f32 1.442695, %v3633_v34 }
0x11c0   : > { %5752 = vpow2.f32 %v3638_v35 }
0x11c1   : > { %v3628_v37 = vpop.xlane.xlu0 %3627 }
0x11c2   : > { %v3634_v4 = vsub.f32 %v3618_v21, %v3628_v37 }
0x11c4   : > { %v3640_v39 = vmul.f32 1.442695, %v3634_v4 }
0x11c5   : > { %v3631_v45 = vpop.xlane.xlu0 %3630 }
0x11c6   : > { %5754 = vpow2.f32 %v3640_v39  ;;  %v3635_v49 = vsub.f32 %v3619_v23, %v3631_v45  ;;  %v4141_v45 = vld [vmem:[#allocation13 + $0x10] sm:$0xff] }
0x11c8   : > { %v3642_v50 = vmul.f32 1.442695, %v3635_v49  ;;  %v4140_v49 = vld [vmem:[#allocation13 + $0x8] sm:$0xff] }
0x11cd   : > { %v5753_v40 = vpop.eup %5752 }
0x11ce   : > { %v3647_v41 = vsel %vm1193_vm2, %v5753_v40, 0.0 }
0x11cf   : > { %3648 = vadd.xlane.f32.xlu1 %v3647_v41 }
0x11d3   : > { %v5755_v43 = vpop.eup %5754 }
0x11d4   : > { %v3650_v44 = vsel %vm1193_vm2, %v5755_v43, 0.0 }
0x11d5   : > { %3651 = vadd.xlane.f32.xlu0 %v3650_v44  ;;  %v4146_v44 = vld [vmem:[#allocation13 + $0x30] sm:$0xff] }
0x11e0   : > { %3314 = vrot.lane.b32.xlu1 %v6850_v30, %s6108_s18  ;;  %s7363_s18 = sld [smem:[#allocation45_spill]] }
0x11e6   : > { %v3646_v47 = vpop.xlane.xlu0 %3645 }
0x11e7   : > { %5756 = vrcp.f32 %v3646_v47  ;;  %v4145_v47 = vld [vmem:[#allocation13 + $0x28] sm:$0xff] }
0x11e8   : > { %5758 = vpow2.f32 %v3642_v50  ;;  %v4144_v50 = vld [vmem:[#allocation13 + $0x20] sm:$0xff] }
0x11eb   : > { %3311 = vrot.lane.b32.xlu0 %v6850_v30, %s6107_s17  ;;  %s7369_s17 = sld [smem:[#allocation47_spill]] }
0x11f1   : > { %s7147_s5 = scalar_lea.hbm %s7369_s17, %s7123_s15 }
0x11f4   : > { %v5757_v52 = vpop.eup %5756 }
0x11f5   : > { %v3660_v53 = vmul.f32 %v5757_v52, %v5751_v29  ;;  %v5759_v54 = vpop.eup %5758  ;;  %v4139_v52 = vld [vmem:[#allocation13] sm:$0xff] }
0x11f6   : > { %v3653_v55 = vsel %vm1193_vm2, %v5759_v54, 0.0 }
0x11f7   : > { %5471 = vmatmul.mubr.msk.f32.vlgmr.msra.gmra.mxu0 %vm1193_vm2, %v3660_v53 }
0x11f8   : > { %5480 = vmatprep.mubr.msk.f32.mxu0 %vm6106_vm1, %v6105_v16 }
0x1204   : > { %3654 = vadd.xlane.f32.xlu1 %v3653_v55 }
0x1215   : > { %3317 = vrot.lane.b32.xlu1 %v6850_v30, %s6109_s6  ;;  %s4699_s6 = sshll.u32 %s838_s7, 4  ;;  %s7141_s6 = int_to_ptr.vmem [resolvable:$true] %s4699_s6 }
0x1216   : > { %s5960_s8 = scalar_lea.vmem %s7141_s6, 128 }
0x1217   : > { %p5961_p8 = scmp.ne.s32.totalorder %s7141_s6, %s5960_s8 }
0x1258   : > { %v3649_v56 = vpop.xlane.xlu1 %3648 }
0x1259   : > { %5760 = vrcp.f32 %v3649_v56 }
0x125c   : > { %v3315_v57 = vpop.permute.xlu1 %3314 }
0x125d   : > { %5479 = vmatpush3.msra.mxu0 %v3315_v57 }
0x125e   : > { %v3652_v58 = vpop.xlane.xlu0 %3651  ;;  %5488 = vmatprep.subr.mxu0 %v6105_v16 }
0x125f   : > { %5762 = vrcp.f32 %v3652_v58 }
0x1262   : > { %v3312_v59 = vpop.permute.xlu0 %3311 }
0x1263   : > { %5474 = vmatpush3.msra.mxu1 %v3312_v59 }
0x1264   : > { %5483 = vmatprep.subr.mxu1 %v6105_v16 }
0x1266   : > { %v5761_v60 = vpop.eup %5760 }
0x1267   : > { %v3661_v61 = vmul.f32 %v5761_v60, %v5753_v40 }
0x1269   : > { %5476 = vmatmul.mubr.msk.f32.vlgmr.msra.gmra.mxu1 %vm1193_vm2, %v3661_v61  ;;  %v5054_v61 = vld [vmem:[%s7256_s14 + $0x1] ss:$0 sm:$0xff] }
0x126a   : > { %5485 = vmatprep.mubr.msk.f32.mxu1 %vm6106_vm1, %v6105_v16 }
0x126c   : > { %v5763_v30 = vpop.eup %5762 }
0x126d   : > { %v3662_v38 = vmul.f32 %v5763_v30, %v5755_v43  ;;  %v4142_v43 = vld [vmem:[#allocation13 + $0x18] sm:$0xff]  ;;  %v5051_v30 = vld [vmem:[%s7256_s14] ss:$0 sm:$0xff] }
0x126f   : > { %5481 = vmatmul.mubr.msk.f32.vlgmr.msra.gmra.mxu0 %vm1193_vm2, %v3662_v38 }
0x1270   : > { %5496 = vmatprep.mubr.msk.f32.mxu0 %vm6106_vm1, %v6105_v16  ;;  %5489 = vmatpush3.msra.mxu0 %v3975_v5 }
0x1271   : > { %5490 = vmatprep.subr.mxu0 %v6105_v16 }
0x1272   : > { %5491 = vmatpush3.msra.mxu0 %v3974_v6  ;;  %v4298_v6 = vld [vmem:[#allocation13 + $0x58] sm:$0xff] }
0x1273   : > { %5492 = vmatprep.subr.mxu0 %v6105_v16 }
0x1274   : > { %5493 = vmatpush3.msra.mxu0 %v3973_v7 }
0x1275   : > { %5494 = vmatprep.subr.mxu0 %v6105_v16 }
0x1276   : > { %5495 = vmatpush3.msra.mxu0 %v3972_v11  ;;  %v5060_v11 = vld [vmem:[%s7362_s22 + $0x2] ss:$0 sm:$0xff] }
0x1277   : > { %5510 = vmatprep.subr.mxu0 %v6105_v16 }
0x128d   : > { %v3655_v62 = vpop.xlane.xlu1 %3654 }
0x128e   : > { %5764 = vrcp.f32 %v3655_v62 }
0x1291   : > { %v3318_v63 = vpop.permute.xlu1 %3317 }
0x1292   : > { %5484 = vmatpush3.msra.mxu1 %v3318_v63  ;;  %v5056_v63 = vld [vmem:[%s7362_s22 + $0x1] ss:$0 sm:$0xff] }
0x1293   : > { %5499 = vmatprep.subr.mxu1 %v6105_v16 }
0x129b   : > { %v5765_v0 = vpop.eup %5764 }
0x129c   : > { %v3663_v1 = vmul.f32 %v5765_v0, %v5759_v54  ;;  %v5052_v0 = vld [vmem:[%s7362_s22] ss:$0 sm:$0xff] }
0x129e   : > { %5486 = vmatmul.mubr.msk.f32.vlgmr.msra.gmra.mxu1 %vm1193_vm2, %v3663_v1 }
0x129f   : > { %5507 = vmatprep.mubr.msk.f32.mxu1 %vm6106_vm1, %v6105_v16  ;;  %5500 = vmatpush3.msra.mxu1 %v4147_v48 }
0x12a0   : > { %5501 = vmatprep.subr.mxu1 %v6105_v16 }
0x12a1   : > { %5502 = vmatpush3.msra.mxu1 %v4146_v44 }
0x12a2   : > { %5503 = vmatprep.subr.mxu1 %v6105_v16 }
0x12a3   : > { %5504 = vmatpush3.msra.mxu1 %v4145_v47 }
0x12a4   : > { %5505 = vmatprep.subr.mxu1 %v6105_v16 }
0x12a5   : > { %5506 = vmatpush3.msra.mxu1 %v4144_v50 }
0x12a6   : > { %5521 = vmatprep.subr.mxu1 %v6105_v16 }
0x12b7   : > { %v3733_v2 = vpop.f32.mrf.mxu0 }
0x12b9   : > { %v5472_v3 = vpop.f32.mrf.mxu0 }
0x1329   : > { %v3806_v8 = vpop.f32.mrf.mxu1 }
0x132a   : > { %3957 = vrot.lane.b32.xlu1 %v3806_v8, %s6110_s12  ;;  %v5058_v8 = vld [vmem:[%s7256_s14 + $0x2] ss:$0 sm:$0xff]  ;;  %s7367_s12 = sld [smem:[#allocation28_spill]] }
0x132b   : > { %v5477_v9 = vpop.f32.mrf.mxu1 }
0x132c   : > { %v4297_v9 = vld [vmem:[#allocation13 + $0x50] sm:$0xff] }
0x132f   : > { %v3879_v51 = vpop.f32.mrf.mxu0 }
0x1330   : > { %3961 = vrot.lane.b32.xlu0 %v3879_v51, %s6111_s25  ;;  %v4296_v51 = vld [vmem:[#allocation13 + $0x48] sm:$0xff]  ;;  %s831_s25 = scalar_lea.vmem [#allocation14], %s6456_s30  ;;  %p7371_p10 = scmp.ne.s32.totalorder %s7367_s12, 0 }
0x1331   : > { %v5482_v10 = vpop.f32.mrf.mxu0 }
0x1332   : > { %p5962_p11 = pnand %p5961_p8, %p7371_p10 }
0x1334   : > { %p5963_p12 = pneg %p5962_p11 }
0x135e   : > { %v3952_v12 = vpop.f32.mrf.mxu1 }
0x135f   : > { %3965 = vrot.lane.b32.xlu1 %v3952_v12, %s6112_s4  ;;  %v4295_v12 = vld [vmem:[#allocation13 + $0x40] sm:$0xff]  ;;  %s7364_s4 = sld [smem:[#allocation44_spill]] }
0x1360   : > { %v5487_v13 = vpop.f32.mrf.mxu1 }
0x139c   : > { %v3958_v14 = vpop.permute.xlu1 %3957 }
0x139d   : > { %v3968_v42 = vsel %vm1193_vm2, %v3733_v2, %v3958_v14  ;;  %v4397_v14 = vld [vmem:[%s7363_s18 + $0x38] sm:$0xff] }
0x13a2   : > { %v3962_v15 = vpop.permute.xlu0 %3961 }
0x13a3   : > { %v3969_v17 = vsel %vm1843_vm3, %v3968_v42, %v3962_v15  ;;  %v5074_v15 = vld [vmem:[%s7363_s18 + $0x78] sm:$0xff]  ;;  %v4396_v42 = vld [vmem:[%s7363_s18 + $0x30] sm:$0xff] }
0x13d1   : > { %v3966_v18 = vpop.permute.xlu1 %3965 }
0x13d2   : > { %v3970_v19 = vsel %vm1845_vm4, %v3969_v17, %v3966_v18  ;;  %v5073_v17 = vld [vmem:[%s7363_s18 + $0x70] sm:$0xff]  ;;  %v4395_v18 = vld [vmem:[%s7363_s18 + $0x28] sm:$0xff] }
0x13d3   : > { %5497 = vmatmul.mubr.msk.f32.vlgmr.msra.gmra.mxu0 %vm851_vm0, %v3970_v19  ;;  %v5072_v19 = vld [vmem:[%s7363_s18 + $0x68] sm:$0xff] }
0x13d4   : > { %5518 = vmatprep.mubr.msk.f32.mxu0 %vm6106_vm1, %v6105_v16  ;;  %5511 = vmatpush3.msra.mxu0 %v4142_v43 }
0x13d5   : > { %5512 = vmatprep.subr.mxu0 %v6105_v16 }
0x13d6   : > { %5513 = vmatpush3.msra.mxu0 %v4141_v45 }
0x13d7   : > { %5514 = vmatprep.subr.mxu0 %v6105_v16 }
0x13d8   : > { %5515 = vmatpush3.msra.mxu0 %v4140_v49 }
0x13d9   : > { %5516 = vmatprep.subr.mxu0 %v6105_v16 }
0x13da   : > { %5517 = vmatpush3.msra.mxu0 %v4139_v52 }
0x13db   : > { %5532 = vmatprep.subr.mxu0 %v6105_v16 }
0x1493   : > { %v4053_v21 = vpop.f32.mrf.mxu0 }
0x1494   : > { %v4054_v22 = vadd.f32 %v5049_v20, %v4053_v21  ;;  %v4394_v20 = vld [vmem:[%s7363_s18 + $0x20] sm:$0xff] }
0x1495   : > { %v5498_v23 = vpop.f32.mrf.mxu0  ;;  %v5071_v21 = vld [vmem:[%s7363_s18 + $0x60] sm:$0xff] }
0x1496   : > { %v6969_v25 = vadd.f32 %v5771_v24, %v4054_v22  ;;  %v4393_v22 = vld [vmem:[%s7363_s18 + $0x18] sm:$0xff]  ;;  %v4392_v24 = vld [vmem:[%s7363_s18 + $0x10] sm:$0xff] }
0x1497   : > { %v5070_v23 = vld [vmem:[%s7363_s18 + $0x58] sm:$0xff] }
0x1498   : > { %v4059_v26 = vsel %vm851_vm0, %v6969_v25, 0.0 }
0x1499   : > { %4060 = vadd.xlane.f32.xlu0 %v4059_v26  ;;  %v5069_v26 = vld [vmem:[%s7363_s18 + $0x50] sm:$0xff] }
0x1522   : > { %v4061_v28 = vpop.xlane.xlu0 %4060 }
0x1523   : > { %v4062_v29 = vadd.f32 %v4061_v28, %v4058_v27  ;;  %v4391_v27 = vld [vmem:[%s7363_s18 + $0x8] sm:$0xff] }
0x1524   : > { %v5068_v28 = vld [vmem:[%s7363_s18 + $0x48] sm:$0xff] }
0x1525   : > { %v4063_v31 = vmul.f32 0.010416667, %v4062_v29  ;;  %v4390_v29 = vld [vmem:[%s7363_s18] sm:$0xff] }
0x1527   : > { %v4065_v33 = vsub.f32 %v6863_v46, %v4063_v31  ;;  %v4064_v34 = vsub.f32 %v6675_v32, %v4063_v31  ;;  %v4066_v35 = vsub.f32 %v6969_v25, %v4063_v31  ;;  %v5067_v31 = vld [vmem:[%s7363_s18 + $0x40] sm:$0xff] }
0x1529   : > { %v4071_v37 = vmul.f32 %v4065_v33, %v4065_v33  ;;  %v4067_v4 = vmul.f32 %v4064_v34, %v4064_v34  ;;  %v4076_v41 = vmul.f32 %v4066_v35, %v4066_v35 }
0x152b   : > { %v4072_v39 = vsel %vm851_vm0, %v4071_v37, 0.0  ;;  %v4068_v40 = vsel %vm851_vm0, %v4067_v4, 0.0  ;;  %v4077_v36 = vsel %vm851_vm0, %v4076_v41, 0.0 }
0x152c   : > { %4073 = vadd.xlane.f32.xlu0 %v4072_v39  ;;  %4069 = vadd.xlane.f32.xlu1 %v4068_v40  ;;  %v5064_v40 = vld [vmem:[%s7364_s4] ss:$0 sm:$0xff]  ;;  %s4686_s4 = sshll.u32 %s831_s25, 4  ;;  %s7149_s4 = int_to_ptr.vmem [resolvable:$true] %s4686_s4 }
0x1530   : > { %4078 = vadd.xlane.f32.xlu0 %v4077_v36 }
0x15b5   : > { %v4074_v53 = vpop.xlane.xlu0 %4073  ;;  %v4070_v54 = vpop.xlane.xlu1 %4069 }
0x15b6   : > { %v4075_v55 = vadd.f32 %v4074_v53, %v4070_v54 }
0x15b9   : > { %v4079_v56 = vpop.xlane.xlu0 %4078 }
0x15ba   : > { %v4080_v57 = vadd.f32 %v4079_v56, %v4075_v55  ;;  %v5085_v55 = vld [vmem:[%s7363_s18 + $0xb8] sm:$0xff]  ;;  %v5084_v56 = vld [vmem:[%s7363_s18 + $0xb0] sm:$0xff] }
0x15bc   : > { %v4081_v58 = vmul.f32 0.010416667, %v4080_v57  ;;  %v5083_v57 = vld [vmem:[%s7363_s18 + $0xa8] sm:$0xff] }
0x15be   : > { %v4082_v59 = vadd.f32 1e-05, %v4081_v58  ;;  %v5082_v58 = vld [vmem:[%s7363_s18 + $0xa0] sm:$0xff] }
0x15c0   : > { %5766 = vrsqrt.f32 %v4082_v59  ;;  %v5081_v59 = vld [vmem:[%s7363_s18 + $0x98] sm:$0xff] }
0x15cd   : > { %v5767_v60 = vpop.eup %5766 }
0x15ce   : > { %v4101_v38 = vmul.f32 %v5767_v60, %v4065_v33  ;;  %v4084_v62 = vmul.f32 %v5767_v60, %v4064_v34  ;;  %v4120_v7 = vmul.f32 %v5767_v60, %v4066_v35  ;;  %v5080_v60 = vld [vmem:[%s7363_s18 + $0x90] sm:$0xff] }
0x15d0   : > { %v4110_v1 = vmul.f32 %v5054_v61, %v4101_v38  ;;  %v4092_v2 = vmul.f32 %v5051_v30, %v4084_v62  ;;  %v4129_v10 = vmul.f32 %v5058_v8, %v4120_v7  ;;  %v5079_v61 = vld [vmem:[%s7363_s18 + $0x88] sm:$0xff]  ;;  %v5078_v30 = vld [vmem:[%s7363_s18 + $0x80] sm:$0xff] }
0x15d1   : > { %v5066_v62 = vld [vmem:[%s7365_s3] ss:$0 sm:$0xff]  ;;  %s6113_s3 = smov [#allocation15]  }
0x15d2   : > { %v4119_v3 = vadd.f32 %v5056_v63, %v4110_v1  ;;  %v4100_v5 = vadd.f32 %v5052_v0, %v4092_v2  ;;  %v4138_v13 = vadd.f32 %v5060_v11, %v4129_v10  ;;  %v5077_v0 = vld [vmem:[%s7366_s21 + $0x1] ss:$0 sm:$0xff]  ;;  %s5964_s1 = sshll.u32 %s6113_s3, 4  ;;  %s5965_s1 = int_to_ptr.vmem [resolvable:$false] %s5964_s1 }
0x15d3   : > { %s5966_s9 = scalar_lea.vmem %s5965_s1, 256  ;;  %p5967_p0 = scmp.lt.s32.totalorder %s7141_s6, %s5965_s1 }
0x15d4   : > { %5508 = vmatmul.mubr.msk.f32.vlgmr.msra.gmra.mxu1 %vm851_vm0, %v4119_v3  ;;  %5519 = vmatmul.mubr.msk.f32.vlgmr.msra.gmra.mxu0 %vm851_vm0, %v4100_v5  ;;  %p5968_p4 = scmp.lt.s32.totalorder %s5966_s9, %s5960_s8 }
0x15d5   : > { %5522 = vmatpush3.msra.mxu1 %v4298_v6  ;;  %5529 = vmatprep.mubr.msk.f32.mxu1 %vm6106_vm1, %v6105_v16 }
0x15d6   : > { %5523 = vmatprep.subr.mxu1 %v6105_v16  ;;  %5548 = vmatprep.mubr.msk.f32.mxu0 %vm6106_vm1, %v6105_v16  ;;  %p5969_p3 = por %p5968_p4, %p5967_p0 }
0x15d7   : > { %5524 = vmatpush3.msra.mxu1 %v4297_v9  ;;  %5533 = vmatpush3.msra.mxu0 %v4397_v14 }
0x15d8   : > { %5525 = vmatprep.subr.mxu1 %v6105_v16  ;;  %5534 = vmatprep.subr.mxu0 %v6105_v16  ;;  %p5970_p7 = pnand %p5969_p3, %p5963_p12 }
0x15d9   : > { %5526 = vmatpush3.msra.mxu1 %v4296_v51  ;;  %5535 = vmatpush3.msra.mxu0 %v4396_v42 }
0x15da   : > { %5527 = vmatprep.subr.mxu1 %v6105_v16  ;;  %5536 = vmatprep.subr.mxu0 %v6105_v16 }
0x15db   : > { %5528 = vmatpush3.msra.mxu1 %v4295_v12  ;;  %5537 = vmatpush3.msra.mxu0 %v4395_v18 }
0x15dc   : > { %5530 = vmatmul.mubr.msk.f32.vlgmr.msra.gmra.mxu1 %vm851_vm0, %v4138_v13  ;;  %5551 = vmatprep.subr.mxu1 %v6105_v16 }
0x15dd   : > { %5567 = vmatprep.mubr.msk.f32.mxu1 %vm6106_vm1, %v6105_v16  ;;  %5552 = vmatpush3.msra.mxu1 %v5074_v15 }
0x15de   : > { %5553 = vmatprep.subr.mxu1 %v6105_v16  ;;  %5538 = vmatprep.subr.mxu0 %v6105_v16 }
0x15df   : > { %5554 = vmatpush3.msra.mxu1 %v5073_v17  ;;  %5539 = vmatpush3.msra.mxu0 %v4394_v20 }
0x15e0   : > { %5555 = vmatprep.subr.mxu1 %v6105_v16  ;;  %5540 = vmatprep.subr.mxu0 %v6105_v16 }
0x15e1   : > { %5556 = vmatpush3.msra.mxu1 %v5072_v19  ;;  %5541 = vmatpush3.msra.mxu0 %v4393_v22 }
0x15e2   : > { %5557 = vmatprep.subr.mxu1 %v6105_v16  ;;  %5542 = vmatprep.subr.mxu0 %v6105_v16 }
0x15e3   : > { %5558 = vmatpush3.msra.mxu1 %v5071_v21  ;;  %5543 = vmatpush3.msra.mxu0 %v4392_v24 }
0x15e4   : > { %5559 = vmatprep.subr.mxu1 %v6105_v16  ;;  %5544 = vmatprep.subr.mxu0 %v6105_v16 }
0x15e5   : > { %5560 = vmatpush3.msra.mxu1 %v5070_v23  ;;  %5545 = vmatpush3.msra.mxu0 %v4391_v27 }
0x15e6   : > { %5561 = vmatprep.subr.mxu1 %v6105_v16  ;;  %5546 = vmatprep.subr.mxu0 %v6105_v16 }
0x15e7   : > { %5562 = vmatpush3.msra.mxu1 %v5069_v26  ;;  %5547 = vmatpush3.msra.mxu0 %v4390_v29 }
0x15e8   : > { %5563 = vmatprep.subr.mxu1 %v6105_v16  ;;  %5570 = vmatprep.subr.mxu0 %v6105_v16 }
0x15e9   : > { %5564 = vmatpush3.msra.mxu1 %v5068_v28 }
0x15ea   : > { %5565 = vmatprep.subr.mxu1 %v6105_v16 }
0x15eb   : > { %5566 = vmatpush3.msra.mxu1 %v5067_v31 }
0x1694   : > { %v4217_v33 = vpop.f32.mrf.mxu1  ;;  %v4290_v34 = vpop.f32.mrf.mxu0 }
0x1695   : > { %v4291_v4 = vadd.f32 %v4290_v34, %v4217_v33 }
0x1696   : > { %v5509_v35 = vpop.f32.mrf.mxu1  ;;  %v5520_v37 = vpop.f32.mrf.mxu0 }
0x169c   : > { %v4368_v39 = vpop.f32.mrf.mxu1 }
0x169d   : > { %v4372_v41 = vadd.f32 %v4368_v39, %v4291_v4 }
0x169e   : > { %v5531_v36 = vpop.f32.mrf.mxu1 }
0x169f   : > { %v4380_v48 = vadd.f32 %v5064_v40, %v4372_v41 }
0x16a1   : > { %v4382_v43 = vmul.f32 %v4380_v48, %v4380_v48  ;;  %v4381_v52 = vmul.f32 0.5, %v4380_v48 }
0x16a3   : > { %v4383_v44 = vmul.f32 %v4382_v43, %v4380_v48 }
0x16a5   : > { %v4384_v45 = vmul.f32 0.044715, %v4383_v44 }
0x16a7   : > { %v4385_v47 = vadd.f32 %v4384_v45, %v4380_v48 }
0x16a9   : > { %v4386_v49 = vmul.f32 0.7978846, %v4385_v47 }
0x16ab   : > { %5768 = vtanh.f32 %v4386_v49 }
0x16b8   : > { %v5769_v50 = vpop.eup %5768 }
0x16b9   : > { %v4388_v53 = vadd.f32 1.0, %v5769_v50 }
0x16bb   : > { %v4389_v54 = vmul.f32 %v4388_v53, %v4381_v52 }
0x16bd   : > { %5549 = vmatmul.mubr.msk.f32.vlgmr.msra.gmra.mxu0 %vm4398_vm5, %v4389_v54  ;;  %5568 = vmatmul.mubr.msk.f32.vlgmr.msra.gmra.mxu1 %vm4398_vm5, %v4389_v54 }
0x16be   : > { %5571 = vmatpush3.msra.mxu0 %v5085_v55  ;;  %5586 = vmatprep.mubr.msk.f32.mxu0 %vm6106_vm1, %v6105_v16 }
0x16bf   : > { %5572 = vmatprep.subr.mxu0 %v6105_v16 }
0x16c0   : > { %5573 = vmatpush3.msra.mxu0 %v5084_v56 }
0x16c1   : > { %5574 = vmatprep.subr.mxu0 %v6105_v16 }
0x16c2   : > { %5575 = vmatpush3.msra.mxu0 %v5083_v57 }
0x16c3   : > { %5576 = vmatprep.subr.mxu0 %v6105_v16 }
0x16c4   : > { %5577 = vmatpush3.msra.mxu0 %v5082_v58 }
0x16c5   : > { %5578 = vmatprep.subr.mxu0 %v6105_v16 }
0x16c6   : > { %5579 = vmatpush3.msra.mxu0 %v5081_v59 }
0x16c7   : > { %5580 = vmatprep.subr.mxu0 %v6105_v16 }
0x16c8   : > { %5581 = vmatpush3.msra.mxu0 %v5080_v60 }
0x16c9   : > { %5582 = vmatprep.subr.mxu0 %v6105_v16 }
0x16ca   : > { %5583 = vmatpush3.msra.mxu0 %v5079_v61 }
0x16cb   : > { %5584 = vmatprep.subr.mxu0 %v6105_v16 }
0x16cc   : > { %5585 = vmatpush3.msra.mxu0 %v5078_v30 }
0x16cd   : > { %5587 = vmatmul.mubr.msk.f32.vlgmr.msra.gmra.mxu0 %vm4398_vm5, %v4389_v54 }
0x177d   : > { %v4468_v38 = vpop.f32.mrf.mxu0  ;;  %v4557_v63 = vpop.f32.mrf.mxu1 }
0x177e   : > { %v4472_v16 = vadd.f32 %v4468_v38, %v6675_v32  ;;  %v4561_v1 = vadd.f32 %v4557_v63, %v6863_v46 }
0x177f   : > { %v5550_v2 = vpop.f32.mrf.mxu0  ;;  %v5569_v3 = vpop.f32.mrf.mxu1 }
0x1780   : > { %v4480_v5 = vadd.f32 %v5066_v62, %v4472_v16  ;;  %v4570_v6 = vadd.f32 %v5077_v0, %v4561_v1 }
0x1782   : > { %4571 = vst.msk [vmem:[%s838_s7] sm:$0xff] %vm851_vm0, %v4570_v6  ;;  %4481 = vst.msk [vmem:[%s831_s25] sm:$0xff] %vm851_vm0, %v4480_v5 }
0x1783   : > { %5973 = shalt.err (!%p5970_p7)
}
0x1784   : > { %s5974_s23 = scalar_lea.hbm %s7139_s19, 128  ;;  %s5978_s20 = scalar_lea.hbm %s7368_s2, 256 }
0x1785   : > { %p5975_p6 = scmp.ne.s32.totalorder %s7139_s19, %s5974_s23  ;;  %p5979_p9 = scmp.lt.s32.totalorder %s7139_s19, %s7368_s2 }
0x1786   : > { %p5980_p5 = scmp.lt.s32.totalorder %s5978_s20, %s5974_s23 }
0x1787   : > { %p5976_p2 = pnand %p5975_p6, %p7371_p10 }
0x1788   : > { %p5981_p1 = por %p5980_p5, %p5979_p9 }
0x1789   : > { %p5977_p13 = pneg %p5976_p2 }
0x178b   : > { %p5982_p8 = pnand %p5981_p1, %p5977_p13 }
0x178d   : > { %5985 = shalt.err (!%p5982_p8)
}
0x178e   : > { %5612 = dma.vmem_to_hbm [thread:$0]  (%p7371_p10), %s7141_s6, 128, %s7139_s19, %s7155_s0  }
0x178f   : > { %s4663_s8 = scalar_lea.sflag [#allocation4], %s6453_s16  ;;  %s5986_s9 = scalar_lea.vmem %s7149_s4, 128 }
0x1790   : > { %p5987_p11 = scmp.ne.s32.totalorder %s7149_s4, %s5986_s9  ;;  %s6114_s10 = smov [#allocation14]  }
0x1791   : > { %s5990_s1 = sshll.u32 %s6114_s10, 4  ;;  %s5991_s1 = int_to_ptr.vmem [resolvable:$false] %s5990_s1 }
0x1792   : > { %p5988_p12 = pnand %p5987_p11, %p7371_p10  ;;  %s5992_s23 = scalar_lea.vmem %s5991_s1, 256 }
0x1793   : > { %p5993_p4 = scmp.lt.s32.totalorder %s7149_s4, %s5991_s1  ;;  %p5994_p3 = scmp.lt.s32.totalorder %s5992_s23, %s5986_s9 }
0x1794   : > { %p5989_p0 = pneg %p5988_p12 }
0x1795   : > { %p5995_p7 = por %p5994_p3, %p5993_p4 }
0x1797   : > { %p5996_p6 = pnand %p5995_p7, %p5989_p0 }
0x1799   : > { %5999 = shalt.err (!%p5996_p6)
}
0x179a   : > { %s6000_s6 = scalar_lea.hbm %s7147_s5, 128  ;;  %s6004_s7 = scalar_lea.hbm %s7369_s17, 256 }
0x179b   : > { %p6001_p2 = scmp.ne.s32.totalorder %s7147_s5, %s6000_s6  ;;  %p6005_p5 = scmp.lt.s32.totalorder %s7147_s5, %s7369_s17 }
0x179c   : > { %p6006_p1 = scmp.lt.s32.totalorder %s6004_s7, %s6000_s6 }
0x179d   : > { %p6002_p13 = pnand %p6001_p2, %p7371_p10 }
0x179e   : > { %p6007_p8 = por %p6006_p1, %p6005_p5 }
0x179f   : > { %p6003_p9 = pneg %p6002_p13 }
0x17a1   : > { %p6008_p11 = pnand %p6007_p8, %p6003_p9 }
0x17a3   : > { %6011 = shalt.err (!%p6008_p11)
}
0x17a4   : > { %5611 = dma.vmem_to_hbm [thread:$0]  (%p7371_p10), %s7149_s4, 128, %s7147_s5, %s4663_s8   ;;  %v4647_v32 = vpop.f32.mrf.mxu0  ;;  %v5088_v46 = vld [vmem:[%s7366_s21 + $0x2] ss:$0 sm:$0xff] }
0x17a5   : > { %s845_s10 = scalar_lea.vmem [#allocation17], %s6456_s30  ;;  %v4651_v7 = vadd.f32 %v4647_v32, %v6969_v25  ;;  %s7372_s16 = sld [smem:[#allocation49_spill]] }
0x17a6   : > { %s4712_s1 = sshll.u32 %s845_s10, 4  ;;  %v5588_v8 = vpop.f32.mrf.mxu0  ;;  %s6115_s5 = smov [#allocation17]   ;;  %s4713_s1 = int_to_ptr.vmem [resolvable:$true] %s4712_s1 }
0x17a7   : > { %v4660_v9 = vadd.f32 %v5088_v46, %v4651_v7  ;;  %s6012_s7 = scalar_lea.vmem %s4713_s1, 128  ;;  %s6016_s4 = sshll.u32 %s6115_s5, 4  ;;  %s6017_s4 = int_to_ptr.vmem [resolvable:$false] %s6016_s4 }
0x17a8   : > { %p6013_p12 = scmp.ne.s32.totalorder %s4713_s1, %s6012_s7  ;;  %s6018_s30 = scalar_lea.vmem %s6017_s4, 256 }
0x17a9   : > { %4661 = vst.msk [vmem:[%s845_s10] sm:$0xff] %vm851_vm0, %v4660_v9  ;;  %p6019_p3 = scmp.lt.s32.totalorder %s4713_s1, %s6017_s4  ;;  %p6020_p7 = scmp.lt.s32.totalorder %s6018_s30, %s6012_s7 }
0x17aa   : > { %p6014_p0 = pnand %p6013_p12, %p7371_p10 }
0x17ab   : > { %s4710_s19 = scalar_lea.hbm %s7372_s16, %s7123_s15  ;;  %p6021_p6 = por %p6020_p7, %p6019_p3 }
0x17ac   : > { %p6015_p4 = pneg %p6014_p0 }
0x17ae   : > { %p6022_p2 = pnand %p6021_p6, %p6015_p4 }
0x17b0   : > { %6025 = shalt.err (!%p6022_p2)
}
0x17b1   : > { %s6026_s8 = scalar_lea.hbm %s4710_s19, 128  ;;  %s6030_s20 = scalar_lea.hbm %s7372_s16, 256 }
0x17b2   : > { %p6027_p13 = scmp.ne.s32.totalorder %s4710_s19, %s6026_s8  ;;  %p6031_p1 = scmp.lt.s32.totalorder %s4710_s19, %s7372_s16 }
0x17b3   : > { %p6032_p8 = scmp.lt.s32.totalorder %s6030_s20, %s6026_s8 }
0x17b4   : > { %p6028_p9 = pnand %p6027_p13, %p7371_p10 }
0x17b5   : > { %p6033_p11 = por %p6032_p8, %p6031_p1 }
0x17b6   : > { %p6029_p5 = pneg %p6028_p9 }
0x17b8   : > { %p6034_p12 = pnand %p6033_p11, %p6029_p5 }
0x17ba   : > { %6037 = shalt.err (!%p6034_p12)
}
0x17bb   : > { %5613 = dma.vmem_to_hbm [thread:$0]  (%p7371_p10), %s4713_s1, 128, %s4710_s19, %s7155_s0  }
0x17bc PF: > { %s7373_s10 = sld [smem:[#allocation24_spill]] }
0x17bd   : > { %s7374_s23 = sld [smem:[#allocation29_spill]] }
0x17be   : > { %s7375_s6 = sld [smem:[#allocation25_spill]] }
0x17c2   : > { %s4724_s7 = sand.u32 1, %s7373_s10  }
0x17c3   : > { %p7376_p0 = scmp.ne.s32.totalorder %s7374_s23, 0  ;;  %s4725_s5 = scalar_lea.sflag [#allocation4], %s4724_s7 }
0x17c4   : > { %p7377_p4 = scmp.ge.s32.totalorder %s7375_s6, 2 }
0x17c6   : > { %p5641_p3 = pnand %p7377_p4, %p7376_p0 }
0x17c8   : > { %p5642_p7 = pneg %p5641_p3 }
0x17ca   : > { %6071 = dma.done.wait (%p5642_p7), %s4725_s5, 128  }
0x17cb   : > { %6073 = vsyncadd (%p5642_p7), %s4725_s5, 4294967168  ;;  %s7378_s4 = sadd.s32 4294967294, %s7375_s6  }
0x17cc   : > { %s4733_s30 = sand.u32 1, %s7378_s4  }
0x17cd   : > { %s4734_s8 = scalar_lea.sflag [#allocation16], %s4733_s30 }
0x17ce   : > { %6075 = dma.done.wait (%p5642_p7), %s4734_s8, 256  }
0x17cf   : > { %6077 = vsyncadd (%p5642_p7), %s4734_s8, 4294967040  ;;  %s7379_s30 = sld [smem:[#allocation26_spill]]  ;;  %s7381_s3 = smov %s6084_s28 }
0x17d0   : > { %s7380_s12 = sld [smem:[#allocation27_spill]]  ;;  %s7382_s28 = smov %s6088_s29 }
0x17d5   : > { %p44_p10 = scmp.ge.s32.totalorder %s7379_s30, 4  }
0x17d6   : > { %s7383_s29 = smov %s7380_s12 }
0x17d7   :  { %46 = sbr.rel (!%p44_p10) target bundleno = 32 (0x20), region = 249 }
0x17dc   :  { %4748 = vsyncpa [#allocation3], 1 }
0x17dd   :  { %4750 = vsyncpa [#allocation3 + $0x1], 1 }
0x17de   :  { %4751 = vsyncpa [#allocation6], 1 }
0x17df   :  { %4753 = vsyncpa [#allocation6 + $0x1], 1 }
0x17e0   :  { %4754 = vsyncpa [#allocation9], 1 }
0x17e1   :  { %4755 = vsyncpa [#allocation12], 1 }
0x17e2   :  { %4756 = vsyncpa [#allocation4], 1 }
0x17e3   :  { %4758 = vsyncpa [#allocation4 + $0x1], 1 }
0x17e4   :  { %4759 = vsyncpa [#allocation16], 1 }
0x17e5   :  { %4761 = vsyncpa [#allocation16 + $0x1], 1 }

</bundles_post_ra>
